<compile_context>
chip_gen: v7x
topology: tpu7x:2x2x1
jax: 0.10.0
libtpu: 0.0.40
codegen_flags: <defaults>
</compile_context>

<pallas_src>
import functools

import jax
import jax.numpy as jnp
from jax import lax
from jax.experimental import pallas as pl
from jax.experimental.pallas import tpu as pltpu


def _convlstm_kernel(x_ref, w_ref, b_ref, wci_ref, wcf_ref, wco_ref, mask_ref,
                     out_ref, hx_ref, c_ref, rhs_ref, *,
                     H, W, Cin, Cout, KH, KW, Cpad):
    """One grid step == Tc time steps of the recurrence for one batch element.

    x_ref   : (Tc, Cin, H*W)      bf16   input chunk (channel-major, lane-dense)
    w_ref   : (4*Cout, KK)        bf16   fused conv weight, KK = KH*KW*Cpad
    b_ref   : (4*Cout, H*W)       f32    conv bias (pre-broadcast)
    wc*_ref : (Cout, H*W)         f32    peephole weights
    mask_ref: (KH*KW, H*W)        bf16   'same'-padding validity mask per tap
    out_ref : (Tc, Cout, H*W)     f32    h_t per step
    hx_ref  : VMEM (Cin+Cout, H*W) bf16  [x_t ; h_{t-1}] staging (recurrent h)
    c_ref   : VMEM (Cout, H*W)    f32    recurrent cell state
    rhs_ref : VMEM (KK, H*W)      bf16   im2col RHS for the fused matmul
    """
    HW = H * W
    C = Cin + Cout
    Tc = x_ref.shape[0]
    ph, pw = KH // 2, KW // 2

    @pl.when(pl.program_id(1) == 0)            # first chunk of this batch element
    def _():
        hx_ref[...] = jnp.zeros_like(hx_ref)   # h_0 = 0 (x rows overwritten below)
        c_ref[...] = jnp.zeros_like(c_ref)     # c_0 = 0
        rhs_ref[...] = jnp.zeros_like(rhs_ref) # zero the K-pad rows once

    # Loop-invariant operands, hoisted out of the per-timestep loop.
    w = w_ref[...]          # (4*Cout, KK) bf16
    bias = b_ref[...]       # (4*Cout, HW) f32
    wci = wci_ref[...]      # (Cout, HW)   f32
    wcf = wcf_ref[...]
    wco = wco_ref[...]

    for tt in range(Tc):    # static unroll over the time chunk
        # Stage x_t next to h_{t-1}: hx rows [0:Cin] = x_t, [Cin:C] = h_{t-1}.
        hx_ref[0:Cin, :] = x_ref[tt]
        hx = hx_ref[...]                              # (C, HW) bf16
        hx2 = jnp.concatenate([hx, hx], axis=1)       # (C, 2*HW), aligned lane concat

        # im2col: one lane-shifted + masked copy of hx per conv tap -> rhs rows.
        for kh in range(KH):
            for kw in range(KW):
                tap = kh * KW + kw
                s = ((kh - ph) * W + (kw - pw)) % HW  # static roll offset
                shifted = hx2[:, s:s + HW]            # == roll(hx) for this tap
                shifted = shifted * mask_ref[tap:tap + 1, :]   # zero 'same' halo
                rhs_ref[tap * Cpad:tap * Cpad + C, :] = shifted

        # Single fused MXU matmul: (4*Cout, KK) @ (KK, HW) -> (4*Cout, HW), f32.
        acc = jnp.dot(w, rhs_ref[...], preferred_element_type=jnp.float32) + bias

        # Gates (chunk order matches torch.chunk: i, f, g, o), all lane-dense f32.
        i_c = acc[0 * Cout:1 * Cout, :]
        f_c = acc[1 * Cout:2 * Cout, :]
        g_c = acc[2 * Cout:3 * Cout, :]
        o_c = acc[3 * Cout:4 * Cout, :]

        c_prev = c_ref[...]
        i_g = jax.nn.sigmoid(i_c + wci * c_prev)
        f_g = jax.nn.sigmoid(f_c + wcf * c_prev)
        c_new = f_g * c_prev + i_g * jnp.tanh(g_c)
        o_g = jax.nn.sigmoid(o_c + wco * c_new)
        h_new = o_g * jnp.tanh(c_new)

        c_ref[...] = c_new
        hx_ref[Cin:C, :] = h_new.astype(hx_ref.dtype)  # feed back for next step
        out_ref[tt] = h_new.astype(out_ref.dtype)      # dense 256-lane store


def convlstm_forward(x, wx, wh, b, wci, wcf, wco, *, t_chunk_cap=4):
    """x: (B, Cin, S, H, W)  ->  (B, Cout, S, H, W)  (PyTorch axis convention)."""
    B, Cin, S, H, W = x.shape
    KH, KW, _, C4 = wx.shape
    Cout = C4 // 4
    C = Cin + Cout
    HW = H * W
    ph, pw = KH // 2, KW // 2
    Cpad = ((C + 15) // 16) * 16          # per-tap K rows aligned to bf16 sublane tile
    KK = KH * KW * Cpad

    t_chunk = next(tc for tc in range(min(S, t_chunk_cap), 0, -1) if S % tc == 0)

    # ---- layout plumbing (wrapper only: HBM-side transposes/reshapes/casts) ----
    # x: (B, Cin, S, H, W) -> (B, S, Cin, H*W) in bf16 (halves HBM/DMA bytes).
    x_cm = jnp.transpose(x, (0, 2, 1, 3, 4)).reshape(B, S, Cin, HW).astype(jnp.bfloat16)

    # Fused conv weight: input channels ordered [x ; h], K-padded per tap.
    w_full = jnp.concatenate([wx, wh], axis=2)                         # (KH,KW,C,C4)
    w_full = jnp.pad(w_full, ((0, 0), (0, 0), (0, Cpad - C), (0, 0)))  # (KH,KW,Cpad,C4)
    w_cm = jnp.transpose(w_full, (3, 0, 1, 2)).reshape(C4, KK).astype(jnp.bfloat16)

    b_cm = jnp.broadcast_to(b.reshape(C4, 1), (C4, HW)).astype(jnp.float32)
    wci_cm = jnp.transpose(wci, (2, 0, 1)).reshape(Cout, HW).astype(jnp.float32)
    wcf_cm = jnp.transpose(wcf, (2, 0, 1)).reshape(Cout, HW).astype(jnp.float32)
    wco_cm = jnp.transpose(wco, (2, 0, 1)).reshape(Cout, HW).astype(jnp.float32)

    # 'same'-padding validity masks per conv tap on the folded H*W lane axis.
    ii, jj = jnp.meshgrid(jnp.arange(H), jnp.arange(W), indexing="ij")
    masks = []
    for kh in range(KH):
        for kw in range(KW):
            da, db = kh - ph, kw - pw
            ok = ((ii + da >= 0) & (ii + da < H) & (jj + db >= 0) & (jj + db < W))
            masks.append(ok.reshape(HW))
    mask_cm = jnp.stack(masks, axis=0).astype(jnp.bfloat16)            # (KH*KW, HW)

    kernel = functools.partial(_convlstm_kernel, H=H, W=W, Cin=Cin, Cout=Cout,
                               KH=KH, KW=KW, Cpad=Cpad)

    out = pl.pallas_call(
        kernel,
        out_shape=jax.ShapeDtypeStruct((B, S, Cout, HW), jnp.float32),
        grid_spec=pltpu.PrefetchScalarGridSpec(
            num_scalar_prefetch=0,
            grid=(B, S // t_chunk),
            in_specs=[
                pl.BlockSpec((pl.Squeezed(), t_chunk, Cin, HW),
                             lambda bb, tt: (bb, tt, 0, 0)),
                pl.BlockSpec((C4, KK), lambda bb, tt: (0, 0)),
                pl.BlockSpec((C4, HW), lambda bb, tt: (0, 0)),
                pl.BlockSpec((Cout, HW), lambda bb, tt: (0, 0)),
                pl.BlockSpec((Cout, HW), lambda bb, tt: (0, 0)),
                pl.BlockSpec((Cout, HW), lambda bb, tt: (0, 0)),
                pl.BlockSpec((KH * KW, HW), lambda bb, tt: (0, 0)),
            ],
            out_specs=pl.BlockSpec((pl.Squeezed(), t_chunk, Cout, HW),
                                   lambda bb, tt: (bb, tt, 0, 0)),
            scratch_shapes=[
                pltpu.VMEM((C, HW), jnp.bfloat16),     # [x_t ; h_{t-1}] staging
                pltpu.VMEM((Cout, HW), jnp.float32),   # cell state (f32)
                pltpu.VMEM((KK, HW), jnp.bfloat16),    # im2col RHS
            ],
        ),
        compiler_params=pltpu.CompilerParams(
            dimension_semantics=("parallel", "arbitrary"),  # batch || , time seq
            vmem_limit_bytes=16 * 1024 * 1024),
    )(x_cm, w_cm, b_cm, wci_cm, wcf_cm, wco_cm, mask_cm)

    # (B, S, Cout, H*W) -> (B, Cout, S, H, W)
    return jnp.transpose(out.reshape(B, S, Cout, H, W), (0, 2, 1, 3, 4))


def convlstm_reference(x, wx, wh, b, wci, wcf, wco):
    """Pure-JAX reference (lax.conv) with the same bf16-matmul / f32-gate precision."""
    B, Cin, S, H, W = x.shape
    C4 = wx.shape[-1]
    Cout = C4 // 4
    x_s = jnp.transpose(x, (2, 0, 3, 4, 1)).astype(jnp.bfloat16)   # (S,B,H,W,Cin)
    w_full = jnp.concatenate([wx, wh], axis=2).astype(jnp.bfloat16)
    bias = b.reshape(1, 1, 1, C4).astype(jnp.float32)
    wci_, wcf_, wco_ = (w[None].astype(jnp.float32) for w in (wci, wcf, wco))

    def step(carry, x_t):
        h, c = carry
        conv_in = jnp.concatenate([x_t, h.astype(jnp.bfloat16)], axis=-1)
        conv = lax.conv_general_dilated(
            conv_in, w_full, (1, 1), "SAME",
            dimension_numbers=("NHWC", "HWIO", "NHWC"),
            preferred_element_type=jnp.float32) + bias
        i_c, f_c, g_c, o_c = jnp.split(conv, 4, axis=-1)
        i = jax.nn.sigmoid(i_c + wci_ * c)
        f = jax.nn.sigmoid(f_c + wcf_ * c)
        c_new = f * c + i * jnp.tanh(g_c)
        o = jax.nn.sigmoid(o_c + wco_ * c_new)
        h_new = o * jnp.tanh(c_new)
        return (h_new, c_new), h_new

    h0 = jnp.zeros((B, H, W, Cout), jnp.float32)
    c0 = jnp.zeros((B, H, W, Cout), jnp.float32)
    _, hs = lax.scan(step, (h0, c0), x_s)
    return jnp.transpose(hs, (1, 4, 0, 2, 3))


if __name__ == "__main__":
    # Small shapes consistent with the module's forward signature.
    B, Cin, Cout, S, H, W = 2, 4, 8, 8, 16, 16      # H*W = 256 lanes (dense)
    KH = KW = 3

    key = jax.random.PRNGKey(0)
    k1, k2, k3, k4, k5, k6, kx = jax.random.split(key, 7)

    # Deterministic synthetic parameters (activation = tanh, padding = 'same').
    # NOTE: the module's default WeightsInitializer.Zeros would zero the
    # peephole weights; we use small random values so that path is exercised.
    wx = 0.1 * jax.random.normal(k1, (KH, KW, Cin, 4 * Cout), jnp.float32)
    wh = 0.1 * jax.random.normal(k2, (KH, KW, Cout, 4 * Cout), jnp.float32)
    b = 0.1 * jax.random.normal(k3, (1, 4 * Cout), jnp.float32)
    wci = 0.1 * jax.random.normal(k4, (H, W, Cout), jnp.float32)
    wcf = 0.1 * jax.random.normal(k5, (H, W, Cout), jnp.float32)
    wco = 0.1 * jax.random.normal(k6, (H, W, Cout), jnp.float32)

    x = jax.random.normal(kx, (B, Cin, S, H, W), jnp.float32)

    out = jax.block_until_ready(convlstm_forward(x, wx, wh, b, wci, wcf, wco))
    assert out.shape == (B, Cout, S, H, W), out.shape

    ref = jax.block_until_ready(convlstm_reference(x, wx, wh, b, wci, wcf, wco))
    max_err = float(jnp.max(jnp.abs(out - ref)))
    assert jnp.allclose(out, ref, rtol=5e-3, atol=5e-3), max_err

    print("KERNEL_OK")
</pallas_src>

<mosaic_0001>
module attributes {stable_mosaic.version = 11 : i64} {
  func.func @_convlstm_kernel(%arg0: i32, %arg1: i32, %arg2: memref<1x4x4x256xbf16, #tpu.memory_space<vmem>>, %arg3: memref<32x144xbf16, #tpu.memory_space<vmem>>, %arg4: memref<32x256xf32, #tpu.memory_space<vmem>>, %arg5: memref<8x256xf32, #tpu.memory_space<vmem>>, %arg6: memref<8x256xf32, #tpu.memory_space<vmem>>, %arg7: memref<8x256xf32, #tpu.memory_space<vmem>>, %arg8: memref<9x256xbf16, #tpu.memory_space<vmem>>, %arg9: memref<1x4x8x256xf32, #tpu.memory_space<vmem>>, %arg10: memref<12x256xbf16, #tpu.memory_space<vmem>>, %arg11: memref<8x256xf32, #tpu.memory_space<vmem>>, %arg12: memref<144x256xbf16, #tpu.memory_space<vmem>>) attributes {dimension_semantics = [#tpu.dimension_semantics<parallel>, #tpu.dimension_semantics<arbitrary>], iteration_bounds = array<i64: 2, 2>, scalar_prefetch = 0 : i64, scratch_operands = 3 : i64, tpu.core_type = #tpu.core_type<tc>, window_params = [{transform_indices = @transform_0, window_bounds = array<i64: 1, 4, 4, 256>}, {pipeline_mode = #tpu.pipeline_mode<synchronous>, transform_indices = @transform_1, window_bounds = array<i64: 32, 144>}, {pipeline_mode = #tpu.pipeline_mode<synchronous>, transform_indices = @transform_2, window_bounds = array<i64: 32, 256>}, {pipeline_mode = #tpu.pipeline_mode<synchronous>, transform_indices = @transform_3, window_bounds = array<i64: 8, 256>}, {pipeline_mode = #tpu.pipeline_mode<synchronous>, transform_indices = @transform_4, window_bounds = array<i64: 8, 256>}, {pipeline_mode = #tpu.pipeline_mode<synchronous>, transform_indices = @transform_5, window_bounds = array<i64: 8, 256>}, {pipeline_mode = #tpu.pipeline_mode<synchronous>, transform_indices = @transform_6, window_bounds = array<i64: 9, 256>}, {transform_indices = @transform_7, window_bounds = array<i64: 1, 4, 8, 256>}]} {
    %c0_i32 = arith.constant 0 : i32
    %0 = arith.cmpi eq, %arg1, %c0_i32 : i32
    %1 = arith.extui %0 : i1 to i32
    %c0_i32_0 = arith.constant 0 : i32
    %2 = arith.cmpi ne, %1, %c0_i32_0 : i32
    scf.if %2 {
      %cst_233 = arith.constant 0.000000e+00 : bf16
      %372 = vector.broadcast %cst_233 : bf16 to vector<12x256xbf16>
      %c0_234 = arith.constant 0 : index
      %c0_235 = arith.constant 0 : index
      %373 = vector.load %arg10[%c0_234, %c0_235] : memref<12x256xbf16, #tpu.memory_space<vmem>>, vector<12x256xbf16>
      tpu.vector_store %arg10[%c0_234, %c0_235], %372 {strides = array<i32>} : memref<12x256xbf16, #tpu.memory_space<vmem>>, vector<12x256xbf16>,
      %cst_236 = arith.constant 0.000000e+00 : f32
      %374 = vector.broadcast %cst_236 : f32 to vector<8x256xf32>
      %c0_237 = arith.constant 0 : index
      %c0_238 = arith.constant 0 : index
      %375 = vector.load %arg11[%c0_237, %c0_238] : memref<8x256xf32, #tpu.memory_space<vmem>>, vector<8x256xf32>
      tpu.vector_store %arg11[%c0_237, %c0_238], %374 {strides = array<i32>} : memref<8x256xf32, #tpu.memory_space<vmem>>, vector<8x256xf32>,
      %cst_239 = arith.constant 0.000000e+00 : bf16
      %376 = vector.broadcast %cst_239 : bf16 to vector<144x256xbf16>
      %c0_240 = arith.constant 0 : index
      %c0_241 = arith.constant 0 : index
      %377 = vector.load %arg12[%c0_240, %c0_241] : memref<144x256xbf16, #tpu.memory_space<vmem>>, vector<144x256xbf16>
      tpu.vector_store %arg12[%c0_240, %c0_241], %376 {strides = array<i32>} : memref<144x256xbf16, #tpu.memory_space<vmem>>, vector<144x256xbf16>,
    } else {
    }
    %c0 = arith.constant 0 : index
    %c0_1 = arith.constant 0 : index
    %3 = vector.load %arg3[%c0, %c0_1] : memref<32x144xbf16, #tpu.memory_space<vmem>>, vector<32x144xbf16>
    %c0_2 = arith.constant 0 : index
    %c0_3 = arith.constant 0 : index
    %4 = vector.load %arg4[%c0_2, %c0_3] : memref<32x256xf32, #tpu.memory_space<vmem>>, vector<32x256xf32>
    %c0_4 = arith.constant 0 : index
    %c0_5 = arith.constant 0 : index
    %5 = vector.load %arg5[%c0_4, %c0_5] : memref<8x256xf32, #tpu.memory_space<vmem>>, vector<8x256xf32>
    %c0_6 = arith.constant 0 : index
    %c0_7 = arith.constant 0 : index
    %6 = vector.load %arg6[%c0_6, %c0_7] : memref<8x256xf32, #tpu.memory_space<vmem>>, vector<8x256xf32>
    %c0_8 = arith.constant 0 : index
    %c0_9 = arith.constant 0 : index
    %7 = vector.load %arg7[%c0_8, %c0_9] : memref<8x256xf32, #tpu.memory_space<vmem>>, vector<8x256xf32>
    %c0_10 = arith.constant 0 : index
    %c0_11 = arith.constant 0 : index
    %c0_12 = arith.constant 0 : index
    %c0_13 = arith.constant 0 : index
    %8 = vector.load %arg2[%c0_10, %c0_11, %c0_12, %c0_13] : memref<1x4x4x256xbf16, #tpu.memory_space<vmem>>, vector<1x1x4x256xbf16>
    %9 = vector.shape_cast %8 : vector<1x1x4x256xbf16> to vector<4x256xbf16>
    %c0_14 = arith.constant 0 : index
    %c0_15 = arith.constant 0 : index
    %10 = vector.load %arg10[%c0_14, %c0_15] : memref<12x256xbf16, #tpu.memory_space<vmem>>, vector<4x256xbf16>
    tpu.vector_store %arg10[%c0_14, %c0_15], %9 {strides = array<i32>} : memref<12x256xbf16, #tpu.memory_space<vmem>>, vector<4x256xbf16>,
    %c0_16 = arith.constant 0 : index
    %c0_17 = arith.constant 0 : index
    %11 = vector.load %arg10[%c0_16, %c0_17] : memref<12x256xbf16, #tpu.memory_space<vmem>>, vector<12x256xbf16>
    %12 = tpu.concatenate %11, %11 in 1 : vector<12x256xbf16>, vector<12x256xbf16> -> vector<12x512xbf16>
    %13 = vector.extract_strided_slice %12 {offsets = [0, 239], sizes = [12, 256], strides = [1, 1]} : vector<12x512xbf16> to vector<12x256xbf16>
    %c0_18 = arith.constant 0 : index
    %c0_19 = arith.constant 0 : index
    %14 = vector.load %arg8[%c0_18, %c0_19] : memref<9x256xbf16, #tpu.memory_space<vmem>>, vector<1x256xbf16>
    %15 = vector.broadcast %14 : vector<1x256xbf16> to vector<12x256xbf16>
    %16 = arith.mulf %13, %15 : vector<12x256xbf16>
    %c0_20 = arith.constant 0 : index
    %c0_21 = arith.constant 0 : index
    %17 = vector.load %arg12[%c0_20, %c0_21] : memref<144x256xbf16, #tpu.memory_space<vmem>>, vector<12x256xbf16>
    tpu.vector_store %arg12[%c0_20, %c0_21], %16 {strides = array<i32>} : memref<144x256xbf16, #tpu.memory_space<vmem>>, vector<12x256xbf16>,
    %18 = vector.extract_strided_slice %12 {offsets = [0, 240], sizes = [12, 256], strides = [1, 1]} : vector<12x512xbf16> to vector<12x256xbf16>
    %c1 = arith.constant 1 : index
    %c0_22 = arith.constant 0 : index
    %19 = vector.load %arg8[%c1, %c0_22] : memref<9x256xbf16, #tpu.memory_space<vmem>>, vector<1x256xbf16>
    %20 = vector.broadcast %19 : vector<1x256xbf16> to vector<12x256xbf16>
    %21 = arith.mulf %18, %20 : vector<12x256xbf16>
    %c16 = arith.constant 16 : index
    %c0_23 = arith.constant 0 : index
    %22 = vector.load %arg12[%c16, %c0_23] : memref<144x256xbf16, #tpu.memory_space<vmem>>, vector<12x256xbf16>
    tpu.vector_store %arg12[%c16, %c0_23], %21 {strides = array<i32>} : memref<144x256xbf16, #tpu.memory_space<vmem>>, vector<12x256xbf16>,
    %23 = vector.extract_strided_slice %12 {offsets = [0, 241], sizes = [12, 256], strides = [1, 1]} : vector<12x512xbf16> to vector<12x256xbf16>
    %c2 = arith.constant 2 : index
    %c0_24 = arith.constant 0 : index
    %24 = vector.load %arg8[%c2, %c0_24] : memref<9x256xbf16, #tpu.memory_space<vmem>>, vector<1x256xbf16>
    %25 = vector.broadcast %24 : vector<1x256xbf16> to vector<12x256xbf16>
    %26 = arith.mulf %23, %25 : vector<12x256xbf16>
    %c32 = arith.constant 32 : index
    %c0_25 = arith.constant 0 : index
    %27 = vector.load %arg12[%c32, %c0_25] : memref<144x256xbf16, #tpu.memory_space<vmem>>, vector<12x256xbf16>
    tpu.vector_store %arg12[%c32, %c0_25], %26 {strides = array<i32>} : memref<144x256xbf16, #tpu.memory_space<vmem>>, vector<12x256xbf16>,
    %28 = vector.extract_strided_slice %12 {offsets = [0, 255], sizes = [12, 256], strides = [1, 1]} : vector<12x512xbf16> to vector<12x256xbf16>
    %c3 = arith.constant 3 : index
    %c0_26 = arith.constant 0 : index
    %29 = vector.load %arg8[%c3, %c0_26] : memref<9x256xbf16, #tpu.memory_space<vmem>>, vector<1x256xbf16>
    %30 = vector.broadcast %29 : vector<1x256xbf16> to vector<12x256xbf16>
    %31 = arith.mulf %28, %30 : vector<12x256xbf16>
    %c48 = arith.constant 48 : index
    %c0_27 = arith.constant 0 : index
    %32 = vector.load %arg12[%c48, %c0_27] : memref<144x256xbf16, #tpu.memory_space<vmem>>, vector<12x256xbf16>
    tpu.vector_store %arg12[%c48, %c0_27], %31 {strides = array<i32>} : memref<144x256xbf16, #tpu.memory_space<vmem>>, vector<12x256xbf16>,
    %33 = vector.extract_strided_slice %12 {offsets = [0, 0], sizes = [12, 256], strides = [1, 1]} : vector<12x512xbf16> to vector<12x256xbf16>
    %c4 = arith.constant 4 : index
    %c0_28 = arith.constant 0 : index
    %34 = vector.load %arg8[%c4, %c0_28] : memref<9x256xbf16, #tpu.memory_space<vmem>>, vector<1x256xbf16>
    %35 = vector.broadcast %34 : vector<1x256xbf16> to vector<12x256xbf16>
    %36 = arith.mulf %33, %35 : vector<12x256xbf16>
    %c64 = arith.constant 64 : index
    %c0_29 = arith.constant 0 : index
    %37 = vector.load %arg12[%c64, %c0_29] : memref<144x256xbf16, #tpu.memory_space<vmem>>, vector<12x256xbf16>
    tpu.vector_store %arg12[%c64, %c0_29], %36 {strides = array<i32>} : memref<144x256xbf16, #tpu.memory_space<vmem>>, vector<12x256xbf16>,
    %38 = vector.extract_strided_slice %12 {offsets = [0, 1], sizes = [12, 256], strides = [1, 1]} : vector<12x512xbf16> to vector<12x256xbf16>
    %c5 = arith.constant 5 : index
    %c0_30 = arith.constant 0 : index
    %39 = vector.load %arg8[%c5, %c0_30] : memref<9x256xbf16, #tpu.memory_space<vmem>>, vector<1x256xbf16>
    %40 = vector.broadcast %39 : vector<1x256xbf16> to vector<12x256xbf16>
    %41 = arith.mulf %38, %40 : vector<12x256xbf16>
    %c80 = arith.constant 80 : index
    %c0_31 = arith.constant 0 : index
    %42 = vector.load %arg12[%c80, %c0_31] : memref<144x256xbf16, #tpu.memory_space<vmem>>, vector<12x256xbf16>
    tpu.vector_store %arg12[%c80, %c0_31], %41 {strides = array<i32>} : memref<144x256xbf16, #tpu.memory_space<vmem>>, vector<12x256xbf16>,
    %43 = vector.extract_strided_slice %12 {offsets = [0, 15], sizes = [12, 256], strides = [1, 1]} : vector<12x512xbf16> to vector<12x256xbf16>
    %c6 = arith.constant 6 : index
    %c0_32 = arith.constant 0 : index
    %44 = vector.load %arg8[%c6, %c0_32] : memref<9x256xbf16, #tpu.memory_space<vmem>>, vector<1x256xbf16>
    %45 = vector.broadcast %44 : vector<1x256xbf16> to vector<12x256xbf16>
    %46 = arith.mulf %43, %45 : vector<12x256xbf16>
    %c96 = arith.constant 96 : index
    %c0_33 = arith.constant 0 : index
    %47 = vector.load %arg12[%c96, %c0_33] : memref<144x256xbf16, #tpu.memory_space<vmem>>, vector<12x256xbf16>
    tpu.vector_store %arg12[%c96, %c0_33], %46 {strides = array<i32>} : memref<144x256xbf16, #tpu.memory_space<vmem>>, vector<12x256xbf16>,
    %48 = vector.extract_strided_slice %12 {offsets = [0, 16], sizes = [12, 256], strides = [1, 1]} : vector<12x512xbf16> to vector<12x256xbf16>
    %c7 = arith.constant 7 : index
    %c0_34 = arith.constant 0 : index
    %49 = vector.load %arg8[%c7, %c0_34] : memref<9x256xbf16, #tpu.memory_space<vmem>>, vector<1x256xbf16>
    %50 = vector.broadcast %49 : vector<1x256xbf16> to vector<12x256xbf16>
    %51 = arith.mulf %48, %50 : vector<12x256xbf16>
    %c112 = arith.constant 112 : index
    %c0_35 = arith.constant 0 : index
    %52 = vector.load %arg12[%c112, %c0_35] : memref<144x256xbf16, #tpu.memory_space<vmem>>, vector<12x256xbf16>
    tpu.vector_store %arg12[%c112, %c0_35], %51 {strides = array<i32>} : memref<144x256xbf16, #tpu.memory_space<vmem>>, vector<12x256xbf16>,
    %53 = vector.extract_strided_slice %12 {offsets = [0, 17], sizes = [12, 256], strides = [1, 1]} : vector<12x512xbf16> to vector<12x256xbf16>
    %c8 = arith.constant 8 : index
    %c0_36 = arith.constant 0 : index
    %54 = vector.load %arg8[%c8, %c0_36] : memref<9x256xbf16, #tpu.memory_space<vmem>>, vector<1x256xbf16>
    %55 = vector.broadcast %54 : vector<1x256xbf16> to vector<12x256xbf16>
    %56 = arith.mulf %53, %55 : vector<12x256xbf16>
    %c128 = arith.constant 128 : index
    %c0_37 = arith.constant 0 : index
    %57 = vector.load %arg12[%c128, %c0_37] : memref<144x256xbf16, #tpu.memory_space<vmem>>, vector<12x256xbf16>
    tpu.vector_store %arg12[%c128, %c0_37], %56 {strides = array<i32>} : memref<144x256xbf16, #tpu.memory_space<vmem>>, vector<12x256xbf16>,
    %c0_38 = arith.constant 0 : index
    %c0_39 = arith.constant 0 : index
    %58 = vector.load %arg12[%c0_38, %c0_39] : memref<144x256xbf16, #tpu.memory_space<vmem>>, vector<144x256xbf16>
    %cst = arith.constant dense<0.000000e+00> : vector<32x256xf32>
    %59 = tpu.matmul %3, %58, %cst {dimension_numbers = #tpu.dot_dimension_numbers<[1], [0], [0], [1], [0, 0, 1, 1], [], []>} : vector<32x144xbf16>, vector<144x256xbf16>, vector<32x256xf32> -> vector<32x256xf32>
    %60 = arith.addf %59, %4 : vector<32x256xf32>
    %61 = vector.extract_strided_slice %60 {offsets = [0, 0], sizes = [8, 256], strides = [1, 1]} : vector<32x256xf32> to vector<8x256xf32>
    %62 = vector.extract_strided_slice %60 {offsets = [8, 0], sizes = [8, 256], strides = [1, 1]} : vector<32x256xf32> to vector<8x256xf32>
    %63 = vector.extract_strided_slice %60 {offsets = [16, 0], sizes = [8, 256], strides = [1, 1]} : vector<32x256xf32> to vector<8x256xf32>
    %64 = vector.extract_strided_slice %60 {offsets = [24, 0], sizes = [8, 256], strides = [1, 1]} : vector<32x256xf32> to vector<8x256xf32>
    %c0_40 = arith.constant 0 : index
    %c0_41 = arith.constant 0 : index
    %65 = vector.load %arg11[%c0_40, %c0_41] : memref<8x256xf32, #tpu.memory_space<vmem>>, vector<8x256xf32>
    %66 = arith.mulf %5, %65 : vector<8x256xf32>
    %67 = arith.addf %61, %66 : vector<8x256xf32>
    %68 = arith.negf %67 : vector<8x256xf32>
    %69 = math.exp %68 : vector<8x256xf32>
    %cst_42 = arith.constant 1.000000e+00 : f32
    %70 = vector.broadcast %cst_42 : f32 to vector<8x256xf32>
    %71 = arith.addf %70, %69 : vector<8x256xf32>
    %72 = arith.divf %70, %71 : vector<8x256xf32>
    %73 = arith.mulf %6, %65 : vector<8x256xf32>
    %74 = arith.addf %62, %73 : vector<8x256xf32>
    %75 = arith.negf %74 : vector<8x256xf32>
    %76 = math.exp %75 : vector<8x256xf32>
    %cst_43 = arith.constant 1.000000e+00 : f32
    %77 = vector.broadcast %cst_43 : f32 to vector<8x256xf32>
    %78 = arith.addf %77, %76 : vector<8x256xf32>
    %79 = arith.divf %77, %78 : vector<8x256xf32>
    %80 = arith.mulf %79, %65 : vector<8x256xf32>
    %81 = math.tanh %63 : vector<8x256xf32>
    %82 = arith.mulf %72, %81 : vector<8x256xf32>
    %83 = arith.addf %80, %82 : vector<8x256xf32>
    %84 = arith.mulf %7, %83 : vector<8x256xf32>
    %85 = arith.addf %64, %84 : vector<8x256xf32>
    %86 = arith.negf %85 : vector<8x256xf32>
    %87 = math.exp %86 : vector<8x256xf32>
    %cst_44 = arith.constant 1.000000e+00 : f32
    %88 = vector.broadcast %cst_44 : f32 to vector<8x256xf32>
    %89 = arith.addf %88, %87 : vector<8x256xf32>
    %90 = arith.divf %88, %89 : vector<8x256xf32>
    %91 = math.tanh %83 : vector<8x256xf32>
    %92 = arith.mulf %90, %91 : vector<8x256xf32>
    %c0_45 = arith.constant 0 : index
    %c0_46 = arith.constant 0 : index
    %93 = vector.load %arg11[%c0_45, %c0_46] : memref<8x256xf32, #tpu.memory_space<vmem>>, vector<8x256xf32>
    tpu.vector_store %arg11[%c0_45, %c0_46], %83 {strides = array<i32>} : memref<8x256xf32, #tpu.memory_space<vmem>>, vector<8x256xf32>,
    %94 = arith.truncf %92 : vector<8x256xf32> to vector<8x256xbf16>
    %c4_47 = arith.constant 4 : index
    %c0_48 = arith.constant 0 : index
    %95 = vector.load %arg10[%c4_47, %c0_48] : memref<12x256xbf16, #tpu.memory_space<vmem>>, vector<8x256xbf16>
    tpu.vector_store %arg10[%c4_47, %c0_48], %94 {strides = array<i32>} : memref<12x256xbf16, #tpu.memory_space<vmem>>, vector<8x256xbf16>,
    %c0_49 = arith.constant 0 : index
    %c0_50 = arith.constant 0 : index
    %c0_51 = arith.constant 0 : index
    %c0_52 = arith.constant 0 : index
    %96 = vector.load %arg9[%c0_49, %c0_50, %c0_51, %c0_52] : memref<1x4x8x256xf32, #tpu.memory_space<vmem>>, vector<1x1x8x256xf32>
    %97 = vector.shape_cast %96 : vector<1x1x8x256xf32> to vector<8x256xf32>
    %98 = vector.shape_cast %92 : vector<8x256xf32> to vector<1x1x8x256xf32>
    tpu.vector_store %arg9[%c0_49, %c0_50, %c0_51, %c0_52], %98 {strides = array<i32>} : memref<1x4x8x256xf32, #tpu.memory_space<vmem>>, vector<1x1x8x256xf32>,
    %c0_53 = arith.constant 0 : index
    %c1_54 = arith.constant 1 : index
    %c0_55 = arith.constant 0 : index
    %c0_56 = arith.constant 0 : index
    %99 = vector.load %arg2[%c0_53, %c1_54, %c0_55, %c0_56] : memref<1x4x4x256xbf16, #tpu.memory_space<vmem>>, vector<1x1x4x256xbf16>
    %100 = vector.shape_cast %99 : vector<1x1x4x256xbf16> to vector<4x256xbf16>
    %c0_57 = arith.constant 0 : index
    %c0_58 = arith.constant 0 : index
    %101 = vector.load %arg10[%c0_57, %c0_58] : memref<12x256xbf16, #tpu.memory_space<vmem>>, vector<4x256xbf16>
    tpu.vector_store %arg10[%c0_57, %c0_58], %100 {strides = array<i32>} : memref<12x256xbf16, #tpu.memory_space<vmem>>, vector<4x256xbf16>,
    %c0_59 = arith.constant 0 : index
    %c0_60 = arith.constant 0 : index
    %102 = vector.load %arg10[%c0_59, %c0_60] : memref<12x256xbf16, #tpu.memory_space<vmem>>, vector<12x256xbf16>
    %103 = tpu.concatenate %102, %102 in 1 : vector<12x256xbf16>, vector<12x256xbf16> -> vector<12x512xbf16>
    %104 = vector.extract_strided_slice %103 {offsets = [0, 239], sizes = [12, 256], strides = [1, 1]} : vector<12x512xbf16> to vector<12x256xbf16>
    %c0_61 = arith.constant 0 : index
    %c0_62 = arith.constant 0 : index
    %105 = vector.load %arg8[%c0_61, %c0_62] : memref<9x256xbf16, #tpu.memory_space<vmem>>, vector<1x256xbf16>
    %106 = vector.broadcast %105 : vector<1x256xbf16> to vector<12x256xbf16>
    %107 = arith.mulf %104, %106 : vector<12x256xbf16>
    %c0_63 = arith.constant 0 : index
    %c0_64 = arith.constant 0 : index
    %108 = vector.load %arg12[%c0_63, %c0_64] : memref<144x256xbf16, #tpu.memory_space<vmem>>, vector<12x256xbf16>
    tpu.vector_store %arg12[%c0_63, %c0_64], %107 {strides = array<i32>} : memref<144x256xbf16, #tpu.memory_space<vmem>>, vector<12x256xbf16>,
    %109 = vector.extract_strided_slice %103 {offsets = [0, 240], sizes = [12, 256], strides = [1, 1]} : vector<12x512xbf16> to vector<12x256xbf16>
    %c1_65 = arith.constant 1 : index
    %c0_66 = arith.constant 0 : index
    %110 = vector.load %arg8[%c1_65, %c0_66] : memref<9x256xbf16, #tpu.memory_space<vmem>>, vector<1x256xbf16>
    %111 = vector.broadcast %110 : vector<1x256xbf16> to vector<12x256xbf16>
    %112 = arith.mulf %109, %111 : vector<12x256xbf16>
    %c16_67 = arith.constant 16 : index
    %c0_68 = arith.constant 0 : index
    %113 = vector.load %arg12[%c16_67, %c0_68] : memref<144x256xbf16, #tpu.memory_space<vmem>>, vector<12x256xbf16>
    tpu.vector_store %arg12[%c16_67, %c0_68], %112 {strides = array<i32>} : memref<144x256xbf16, #tpu.memory_space<vmem>>, vector<12x256xbf16>,
    %114 = vector.extract_strided_slice %103 {offsets = [0, 241], sizes = [12, 256], strides = [1, 1]} : vector<12x512xbf16> to vector<12x256xbf16>
    %c2_69 = arith.constant 2 : index
    %c0_70 = arith.constant 0 : index
    %115 = vector.load %arg8[%c2_69, %c0_70] : memref<9x256xbf16, #tpu.memory_space<vmem>>, vector<1x256xbf16>
    %116 = vector.broadcast %115 : vector<1x256xbf16> to vector<12x256xbf16>
    %117 = arith.mulf %114, %116 : vector<12x256xbf16>
    %c32_71 = arith.constant 32 : index
    %c0_72 = arith.constant 0 : index
    %118 = vector.load %arg12[%c32_71, %c0_72] : memref<144x256xbf16, #tpu.memory_space<vmem>>, vector<12x256xbf16>
    tpu.vector_store %arg12[%c32_71, %c0_72], %117 {strides = array<i32>} : memref<144x256xbf16, #tpu.memory_space<vmem>>, vector<12x256xbf16>,
    %119 = vector.extract_strided_slice %103 {offsets = [0, 255], sizes = [12, 256], strides = [1, 1]} : vector<12x512xbf16> to vector<12x256xbf16>
    %c3_73 = arith.constant 3 : index
    %c0_74 = arith.constant 0 : index
    %120 = vector.load %arg8[%c3_73, %c0_74] : memref<9x256xbf16, #tpu.memory_space<vmem>>, vector<1x256xbf16>
    %121 = vector.broadcast %120 : vector<1x256xbf16> to vector<12x256xbf16>
    %122 = arith.mulf %119, %121 : vector<12x256xbf16>
    %c48_75 = arith.constant 48 : index
    %c0_76 = arith.constant 0 : index
    %123 = vector.load %arg12[%c48_75, %c0_76] : memref<144x256xbf16, #tpu.memory_space<vmem>>, vector<12x256xbf16>
    tpu.vector_store %arg12[%c48_75, %c0_76], %122 {strides = array<i32>} : memref<144x256xbf16, #tpu.memory_space<vmem>>, vector<12x256xbf16>,
    %124 = vector.extract_strided_slice %103 {offsets = [0, 0], sizes = [12, 256], strides = [1, 1]} : vector<12x512xbf16> to vector<12x256xbf16>
    %c4_77 = arith.constant 4 : index
    %c0_78 = arith.constant 0 : index
    %125 = vector.load %arg8[%c4_77, %c0_78] : memref<9x256xbf16, #tpu.memory_space<vmem>>, vector<1x256xbf16>
    %126 = vector.broadcast %125 : vector<1x256xbf16> to vector<12x256xbf16>
    %127 = arith.mulf %124, %126 : vector<12x256xbf16>
    %c64_79 = arith.constant 64 : index
    %c0_80 = arith.constant 0 : index
    %128 = vector.load %arg12[%c64_79, %c0_80] : memref<144x256xbf16, #tpu.memory_space<vmem>>, vector<12x256xbf16>
    tpu.vector_store %arg12[%c64_79, %c0_80], %127 {strides = array<i32>} : memref<144x256xbf16, #tpu.memory_space<vmem>>, vector<12x256xbf16>,
    %129 = vector.extract_strided_slice %103 {offsets = [0, 1], sizes = [12, 256], strides = [1, 1]} : vector<12x512xbf16> to vector<12x256xbf16>
    %c5_81 = arith.constant 5 : index
    %c0_82 = arith.constant 0 : index
    %130 = vector.load %arg8[%c5_81, %c0_82] : memref<9x256xbf16, #tpu.memory_space<vmem>>, vector<1x256xbf16>
    %131 = vector.broadcast %130 : vector<1x256xbf16> to vector<12x256xbf16>
    %132 = arith.mulf %129, %131 : vector<12x256xbf16>
    %c80_83 = arith.constant 80 : index
    %c0_84 = arith.constant 0 : index
    %133 = vector.load %arg12[%c80_83, %c0_84] : memref<144x256xbf16, #tpu.memory_space<vmem>>, vector<12x256xbf16>
    tpu.vector_store %arg12[%c80_83, %c0_84], %132 {strides = array<i32>} : memref<144x256xbf16, #tpu.memory_space<vmem>>, vector<12x256xbf16>,
    %134 = vector.extract_strided_slice %103 {offsets = [0, 15], sizes = [12, 256], strides = [1, 1]} : vector<12x512xbf16> to vector<12x256xbf16>
    %c6_85 = arith.constant 6 : index
    %c0_86 = arith.constant 0 : index
    %135 = vector.load %arg8[%c6_85, %c0_86] : memref<9x256xbf16, #tpu.memory_space<vmem>>, vector<1x256xbf16>
    %136 = vector.broadcast %135 : vector<1x256xbf16> to vector<12x256xbf16>
    %137 = arith.mulf %134, %136 : vector<12x256xbf16>
    %c96_87 = arith.constant 96 : index
    %c0_88 = arith.constant 0 : index
    %138 = vector.load %arg12[%c96_87, %c0_88] : memref<144x256xbf16, #tpu.memory_space<vmem>>, vector<12x256xbf16>
    tpu.vector_store %arg12[%c96_87, %c0_88], %137 {strides = array<i32>} : memref<144x256xbf16, #tpu.memory_space<vmem>>, vector<12x256xbf16>,
    %139 = vector.extract_strided_slice %103 {offsets = [0, 16], sizes = [12, 256], strides = [1, 1]} : vector<12x512xbf16> to vector<12x256xbf16>
    %c7_89 = arith.constant 7 : index
    %c0_90 = arith.constant 0 : index
    %140 = vector.load %arg8[%c7_89, %c0_90] : memref<9x256xbf16, #tpu.memory_space<vmem>>, vector<1x256xbf16>
    %141 = vector.broadcast %140 : vector<1x256xbf16> to vector<12x256xbf16>
    %142 = arith.mulf %139, %141 : vector<12x256xbf16>
    %c112_91 = arith.constant 112 : index
    %c0_92 = arith.constant 0 : index
    %143 = vector.load %arg12[%c112_91, %c0_92] : memref<144x256xbf16, #tpu.memory_space<vmem>>, vector<12x256xbf16>
    tpu.vector_store %arg12[%c112_91, %c0_92], %142 {strides = array<i32>} : memref<144x256xbf16, #tpu.memory_space<vmem>>, vector<12x256xbf16>,
    %144 = vector.extract_strided_slice %103 {offsets = [0, 17], sizes = [12, 256], strides = [1, 1]} : vector<12x512xbf16> to vector<12x256xbf16>
    %c8_93 = arith.constant 8 : index
    %c0_94 = arith.constant 0 : index
    %145 = vector.load %arg8[%c8_93, %c0_94] : memref<9x256xbf16, #tpu.memory_space<vmem>>, vector<1x256xbf16>
    %146 = vector.broadcast %145 : vector<1x256xbf16> to vector<12x256xbf16>
    %147 = arith.mulf %144, %146 : vector<12x256xbf16>
    %c128_95 = arith.constant 128 : index
    %c0_96 = arith.constant 0 : index
    %148 = vector.load %arg12[%c128_95, %c0_96] : memref<144x256xbf16, #tpu.memory_space<vmem>>, vector<12x256xbf16>
    tpu.vector_store %arg12[%c128_95, %c0_96], %147 {strides = array<i32>} : memref<144x256xbf16, #tpu.memory_space<vmem>>, vector<12x256xbf16>,
    %c0_97 = arith.constant 0 : index
    %c0_98 = arith.constant 0 : index
    %149 = vector.load %arg12[%c0_97, %c0_98] : memref<144x256xbf16, #tpu.memory_space<vmem>>, vector<144x256xbf16>
    %cst_99 = arith.constant dense<0.000000e+00> : vector<32x256xf32>
    %150 = tpu.matmul %3, %149, %cst_99 {dimension_numbers = #tpu.dot_dimension_numbers<[1], [0], [0], [1], [0, 0, 1, 1], [], []>} : vector<32x144xbf16>, vector<144x256xbf16>, vector<32x256xf32> -> vector<32x256xf32>
    %151 = arith.addf %150, %4 : vector<32x256xf32>
    %152 = vector.extract_strided_slice %151 {offsets = [0, 0], sizes = [8, 256], strides = [1, 1]} : vector<32x256xf32> to vector<8x256xf32>
    %153 = vector.extract_strided_slice %151 {offsets = [8, 0], sizes = [8, 256], strides = [1, 1]} : vector<32x256xf32> to vector<8x256xf32>
    %154 = vector.extract_strided_slice %151 {offsets = [16, 0], sizes = [8, 256], strides = [1, 1]} : vector<32x256xf32> to vector<8x256xf32>
    %155 = vector.extract_strided_slice %151 {offsets = [24, 0], sizes = [8, 256], strides = [1, 1]} : vector<32x256xf32> to vector<8x256xf32>
    %c0_100 = arith.constant 0 : index
    %c0_101 = arith.constant 0 : index
    %156 = vector.load %arg11[%c0_100, %c0_101] : memref<8x256xf32, #tpu.memory_space<vmem>>, vector<8x256xf32>
    %157 = arith.mulf %5, %156 : vector<8x256xf32>
    %158 = arith.addf %152, %157 : vector<8x256xf32>
    %159 = arith.negf %158 : vector<8x256xf32>
    %160 = math.exp %159 : vector<8x256xf32>
    %cst_102 = arith.constant 1.000000e+00 : f32
    %161 = vector.broadcast %cst_102 : f32 to vector<8x256xf32>
    %162 = arith.addf %161, %160 : vector<8x256xf32>
    %163 = arith.divf %161, %162 : vector<8x256xf32>
    %164 = arith.mulf %6, %156 : vector<8x256xf32>
    %165 = arith.addf %153, %164 : vector<8x256xf32>
    %166 = arith.negf %165 : vector<8x256xf32>
    %167 = math.exp %166 : vector<8x256xf32>
    %cst_103 = arith.constant 1.000000e+00 : f32
    %168 = vector.broadcast %cst_103 : f32 to vector<8x256xf32>
    %169 = arith.addf %168, %167 : vector<8x256xf32>
    %170 = arith.divf %168, %169 : vector<8x256xf32>
    %171 = arith.mulf %170, %156 : vector<8x256xf32>
    %172 = math.tanh %154 : vector<8x256xf32>
    %173 = arith.mulf %163, %172 : vector<8x256xf32>
    %174 = arith.addf %171, %173 : vector<8x256xf32>
    %175 = arith.mulf %7, %174 : vector<8x256xf32>
    %176 = arith.addf %155, %175 : vector<8x256xf32>
    %177 = arith.negf %176 : vector<8x256xf32>
    %178 = math.exp %177 : vector<8x256xf32>
    %cst_104 = arith.constant 1.000000e+00 : f32
    %179 = vector.broadcast %cst_104 : f32 to vector<8x256xf32>
    %180 = arith.addf %179, %178 : vector<8x256xf32>
    %181 = arith.divf %179, %180 : vector<8x256xf32>
    %182 = math.tanh %174 : vector<8x256xf32>
    %183 = arith.mulf %181, %182 : vector<8x256xf32>
    %c0_105 = arith.constant 0 : index
    %c0_106 = arith.constant 0 : index
    %184 = vector.load %arg11[%c0_105, %c0_106] : memref<8x256xf32, #tpu.memory_space<vmem>>, vector<8x256xf32>
    tpu.vector_store %arg11[%c0_105, %c0_106], %174 {strides = array<i32>} : memref<8x256xf32, #tpu.memory_space<vmem>>, vector<8x256xf32>,
    %185 = arith.truncf %183 : vector<8x256xf32> to vector<8x256xbf16>
    %c4_107 = arith.constant 4 : index
    %c0_108 = arith.constant 0 : index
    %186 = vector.load %arg10[%c4_107, %c0_108] : memref<12x256xbf16, #tpu.memory_space<vmem>>, vector<8x256xbf16>
    tpu.vector_store %arg10[%c4_107, %c0_108], %185 {strides = array<i32>} : memref<12x256xbf16, #tpu.memory_space<vmem>>, vector<8x256xbf16>,
    %c0_109 = arith.constant 0 : index
    %c1_110 = arith.constant 1 : index
    %c0_111 = arith.constant 0 : index
    %c0_112 = arith.constant 0 : index
    %187 = vector.load %arg9[%c0_109, %c1_110, %c0_111, %c0_112] : memref<1x4x8x256xf32, #tpu.memory_space<vmem>>, vector<1x1x8x256xf32>
    %188 = vector.shape_cast %187 : vector<1x1x8x256xf32> to vector<8x256xf32>
    %189 = vector.shape_cast %183 : vector<8x256xf32> to vector<1x1x8x256xf32>
    tpu.vector_store %arg9[%c0_109, %c1_110, %c0_111, %c0_112], %189 {strides = array<i32>} : memref<1x4x8x256xf32, #tpu.memory_space<vmem>>, vector<1x1x8x256xf32>,
    %c0_113 = arith.constant 0 : index
    %c2_114 = arith.constant 2 : index
    %c0_115 = arith.constant 0 : index
    %c0_116 = arith.constant 0 : index
    %190 = vector.load %arg2[%c0_113, %c2_114, %c0_115, %c0_116] : memref<1x4x4x256xbf16, #tpu.memory_space<vmem>>, vector<1x1x4x256xbf16>
    %191 = vector.shape_cast %190 : vector<1x1x4x256xbf16> to vector<4x256xbf16>
    %c0_117 = arith.constant 0 : index
    %c0_118 = arith.constant 0 : index
    %192 = vector.load %arg10[%c0_117, %c0_118] : memref<12x256xbf16, #tpu.memory_space<vmem>>, vector<4x256xbf16>
    tpu.vector_store %arg10[%c0_117, %c0_118], %191 {strides = array<i32>} : memref<12x256xbf16, #tpu.memory_space<vmem>>, vector<4x256xbf16>,
    %c0_119 = arith.constant 0 : index
    %c0_120 = arith.constant 0 : index
    %193 = vector.load %arg10[%c0_119, %c0_120] : memref<12x256xbf16, #tpu.memory_space<vmem>>, vector<12x256xbf16>
    %194 = tpu.concatenate %193, %193 in 1 : vector<12x256xbf16>, vector<12x256xbf16> -> vector<12x512xbf16>
    %195 = vector.extract_strided_slice %194 {offsets = [0, 239], sizes = [12, 256], strides = [1, 1]} : vector<12x512xbf16> to vector<12x256xbf16>
    %c0_121 = arith.constant 0 : index
    %c0_122 = arith.constant 0 : index
    %196 = vector.load %arg8[%c0_121, %c0_122] : memref<9x256xbf16, #tpu.memory_space<vmem>>, vector<1x256xbf16>
    %197 = vector.broadcast %196 : vector<1x256xbf16> to vector<12x256xbf16>
    %198 = arith.mulf %195, %197 : vector<12x256xbf16>
    %c0_123 = arith.constant 0 : index
    %c0_124 = arith.constant 0 : index
    %199 = vector.load %arg12[%c0_123, %c0_124] : memref<144x256xbf16, #tpu.memory_space<vmem>>, vector<12x256xbf16>
    tpu.vector_store %arg12[%c0_123, %c0_124], %198 {strides = array<i32>} : memref<144x256xbf16, #tpu.memory_space<vmem>>, vector<12x256xbf16>,
    %200 = vector.extract_strided_slice %194 {offsets = [0, 240], sizes = [12, 256], strides = [1, 1]} : vector<12x512xbf16> to vector<12x256xbf16>
    %c1_125 = arith.constant 1 : index
    %c0_126 = arith.constant 0 : index
    %201 = vector.load %arg8[%c1_125, %c0_126] : memref<9x256xbf16, #tpu.memory_space<vmem>>, vector<1x256xbf16>
    %202 = vector.broadcast %201 : vector<1x256xbf16> to vector<12x256xbf16>
    %203 = arith.mulf %200, %202 : vector<12x256xbf16>
    %c16_127 = arith.constant 16 : index
    %c0_128 = arith.constant 0 : index
    %204 = vector.load %arg12[%c16_127, %c0_128] : memref<144x256xbf16, #tpu.memory_space<vmem>>, vector<12x256xbf16>
    tpu.vector_store %arg12[%c16_127, %c0_128], %203 {strides = array<i32>} : memref<144x256xbf16, #tpu.memory_space<vmem>>, vector<12x256xbf16>,
    %205 = vector.extract_strided_slice %194 {offsets = [0, 241], sizes = [12, 256], strides = [1, 1]} : vector<12x512xbf16> to vector<12x256xbf16>
    %c2_129 = arith.constant 2 : index
    %c0_130 = arith.constant 0 : index
    %206 = vector.load %arg8[%c2_129, %c0_130] : memref<9x256xbf16, #tpu.memory_space<vmem>>, vector<1x256xbf16>
    %207 = vector.broadcast %206 : vector<1x256xbf16> to vector<12x256xbf16>
    %208 = arith.mulf %205, %207 : vector<12x256xbf16>
    %c32_131 = arith.constant 32 : index
    %c0_132 = arith.constant 0 : index
    %209 = vector.load %arg12[%c32_131, %c0_132] : memref<144x256xbf16, #tpu.memory_space<vmem>>, vector<12x256xbf16>
    tpu.vector_store %arg12[%c32_131, %c0_132], %208 {strides = array<i32>} : memref<144x256xbf16, #tpu.memory_space<vmem>>, vector<12x256xbf16>,
    %210 = vector.extract_strided_slice %194 {offsets = [0, 255], sizes = [12, 256], strides = [1, 1]} : vector<12x512xbf16> to vector<12x256xbf16>
    %c3_133 = arith.constant 3 : index
    %c0_134 = arith.constant 0 : index
    %211 = vector.load %arg8[%c3_133, %c0_134] : memref<9x256xbf16, #tpu.memory_space<vmem>>, vector<1x256xbf16>
    %212 = vector.broadcast %211 : vector<1x256xbf16> to vector<12x256xbf16>
    %213 = arith.mulf %210, %212 : vector<12x256xbf16>
    %c48_135 = arith.constant 48 : index
    %c0_136 = arith.constant 0 : index
    %214 = vector.load %arg12[%c48_135, %c0_136] : memref<144x256xbf16, #tpu.memory_space<vmem>>, vector<12x256xbf16>
    tpu.vector_store %arg12[%c48_135, %c0_136], %213 {strides = array<i32>} : memref<144x256xbf16, #tpu.memory_space<vmem>>, vector<12x256xbf16>,
    %215 = vector.extract_strided_slice %194 {offsets = [0, 0], sizes = [12, 256], strides = [1, 1]} : vector<12x512xbf16> to vector<12x256xbf16>
    %c4_137 = arith.constant 4 : index
    %c0_138 = arith.constant 0 : index
    %216 = vector.load %arg8[%c4_137, %c0_138] : memref<9x256xbf16, #tpu.memory_space<vmem>>, vector<1x256xbf16>
    %217 = vector.broadcast %216 : vector<1x256xbf16> to vector<12x256xbf16>
    %218 = arith.mulf %215, %217 : vector<12x256xbf16>
    %c64_139 = arith.constant 64 : index
    %c0_140 = arith.constant 0 : index
    %219 = vector.load %arg12[%c64_139, %c0_140] : memref<144x256xbf16, #tpu.memory_space<vmem>>, vector<12x256xbf16>
    tpu.vector_store %arg12[%c64_139, %c0_140], %218 {strides = array<i32>} : memref<144x256xbf16, #tpu.memory_space<vmem>>, vector<12x256xbf16>,
    %220 = vector.extract_strided_slice %194 {offsets = [0, 1], sizes = [12, 256], strides = [1, 1]} : vector<12x512xbf16> to vector<12x256xbf16>
    %c5_141 = arith.constant 5 : index
    %c0_142 = arith.constant 0 : index
    %221 = vector.load %arg8[%c5_141, %c0_142] : memref<9x256xbf16, #tpu.memory_space<vmem>>, vector<1x256xbf16>
    %222 = vector.broadcast %221 : vector<1x256xbf16> to vector<12x256xbf16>
    %223 = arith.mulf %220, %222 : vector<12x256xbf16>
    %c80_143 = arith.constant 80 : index
    %c0_144 = arith.constant 0 : index
    %224 = vector.load %arg12[%c80_143, %c0_144] : memref<144x256xbf16, #tpu.memory_space<vmem>>, vector<12x256xbf16>
    tpu.vector_store %arg12[%c80_143, %c0_144], %223 {strides = array<i32>} : memref<144x256xbf16, #tpu.memory_space<vmem>>, vector<12x256xbf16>,
    %225 = vector.extract_strided_slice %194 {offsets = [0, 15], sizes = [12, 256], strides = [1, 1]} : vector<12x512xbf16> to vector<12x256xbf16>
    %c6_145 = arith.constant 6 : index
    %c0_146 = arith.constant 0 : index
    %226 = vector.load %arg8[%c6_145, %c0_146] : memref<9x256xbf16, #tpu.memory_space<vmem>>, vector<1x256xbf16>
    %227 = vector.broadcast %226 : vector<1x256xbf16> to vector<12x256xbf16>
    %228 = arith.mulf %225, %227 : vector<12x256xbf16>
    %c96_147 = arith.constant 96 : index
    %c0_148 = arith.constant 0 : index
    %229 = vector.load %arg12[%c96_147, %c0_148] : memref<144x256xbf16, #tpu.memory_space<vmem>>, vector<12x256xbf16>
    tpu.vector_store %arg12[%c96_147, %c0_148], %228 {strides = array<i32>} : memref<144x256xbf16, #tpu.memory_space<vmem>>, vector<12x256xbf16>,
    %230 = vector.extract_strided_slice %194 {offsets = [0, 16], sizes = [12, 256], strides = [1, 1]} : vector<12x512xbf16> to vector<12x256xbf16>
    %c7_149 = arith.constant 7 : index
    %c0_150 = arith.constant 0 : index
    %231 = vector.load %arg8[%c7_149, %c0_150] : memref<9x256xbf16, #tpu.memory_space<vmem>>, vector<1x256xbf16>
    %232 = vector.broadcast %231 : vector<1x256xbf16> to vector<12x256xbf16>
    %233 = arith.mulf %230, %232 : vector<12x256xbf16>
    %c112_151 = arith.constant 112 : index
    %c0_152 = arith.constant 0 : index
    %234 = vector.load %arg12[%c112_151, %c0_152] : memref<144x256xbf16, #tpu.memory_space<vmem>>, vector<12x256xbf16>
    tpu.vector_store %arg12[%c112_151, %c0_152], %233 {strides = array<i32>} : memref<144x256xbf16, #tpu.memory_space<vmem>>, vector<12x256xbf16>,
    %235 = vector.extract_strided_slice %194 {offsets = [0, 17], sizes = [12, 256], strides = [1, 1]} : vector<12x512xbf16> to vector<12x256xbf16>
    %c8_153 = arith.constant 8 : index
    %c0_154 = arith.constant 0 : index
    %236 = vector.load %arg8[%c8_153, %c0_154] : memref<9x256xbf16, #tpu.memory_space<vmem>>, vector<1x256xbf16>
    %237 = vector.broadcast %236 : vector<1x256xbf16> to vector<12x256xbf16>
    %238 = arith.mulf %235, %237 : vector<12x256xbf16>
    %c128_155 = arith.constant 128 : index
    %c0_156 = arith.constant 0 : index
    %239 = vector.load %arg12[%c128_155, %c0_156] : memref<144x256xbf16, #tpu.memory_space<vmem>>, vector<12x256xbf16>
    tpu.vector_store %arg12[%c128_155, %c0_156], %238 {strides = array<i32>} : memref<144x256xbf16, #tpu.memory_space<vmem>>, vector<12x256xbf16>,
    %c0_157 = arith.constant 0 : index
    %c0_158 = arith.constant 0 : index
    %240 = vector.load %arg12[%c0_157, %c0_158] : memref<144x256xbf16, #tpu.memory_space<vmem>>, vector<144x256xbf16>
    %cst_159 = arith.constant dense<0.000000e+00> : vector<32x256xf32>
    %241 = tpu.matmul %3, %240, %cst_159 {dimension_numbers = #tpu.dot_dimension_numbers<[1], [0], [0], [1], [0, 0, 1, 1], [], []>} : vector<32x144xbf16>, vector<144x256xbf16>, vector<32x256xf32> -> vector<32x256xf32>
    %242 = arith.addf %241, %4 : vector<32x256xf32>
    %243 = vector.extract_strided_slice %242 {offsets = [0, 0], sizes = [8, 256], strides = [1, 1]} : vector<32x256xf32> to vector<8x256xf32>
    %244 = vector.extract_strided_slice %242 {offsets = [8, 0], sizes = [8, 256], strides = [1, 1]} : vector<32x256xf32> to vector<8x256xf32>
    %245 = vector.extract_strided_slice %242 {offsets = [16, 0], sizes = [8, 256], strides = [1, 1]} : vector<32x256xf32> to vector<8x256xf32>
    %246 = vector.extract_strided_slice %242 {offsets = [24, 0], sizes = [8, 256], strides = [1, 1]} : vector<32x256xf32> to vector<8x256xf32>
    %c0_160 = arith.constant 0 : index
    %c0_161 = arith.constant 0 : index
    %247 = vector.load %arg11[%c0_160, %c0_161] : memref<8x256xf32, #tpu.memory_space<vmem>>, vector<8x256xf32>
    %248 = arith.mulf %5, %247 : vector<8x256xf32>
    %249 = arith.addf %243, %248 : vector<8x256xf32>
    %250 = arith.negf %249 : vector<8x256xf32>
    %251 = math.exp %250 : vector<8x256xf32>
    %cst_162 = arith.constant 1.000000e+00 : f32
    %252 = vector.broadcast %cst_162 : f32 to vector<8x256xf32>
    %253 = arith.addf %252, %251 : vector<8x256xf32>
    %254 = arith.divf %252, %253 : vector<8x256xf32>
    %255 = arith.mulf %6, %247 : vector<8x256xf32>
    %256 = arith.addf %244, %255 : vector<8x256xf32>
    %257 = arith.negf %256 : vector<8x256xf32>
    %258 = math.exp %257 : vector<8x256xf32>
    %cst_163 = arith.constant 1.000000e+00 : f32
    %259 = vector.broadcast %cst_163 : f32 to vector<8x256xf32>
    %260 = arith.addf %259, %258 : vector<8x256xf32>
    %261 = arith.divf %259, %260 : vector<8x256xf32>
    %262 = arith.mulf %261, %247 : vector<8x256xf32>
    %263 = math.tanh %245 : vector<8x256xf32>
    %264 = arith.mulf %254, %263 : vector<8x256xf32>
    %265 = arith.addf %262, %264 : vector<8x256xf32>
    %266 = arith.mulf %7, %265 : vector<8x256xf32>
    %267 = arith.addf %246, %266 : vector<8x256xf32>
    %268 = arith.negf %267 : vector<8x256xf32>
    %269 = math.exp %268 : vector<8x256xf32>
    %cst_164 = arith.constant 1.000000e+00 : f32
    %270 = vector.broadcast %cst_164 : f32 to vector<8x256xf32>
    %271 = arith.addf %270, %269 : vector<8x256xf32>
    %272 = arith.divf %270, %271 : vector<8x256xf32>
    %273 = math.tanh %265 : vector<8x256xf32>
    %274 = arith.mulf %272, %273 : vector<8x256xf32>
    %c0_165 = arith.constant 0 : index
    %c0_166 = arith.constant 0 : index
    %275 = vector.load %arg11[%c0_165, %c0_166] : memref<8x256xf32, #tpu.memory_space<vmem>>, vector<8x256xf32>
    tpu.vector_store %arg11[%c0_165, %c0_166], %265 {strides = array<i32>} : memref<8x256xf32, #tpu.memory_space<vmem>>, vector<8x256xf32>,
    %276 = arith.truncf %274 : vector<8x256xf32> to vector<8x256xbf16>
    %c4_167 = arith.constant 4 : index
    %c0_168 = arith.constant 0 : index
    %277 = vector.load %arg10[%c4_167, %c0_168] : memref<12x256xbf16, #tpu.memory_space<vmem>>, vector<8x256xbf16>
    tpu.vector_store %arg10[%c4_167, %c0_168], %276 {strides = array<i32>} : memref<12x256xbf16, #tpu.memory_space<vmem>>, vector<8x256xbf16>,
    %c0_169 = arith.constant 0 : index
    %c2_170 = arith.constant 2 : index
    %c0_171 = arith.constant 0 : index
    %c0_172 = arith.constant 0 : index
    %278 = vector.load %arg9[%c0_169, %c2_170, %c0_171, %c0_172] : memref<1x4x8x256xf32, #tpu.memory_space<vmem>>, vector<1x1x8x256xf32>
    %279 = vector.shape_cast %278 : vector<1x1x8x256xf32> to vector<8x256xf32>
    %280 = vector.shape_cast %274 : vector<8x256xf32> to vector<1x1x8x256xf32>
    tpu.vector_store %arg9[%c0_169, %c2_170, %c0_171, %c0_172], %280 {strides = array<i32>} : memref<1x4x8x256xf32, #tpu.memory_space<vmem>>, vector<1x1x8x256xf32>,
    %c0_173 = arith.constant 0 : index
    %c3_174 = arith.constant 3 : index
    %c0_175 = arith.constant 0 : index
    %c0_176 = arith.constant 0 : index
    %281 = vector.load %arg2[%c0_173, %c3_174, %c0_175, %c0_176] : memref<1x4x4x256xbf16, #tpu.memory_space<vmem>>, vector<1x1x4x256xbf16>
    %282 = vector.shape_cast %281 : vector<1x1x4x256xbf16> to vector<4x256xbf16>
    %c0_177 = arith.constant 0 : index
    %c0_178 = arith.constant 0 : index
    %283 = vector.load %arg10[%c0_177, %c0_178] : memref<12x256xbf16, #tpu.memory_space<vmem>>, vector<4x256xbf16>
    tpu.vector_store %arg10[%c0_177, %c0_178], %282 {strides = array<i32>} : memref<12x256xbf16, #tpu.memory_space<vmem>>, vector<4x256xbf16>,
    %c0_179 = arith.constant 0 : index
    %c0_180 = arith.constant 0 : index
    %284 = vector.load %arg10[%c0_179, %c0_180] : memref<12x256xbf16, #tpu.memory_space<vmem>>, vector<12x256xbf16>
    %285 = tpu.concatenate %284, %284 in 1 : vector<12x256xbf16>, vector<12x256xbf16> -> vector<12x512xbf16>
    %286 = vector.extract_strided_slice %285 {offsets = [0, 239], sizes = [12, 256], strides = [1, 1]} : vector<12x512xbf16> to vector<12x256xbf16>
    %c0_181 = arith.constant 0 : index
    %c0_182 = arith.constant 0 : index
    %287 = vector.load %arg8[%c0_181, %c0_182] : memref<9x256xbf16, #tpu.memory_space<vmem>>, vector<1x256xbf16>
    %288 = vector.broadcast %287 : vector<1x256xbf16> to vector<12x256xbf16>
    %289 = arith.mulf %286, %288 : vector<12x256xbf16>
    %c0_183 = arith.constant 0 : index
    %c0_184 = arith.constant 0 : index
    %290 = vector.load %arg12[%c0_183, %c0_184] : memref<144x256xbf16, #tpu.memory_space<vmem>>, vector<12x256xbf16>
    tpu.vector_store %arg12[%c0_183, %c0_184], %289 {strides = array<i32>} : memref<144x256xbf16, #tpu.memory_space<vmem>>, vector<12x256xbf16>,
    %291 = vector.extract_strided_slice %285 {offsets = [0, 240], sizes = [12, 256], strides = [1, 1]} : vector<12x512xbf16> to vector<12x256xbf16>
    %c1_185 = arith.constant 1 : index
    %c0_186 = arith.constant 0 : index
    %292 = vector.load %arg8[%c1_185, %c0_186] : memref<9x256xbf16, #tpu.memory_space<vmem>>, vector<1x256xbf16>
    %293 = vector.broadcast %292 : vector<1x256xbf16> to vector<12x256xbf16>
    %294 = arith.mulf %291, %293 : vector<12x256xbf16>
    %c16_187 = arith.constant 16 : index
    %c0_188 = arith.constant 0 : index
    %295 = vector.load %arg12[%c16_187, %c0_188] : memref<144x256xbf16, #tpu.memory_space<vmem>>, vector<12x256xbf16>
    tpu.vector_store %arg12[%c16_187, %c0_188], %294 {strides = array<i32>} : memref<144x256xbf16, #tpu.memory_space<vmem>>, vector<12x256xbf16>,
    %296 = vector.extract_strided_slice %285 {offsets = [0, 241], sizes = [12, 256], strides = [1, 1]} : vector<12x512xbf16> to vector<12x256xbf16>
    %c2_189 = arith.constant 2 : index
    %c0_190 = arith.constant 0 : index
    %297 = vector.load %arg8[%c2_189, %c0_190] : memref<9x256xbf16, #tpu.memory_space<vmem>>, vector<1x256xbf16>
    %298 = vector.broadcast %297 : vector<1x256xbf16> to vector<12x256xbf16>
    %299 = arith.mulf %296, %298 : vector<12x256xbf16>
    %c32_191 = arith.constant 32 : index
    %c0_192 = arith.constant 0 : index
    %300 = vector.load %arg12[%c32_191, %c0_192] : memref<144x256xbf16, #tpu.memory_space<vmem>>, vector<12x256xbf16>
    tpu.vector_store %arg12[%c32_191, %c0_192], %299 {strides = array<i32>} : memref<144x256xbf16, #tpu.memory_space<vmem>>, vector<12x256xbf16>,
    %301 = vector.extract_strided_slice %285 {offsets = [0, 255], sizes = [12, 256], strides = [1, 1]} : vector<12x512xbf16> to vector<12x256xbf16>
    %c3_193 = arith.constant 3 : index
    %c0_194 = arith.constant 0 : index
    %302 = vector.load %arg8[%c3_193, %c0_194] : memref<9x256xbf16, #tpu.memory_space<vmem>>, vector<1x256xbf16>
    %303 = vector.broadcast %302 : vector<1x256xbf16> to vector<12x256xbf16>
    %304 = arith.mulf %301, %303 : vector<12x256xbf16>
    %c48_195 = arith.constant 48 : index
    %c0_196 = arith.constant 0 : index
    %305 = vector.load %arg12[%c48_195, %c0_196] : memref<144x256xbf16, #tpu.memory_space<vmem>>, vector<12x256xbf16>
    tpu.vector_store %arg12[%c48_195, %c0_196], %304 {strides = array<i32>} : memref<144x256xbf16, #tpu.memory_space<vmem>>, vector<12x256xbf16>,
    %306 = vector.extract_strided_slice %285 {offsets = [0, 0], sizes = [12, 256], strides = [1, 1]} : vector<12x512xbf16> to vector<12x256xbf16>
    %c4_197 = arith.constant 4 : index
    %c0_198 = arith.constant 0 : index
    %307 = vector.load %arg8[%c4_197, %c0_198] : memref<9x256xbf16, #tpu.memory_space<vmem>>, vector<1x256xbf16>
    %308 = vector.broadcast %307 : vector<1x256xbf16> to vector<12x256xbf16>
    %309 = arith.mulf %306, %308 : vector<12x256xbf16>
    %c64_199 = arith.constant 64 : index
    %c0_200 = arith.constant 0 : index
    %310 = vector.load %arg12[%c64_199, %c0_200] : memref<144x256xbf16, #tpu.memory_space<vmem>>, vector<12x256xbf16>
    tpu.vector_store %arg12[%c64_199, %c0_200], %309 {strides = array<i32>} : memref<144x256xbf16, #tpu.memory_space<vmem>>, vector<12x256xbf16>,
    %311 = vector.extract_strided_slice %285 {offsets = [0, 1], sizes = [12, 256], strides = [1, 1]} : vector<12x512xbf16> to vector<12x256xbf16>
    %c5_201 = arith.constant 5 : index
    %c0_202 = arith.constant 0 : index
    %312 = vector.load %arg8[%c5_201, %c0_202] : memref<9x256xbf16, #tpu.memory_space<vmem>>, vector<1x256xbf16>
    %313 = vector.broadcast %312 : vector<1x256xbf16> to vector<12x256xbf16>
    %314 = arith.mulf %311, %313 : vector<12x256xbf16>
    %c80_203 = arith.constant 80 : index
    %c0_204 = arith.constant 0 : index
    %315 = vector.load %arg12[%c80_203, %c0_204] : memref<144x256xbf16, #tpu.memory_space<vmem>>, vector<12x256xbf16>
    tpu.vector_store %arg12[%c80_203, %c0_204], %314 {strides = array<i32>} : memref<144x256xbf16, #tpu.memory_space<vmem>>, vector<12x256xbf16>,
    %316 = vector.extract_strided_slice %285 {offsets = [0, 15], sizes = [12, 256], strides = [1, 1]} : vector<12x512xbf16> to vector<12x256xbf16>
    %c6_205 = arith.constant 6 : index
    %c0_206 = arith.constant 0 : index
    %317 = vector.load %arg8[%c6_205, %c0_206] : memref<9x256xbf16, #tpu.memory_space<vmem>>, vector<1x256xbf16>
    %318 = vector.broadcast %317 : vector<1x256xbf16> to vector<12x256xbf16>
    %319 = arith.mulf %316, %318 : vector<12x256xbf16>
    %c96_207 = arith.constant 96 : index
    %c0_208 = arith.constant 0 : index
    %320 = vector.load %arg12[%c96_207, %c0_208] : memref<144x256xbf16, #tpu.memory_space<vmem>>, vector<12x256xbf16>
    tpu.vector_store %arg12[%c96_207, %c0_208], %319 {strides = array<i32>} : memref<144x256xbf16, #tpu.memory_space<vmem>>, vector<12x256xbf16>,
    %321 = vector.extract_strided_slice %285 {offsets = [0, 16], sizes = [12, 256], strides = [1, 1]} : vector<12x512xbf16> to vector<12x256xbf16>
    %c7_209 = arith.constant 7 : index
    %c0_210 = arith.constant 0 : index
    %322 = vector.load %arg8[%c7_209, %c0_210] : memref<9x256xbf16, #tpu.memory_space<vmem>>, vector<1x256xbf16>
    %323 = vector.broadcast %322 : vector<1x256xbf16> to vector<12x256xbf16>
    %324 = arith.mulf %321, %323 : vector<12x256xbf16>
    %c112_211 = arith.constant 112 : index
    %c0_212 = arith.constant 0 : index
    %325 = vector.load %arg12[%c112_211, %c0_212] : memref<144x256xbf16, #tpu.memory_space<vmem>>, vector<12x256xbf16>
    tpu.vector_store %arg12[%c112_211, %c0_212], %324 {strides = array<i32>} : memref<144x256xbf16, #tpu.memory_space<vmem>>, vector<12x256xbf16>,
    %326 = vector.extract_strided_slice %285 {offsets = [0, 17], sizes = [12, 256], strides = [1, 1]} : vector<12x512xbf16> to vector<12x256xbf16>
    %c8_213 = arith.constant 8 : index
    %c0_214 = arith.constant 0 : index
    %327 = vector.load %arg8[%c8_213, %c0_214] : memref<9x256xbf16, #tpu.memory_space<vmem>>, vector<1x256xbf16>
    %328 = vector.broadcast %327 : vector<1x256xbf16> to vector<12x256xbf16>
    %329 = arith.mulf %326, %328 : vector<12x256xbf16>
    %c128_215 = arith.constant 128 : index
    %c0_216 = arith.constant 0 : index
    %330 = vector.load %arg12[%c128_215, %c0_216] : memref<144x256xbf16, #tpu.memory_space<vmem>>, vector<12x256xbf16>
    tpu.vector_store %arg12[%c128_215, %c0_216], %329 {strides = array<i32>} : memref<144x256xbf16, #tpu.memory_space<vmem>>, vector<12x256xbf16>,
    %c0_217 = arith.constant 0 : index
    %c0_218 = arith.constant 0 : index
    %331 = vector.load %arg12[%c0_217, %c0_218] : memref<144x256xbf16, #tpu.memory_space<vmem>>, vector<144x256xbf16>
    %cst_219 = arith.constant dense<0.000000e+00> : vector<32x256xf32>
    %332 = tpu.matmul %3, %331, %cst_219 {dimension_numbers = #tpu.dot_dimension_numbers<[1], [0], [0], [1], [0, 0, 1, 1], [], []>} : vector<32x144xbf16>, vector<144x256xbf16>, vector<32x256xf32> -> vector<32x256xf32>
    %333 = arith.addf %332, %4 : vector<32x256xf32>
    %334 = vector.extract_strided_slice %333 {offsets = [0, 0], sizes = [8, 256], strides = [1, 1]} : vector<32x256xf32> to vector<8x256xf32>
    %335 = vector.extract_strided_slice %333 {offsets = [8, 0], sizes = [8, 256], strides = [1, 1]} : vector<32x256xf32> to vector<8x256xf32>
    %336 = vector.extract_strided_slice %333 {offsets = [16, 0], sizes = [8, 256], strides = [1, 1]} : vector<32x256xf32> to vector<8x256xf32>
    %337 = vector.extract_strided_slice %333 {offsets = [24, 0], sizes = [8, 256], strides = [1, 1]} : vector<32x256xf32> to vector<8x256xf32>
    %c0_220 = arith.constant 0 : index
    %c0_221 = arith.constant 0 : index
    %338 = vector.load %arg11[%c0_220, %c0_221] : memref<8x256xf32, #tpu.memory_space<vmem>>, vector<8x256xf32>
    %339 = arith.mulf %5, %338 : vector<8x256xf32>
    %340 = arith.addf %334, %339 : vector<8x256xf32>
    %341 = arith.negf %340 : vector<8x256xf32>
    %342 = math.exp %341 : vector<8x256xf32>
    %cst_222 = arith.constant 1.000000e+00 : f32
    %343 = vector.broadcast %cst_222 : f32 to vector<8x256xf32>
    %344 = arith.addf %343, %342 : vector<8x256xf32>
    %345 = arith.divf %343, %344 : vector<8x256xf32>
    %346 = arith.mulf %6, %338 : vector<8x256xf32>
    %347 = arith.addf %335, %346 : vector<8x256xf32>
    %348 = arith.negf %347 : vector<8x256xf32>
    %349 = math.exp %348 : vector<8x256xf32>
    %cst_223 = arith.constant 1.000000e+00 : f32
    %350 = vector.broadcast %cst_223 : f32 to vector<8x256xf32>
    %351 = arith.addf %350, %349 : vector<8x256xf32>
    %352 = arith.divf %350, %351 : vector<8x256xf32>
    %353 = arith.mulf %352, %338 : vector<8x256xf32>
    %354 = math.tanh %336 : vector<8x256xf32>
    %355 = arith.mulf %345, %354 : vector<8x256xf32>
    %356 = arith.addf %353, %355 : vector<8x256xf32>
    %357 = arith.mulf %7, %356 : vector<8x256xf32>
    %358 = arith.addf %337, %357 : vector<8x256xf32>
    %359 = arith.negf %358 : vector<8x256xf32>
    %360 = math.exp %359 : vector<8x256xf32>
    %cst_224 = arith.constant 1.000000e+00 : f32
    %361 = vector.broadcast %cst_224 : f32 to vector<8x256xf32>
    %362 = arith.addf %361, %360 : vector<8x256xf32>
    %363 = arith.divf %361, %362 : vector<8x256xf32>
    %364 = math.tanh %356 : vector<8x256xf32>
    %365 = arith.mulf %363, %364 : vector<8x256xf32>
    %c0_225 = arith.constant 0 : index
    %c0_226 = arith.constant 0 : index
    %366 = vector.load %arg11[%c0_225, %c0_226] : memref<8x256xf32, #tpu.memory_space<vmem>>, vector<8x256xf32>
    tpu.vector_store %arg11[%c0_225, %c0_226], %356 {strides = array<i32>} : memref<8x256xf32, #tpu.memory_space<vmem>>, vector<8x256xf32>,
    %367 = arith.truncf %365 : vector<8x256xf32> to vector<8x256xbf16>
    %c4_227 = arith.constant 4 : index
    %c0_228 = arith.constant 0 : index
    %368 = vector.load %arg10[%c4_227, %c0_228] : memref<12x256xbf16, #tpu.memory_space<vmem>>, vector<8x256xbf16>
    tpu.vector_store %arg10[%c4_227, %c0_228], %367 {strides = array<i32>} : memref<12x256xbf16, #tpu.memory_space<vmem>>, vector<8x256xbf16>,
    %c0_229 = arith.constant 0 : index
    %c3_230 = arith.constant 3 : index
    %c0_231 = arith.constant 0 : index
    %c0_232 = arith.constant 0 : index
    %369 = vector.load %arg9[%c0_229, %c3_230, %c0_231, %c0_232] : memref<1x4x8x256xf32, #tpu.memory_space<vmem>>, vector<1x1x8x256xf32>
    %370 = vector.shape_cast %369 : vector<1x1x8x256xf32> to vector<8x256xf32>
    %371 = vector.shape_cast %365 : vector<8x256xf32> to vector<1x1x8x256xf32>
    tpu.vector_store %arg9[%c0_229, %c3_230, %c0_231, %c0_232], %371 {strides = array<i32>} : memref<1x4x8x256xf32, #tpu.memory_space<vmem>>, vector<1x1x8x256xf32>,
    return
  }
  func.func @transform_0(%arg0: i32, %arg1: i32) -> (i32, i32, i32, i32) {
    %c0_i32 = arith.constant 0 : i32
    %c0_i32_0 = arith.constant 0 : i32
    %c0_i32_1 = arith.constant 0 : i32
    return %arg0, %arg1, %c0_i32, %c0_i32_0 : i32, i32, i32, i32
  }
  func.func @transform_1(%arg0: i32, %arg1: i32) -> (i32, i32) {
    %c0_i32 = arith.constant 0 : i32
    %c0_i32_0 = arith.constant 0 : i32
    %c0_i32_1 = arith.constant 0 : i32
    return %c0_i32, %c0_i32_0 : i32, i32
  }
  func.func @transform_2(%arg0: i32, %arg1: i32) -> (i32, i32) {
    %c0_i32 = arith.constant 0 : i32
    %c0_i32_0 = arith.constant 0 : i32
    %c0_i32_1 = arith.constant 0 : i32
    return %c0_i32, %c0_i32_0 : i32, i32
  }
  func.func @transform_3(%arg0: i32, %arg1: i32) -> (i32, i32) {
    %c0_i32 = arith.constant 0 : i32
    %c0_i32_0 = arith.constant 0 : i32
    %c0_i32_1 = arith.constant 0 : i32
    return %c0_i32, %c0_i32_0 : i32, i32
  }
  func.func @transform_4(%arg0: i32, %arg1: i32) -> (i32, i32) {
    %c0_i32 = arith.constant 0 : i32
    %c0_i32_0 = arith.constant 0 : i32
    %c0_i32_1 = arith.constant 0 : i32
    return %c0_i32, %c0_i32_0 : i32, i32
  }
  func.func @transform_5(%arg0: i32, %arg1: i32) -> (i32, i32) {
    %c0_i32 = arith.constant 0 : i32
    %c0_i32_0 = arith.constant 0 : i32
    %c0_i32_1 = arith.constant 0 : i32
    return %c0_i32, %c0_i32_0 : i32, i32
  }
  func.func @transform_6(%arg0: i32, %arg1: i32) -> (i32, i32) {
    %c0_i32 = arith.constant 0 : i32
    %c0_i32_0 = arith.constant 0 : i32
    %c0_i32_1 = arith.constant 0 : i32
    return %c0_i32, %c0_i32_0 : i32, i32
  }
  func.func @transform_7(%arg0: i32, %arg1: i32) -> (i32, i32, i32, i32) {
    %c0_i32 = arith.constant 0 : i32
    %c0_i32_0 = arith.constant 0 : i32
    %c0_i32_1 = arith.constant 0 : i32
    return %arg0, %arg1, %c0_i32, %c0_i32_0 : i32, i32, i32, i32
  }
}

</mosaic_0001>

<bundles_post_ra>
// kernel: tpu_custom_call.1
= control target key start
LH: loop header
LB: loop body
LE: loop exit
PB: predicated region body
PF: predicated region fallthrough
CT: control target
= control target key end

     0   :  { %s4918_s0 = inlined_call_operand.hbm [shape: bf16[2,8,4,256], index: 0, kind: input, shape index: {}]   ;;  %s4919_s1 = inlined_call_operand.hbm [shape: bf16[32,144], index: 1, kind: input, shape index: {}]   ;;  %s4920_s2 = inlined_call_operand.hbm [shape: f32[32,256], index: 2, kind: input, shape index: {}]   ;;  %s4921_s3 = inlined_call_operand.hbm [shape: f32[8,256], index: 3, kind: input, shape index: {}]   ;;  %s4922_s4 = inlined_call_operand.hbm [shape: f32[8,256], index: 4, kind: input, shape index: {}]   ;;  %s4923_s5 = inlined_call_operand.vmem [shape: f32[8,256], index: 5, kind: input, shape index: {}]   ;;  %s4924_s6 = inlined_call_operand.hbm [shape: bf16[9,256], index: 6, kind: input, shape index: {}]   ;;  %s4925_s7 = inlined_call_operand.hbm [shape: f32[2,8,8,256], index: 7, kind: output, shape index: {}]  }
   0x1   :  { %4935 = sst [smem:[#allocation23_spill]] %s4919_s1 }
   0x2   :  { %4936 = sst [smem:[#allocation24_spill]] %s4920_s2 }
   0x3   :  { %4937 = sst [smem:[#allocation25_spill]] %s4921_s3 }
   0x4   :  { %4938 = sst [smem:[#allocation26_spill]] %s4922_s4 }
   0x5   :  { %4939 = sst [smem:[#allocation27_spill]] %s4923_s5 }
   0x6   :  { %4940 = sst [smem:[#allocation28_spill]] %s4925_s7 }
   0x7   :  { %12 = vsyncpa [#allocation6], 0 }
   0x8   :  { %14 = vsyncpa [#allocation6 + $0x1], 0 }
   0x9   :  { %15 = vsyncpa [#allocation9], 0 }
   0xa   :  { %16 = vsyncpa [#allocation12], 0 }
   0xb   :  { %17 = vsyncpa [#allocation15], 0 }
   0xc   :  { %18 = vsyncpa [#allocation7], 0 }
   0xd   :  { %20 = vsyncpa [#allocation7 + $0x1], 0  ;;  %s3879_s24 = smov 0   ;;  %s3881_s25 = smov 0  }
   0xe   :  { %s3883_s26 = smov 0   ;;  %s3885_s27 = smov 0  }
   0xf   :  { %s3887_s28 = smov 0   ;;  %s3889_s29 = smov 0  }
  0x10   :  { %s3891_s30 = smov 0   ;;  %s3893_s8 = smov 0  }
  0x11 LB: > { %4941 = sst [smem:[#allocation22_spill]] %s3801_s28  ;;  %s4926_s9 = sadd.s32 4294967295, %s3813_s8   ;;  %s3813_s8 = sphi %s3893_s8, %s26_s8   ;;  %s3809_s30 = sphi %s3891_s30, %s4973_s30   ;;  %s3805_s29 = sphi %s3889_s29, %s4972_s29   ;;  %s3801_s28 = sphi %s3887_s28, %s4971_s28   ;;  %s3797_s27 = sphi %s3885_s27, %s4970_s27   ;;  %s3793_s26 = sphi %s3883_s26, %s4969_s26   ;;  %s3789_s25 = sphi %s3881_s25, %s4968_s25   ;;  %s3785_s24 = sphi %s3879_s24, %s4967_s24  }
  0x12   : > { %p2984_p0 = scmp.ge.s32.totalorder %s3813_s8, 1  ;;  %p3923_p1 = scmp.eq.s32.totalorder %s4926_s9, 0 }
  0x13   : > { %p225_p2 = scmp.lt.s32.totalorder %s3813_s8, 5  ;;  %s3815_s12 = smov [#allocation8]  }
  0x14   : > { %s4942_s10 = scalar_select %p3923_p1, 1, 0 }
  0x15   : > { %p3928_p3 = pnand %p2984_p0, %p225_p2  ;;  %s237_s13 = sshll.u32 %s3815_s12, 4  ;;  %s3932_s13 = int_to_ptr.vmem [resolvable:$true] %s237_s13 }
  0x16   : > { %s3816_s15 = smov [#allocation11]   ;;  %s3817_s17 = smov [#allocation10]  }
  0x17   : > { %s4943_s11 = scalar_select %p3928_p3, 1, 0 }
  0x18   : > { %p3175_p4 = pneg %p3928_p3  ;;  %s264_s16 = sshll.u32 %s3816_s15, 4  ;;  %s3942_s16 = int_to_ptr.vmem [resolvable:$true] %s264_s16 }
  0x19   : > { %s3944_s18 = sshll.u32 %s3817_s17, 4  ;;  %s4945_s1 = sld [smem:[#allocation23_spill]]  ;;  %s251_s18 = int_to_ptr.vmem [resolvable:$true] %s3944_s18 }
  0x1a   : > { %p3938_p5 = pnand %p3175_p4, %p3923_p1 }
  0x1c   : > { %p3954_p7 = pneg %p3938_p5 }
  0x1f   : > { %s3533_s21 = scalar_lea.hbm %s4945_s1, 512 }
  0x20   : > { %p3534_p6 = scmp.ne.s32.totalorder %s4945_s1, %s3533_s21  ;;  %p3540_p10 = scmp.lt.u32.totalorder %s3533_s21, %s4945_s1 }
  0x22   : > { %p3536_p8 = pnand %p3954_p7, %p3534_p6 }
  0x24   : > { %p3537_p9 = pneg %p3536_p8 }
  0x26   : > { %p3542_p11 = pnand %p3540_p10, %p3537_p9 }
  0x28   : > { %3545 = shalt.err (!%p3542_p11)
}
  0x29   : > { %s3546_s19 = scalar_lea.vmem %s3932_s13, 512  ;;  %p3554_p2 = scmp.lt.s32.totalorder %s3932_s13, %s3932_s13 }
  0x2a   : > { %p3547_p12 = scmp.ne.s32.totalorder %s3932_s13, %s3546_s19  ;;  %p3555_p4 = scmp.lt.s32.totalorder %s3546_s19, %s3546_s19 }
  0x2c   : > { %p3549_p13 = pnand %p3547_p12, %p3954_p7  ;;  %p3556_p6 = por %p3555_p4, %p3554_p2 }
  0x2e   : > { %p3550_p0 = pneg %p3549_p13 }
  0x30   : > { %p3557_p8 = pnand %p3556_p6, %p3550_p0 }
  0x32   : > { %3560 = shalt.err (!%p3557_p8)
}
  0x33   : > { %s4932_s20 = smov 128   ;;  %s4933_s21 = smov 8  }
  0x34   : > { %3178 = dma.hbm_to_vmem [thread:$0]  (!%p3938_p5), %s4945_s1, 512, %s3932_s13, [#allocation9], %s4932_s20, %s4932_s20, %s4933_s21  }
  0x35   : > { %s4947_s3 = sld [smem:[#allocation25_spill]] }
  0x3b   : > { %s3561_s19 = scalar_lea.hbm %s4947_s3, 256 }
  0x3c   : > { %p3562_p9 = scmp.ne.s32.totalorder %s4947_s3, %s3561_s19  ;;  %p3568_p12 = scmp.lt.u32.totalorder %s3561_s19, %s4947_s3 }
  0x3e   : > { %p3564_p10 = pnand %p3562_p9, %p3954_p7 }
  0x40   : > { %p3565_p11 = pneg %p3564_p10 }
  0x42   : > { %p3570_p13 = pnand %p3568_p12, %p3565_p11 }
  0x44   : > { %3573 = shalt.err (!%p3570_p13)
}
  0x45   : > { %s3574_s13 = scalar_lea.vmem %s3942_s16, 256  ;;  %p3582_p6 = scmp.lt.s32.totalorder %s3942_s16, %s3942_s16 }
  0x46   : > { %p3575_p0 = scmp.ne.s32.totalorder %s3942_s16, %s3574_s13  ;;  %p3583_p8 = scmp.lt.s32.totalorder %s3574_s13, %s3574_s13 }
  0x48   : > { %p3577_p2 = pnand %p3575_p0, %p3954_p7  ;;  %p3584_p9 = por %p3583_p8, %p3582_p6 }
  0x4a   : > { %p3578_p4 = pneg %p3577_p2 }
  0x4c   : > { %p3585_p10 = pnand %p3584_p9, %p3578_p4 }
  0x4e   : > { %3588 = shalt.err (!%p3585_p10)
}
  0x4f   : > { %3184 = dma.hbm_to_vmem [thread:$0]  (!%p3938_p5), %s4947_s3, 256, %s3942_s16, [#allocation12]  }
  0x50   : > { %s4948_s2 = sld [smem:[#allocation24_spill]] }
  0x56   : > { %s3589_s22 = scalar_lea.hbm %s4948_s2, 1024 }
  0x57   : > { %p3590_p11 = scmp.ne.s32.totalorder %s4948_s2, %s3589_s22  ;;  %p3596_p0 = scmp.lt.u32.totalorder %s3589_s22, %s4948_s2 }
  0x59   : > { %p3592_p12 = pnand %p3590_p11, %p3954_p7 }
  0x5b   : > { %p3593_p13 = pneg %p3592_p12 }
  0x5d   : > { %p3598_p2 = pnand %p3596_p0, %p3593_p13 }
  0x5f   : > { %3601 = shalt.err (!%p3598_p2)
}
  0x60   : > { %s3602_s13 = scalar_lea.vmem %s251_s18, 1024  ;;  %p3610_p9 = scmp.lt.s32.totalorder %s251_s18, %s251_s18 }
  0x61   : > { %p3603_p4 = scmp.ne.s32.totalorder %s251_s18, %s3602_s13  ;;  %p3611_p10 = scmp.lt.s32.totalorder %s3602_s13, %s3602_s13 }
  0x63   : > { %p3605_p6 = pnand %p3603_p4, %p3954_p7  ;;  %p3612_p3 = por %p3611_p10, %p3610_p9 }
  0x65   : > { %p3606_p8 = pneg %p3605_p6 }
  0x67   : > { %p3613_p1 = pnand %p3612_p3, %p3606_p8 }
  0x69   : > { %3616 = shalt.err (!%p3613_p1)
}
  0x6a   : > { %s3820_s16 = smov 256   ;;  %s3821_s5 = smov 16  }
  0x6b   : > { %3181 = dma.hbm_to_vmem [thread:$0]  (!%p3938_p5), %s4948_s2, 1024, %s251_s18, [#allocation9], %s3820_s16, %s3820_s16, %s3821_s5  }
  0x6c   : > { %s3822_s9 = smov [#allocation13]   ;;  %s3823_s23 = smov [#allocation14]  }
  0x6d   : > { %s275_s22 = sshll.u32 %s3822_s9, 4  ;;  %s288_s15 = sshll.u32 %s3823_s23, 4  ;;  %s276_s22 = int_to_ptr.vmem [resolvable:$true] %s275_s22  ;;  %s289_s15 = int_to_ptr.vmem [resolvable:$true] %s288_s15 }
  0x6e   : > { %s4949_s4 = sld [smem:[#allocation26_spill]] }
  0x74   : > { %s3617_s13 = scalar_lea.hbm %s4949_s4, 256 }
  0x75   : > { %p3618_p1 = scmp.ne.s32.totalorder %s4949_s4, %s3617_s13  ;;  %p3624_p12 = scmp.lt.u32.totalorder %s3617_s13, %s4949_s4 }
  0x77   : > { %p3620_p3 = pnand %p3618_p1, %p3954_p7 }
  0x79   : > { %p3621_p11 = pneg %p3620_p3 }
  0x7b   : > { %p3626_p13 = pnand %p3624_p12, %p3621_p11 }
  0x7d   : > { %3629 = shalt.err (!%p3626_p13)
}
  0x7e   : > { %s3630_s18 = scalar_lea.vmem %s276_s22, 256  ;;  %p3638_p6 = scmp.lt.s32.totalorder %s276_s22, %s276_s22 }
  0x7f   : > { %p3631_p0 = scmp.ne.s32.totalorder %s276_s22, %s3630_s18  ;;  %p3639_p8 = scmp.lt.s32.totalorder %s3630_s18, %s3630_s18 }
  0x81   : > { %p3633_p2 = pnand %p3631_p0, %p3954_p7  ;;  %p3640_p9 = por %p3639_p8, %p3638_p6 }
  0x83   : > { %p3634_p4 = pneg %p3633_p2 }
  0x85   : > { %p3641_p10 = pnand %p3640_p9, %p3634_p4 }
  0x87   : > { %3644 = shalt.err (!%p3641_p10)
}
  0x88   : > { %3187 = dma.hbm_to_vmem [thread:$0]  (!%p3938_p5), %s4949_s4, 256, %s276_s22, [#allocation12]  }
  0x89   : > { %s3645_s16 = scalar_lea.hbm %s4924_s6, 256 }
  0x8a   : > { %p3646_p1 = scmp.ne.s32.totalorder %s4924_s6, %s3645_s16  ;;  %p3652_p12 = scmp.lt.u32.totalorder %s3645_s16, %s4924_s6 }
  0x8c   : > { %p3648_p3 = pnand %p3646_p1, %p3954_p7 }
  0x8e   : > { %p3649_p11 = pneg %p3648_p3 }
  0x90   : > { %p3654_p13 = pnand %p3652_p12, %p3649_p11 }
  0x92   : > { %3657 = shalt.err (!%p3654_p13)
}
  0x93   : > { %s3658_s23 = scalar_lea.vmem %s289_s15, 256  ;;  %p3666_p6 = scmp.lt.s32.totalorder %s289_s15, %s289_s15 }
  0x94   : > { %p3659_p0 = scmp.ne.s32.totalorder %s289_s15, %s3658_s23  ;;  %p3667_p8 = scmp.lt.s32.totalorder %s3658_s23, %s3658_s23 }
  0x96   : > { %p3661_p2 = pnand %p3659_p0, %p3954_p7  ;;  %p3668_p9 = por %p3667_p8, %p3666_p6 }
  0x98   : > { %p3662_p4 = pneg %p3661_p2 }
  0x9a   : > { %p3669_p10 = pnand %p3668_p9, %p3662_p4 }
  0x9c   : > { %3672 = shalt.err (!%p3669_p10)
}
  0x9d   : > { %s4950_s22 = smov 8   ;;  %s4951_s17 = smov 128  }
  0x9e   : > { %3190 = dma.hbm_to_vmem [thread:$0]  (!%p3938_p5), %s4924_s6, 256, %s289_s15, [#allocation15], %s4951_s17, %s4951_s17, %s4950_s22  }
  0x9f   : > { %s2983_s14 = sadd.s32 4294967294, %s3813_s8   ;;  %s35_s12 = sadd.s32 1, %s3805_s29 }
  0xa0   : > { %s38_s18 = sadd.s32 1, %s3809_s30  ;;  %p36_p7 = scmp.ge.s32.totalorder %s35_s12, 2 }
  0xa1   : > { %s47_s20 = sadd.s32 1, %s3793_s26  ;;  %p54_p1 = scmp.ne.s32.totalorder %s3793_s26, %s3789_s25 }
  0xa2   : > { %p55_p3 = scmp.eq.s32.totalorder %s3813_s8, 0  ;;  %s4975_s12 = smov (%p36_p7, %s35_s12), 0 }
  0xa3   : > { %s4977_s18 = smov (!%p36_p7, %s38_s18), %s3809_s30  ;;  %s43_s21 = ssub.s32 %s3805_s29, %s4975_s12 }
  0xa4   : > { %p4071_p11 = por %p55_p3, %p54_p1  ;;  %p40_p5 = scmp.ge.s32.totalorder %s4977_s18, 2 }
  0xa5   : > { %p60_p12 = scmp.ne.s32.totalorder %s3789_s25, %s3785_s24  ;;  %s4953_s15 = sadd.s32 4294967295, %s3813_s8  }
  0xa6   : > { %p212_p13 = scmp.eq.s32.totalorder %s4953_s15, 3  ;;  %p218_p0 = scmp.eq.s32.totalorder %s2983_s14, 3 }
  0xa7   : > { %s4979_s18 = smov (%p40_p5, %s4977_s18), 0  ;;  %p4954_p2 = scmp.ne.s32.totalorder %s4942_s10, 0 }
  0xa8   : > { %p4087_p6 = por %p212_p13, %p54_p1  ;;  %s42_s5 = ssub.s32 %s3809_s30, %s4979_s18 }
  0xa9   : > { %p4083_p4 = por %p4954_p2, %p60_p12  ;;  %p4093_p8 = por %p218_p0, %p60_p12 }
  0xaa   : > { %s4956_s16 = scalar_select %p4087_p6, 1, 0 }
  0xab   : > { %s4957_s7 = scalar_select %p4093_p8, 1, 0 }
  0xac   : > { %s44_s28 = sor.u32 %s43_s21, %s42_s5  ;;  %p3204_p9 = scmp.lt.s32.totalorder %s3813_s8, 4 }
  0xad   : > { %p45_p10 = scmp.eq.s32.totalorder %s44_s28, 0  ;;  %s302_s9 = sand.u32 1, %s3793_s26  }
  0xae   : > { %s2991_s23 = sshll.u32 %s302_s9, 4  ;;  %s3145_s17 = sshll.u32 %s3805_s29, 3 }
  0xaf   : > { %s4100_s22 = scalar_select %p45_p10, %s3793_s26, %s47_s20  }
  0xb0   : > { %s2994_s19 = sshll.u32 %s3809_s30, 4  ;;  %s306_s13 = scalar_lea.vmem [#allocation5], %s2991_s23 }
  0xb1   : > { %s316_s14 = sshll.u32 %s306_s13, 4  ;;  %s313_s15 = sadd.s32 %s3145_s17, %s2994_s19  ;;  %s4104_s14 = int_to_ptr.vmem [resolvable:$true] %s316_s14 }
  0xb2   : > { %s2995_s2 = sshll.u32 %s313_s15, 5  ;;  %p4108_p7 = pnand %p3204_p9, %p4071_p11 }
  0xb3   : > { %s4115_s20 = scalar_lea.hbm %s4918_s0, %s2995_s2  ;;  %s4117_s28 = scalar_lea.sflag [#allocation6], %s302_s9 }
  0xb4   : > { %s3673_s23 = scalar_lea.hbm %s4115_s20, 256  ;;  %p3675_p3 = pneg %p4108_p7 }
  0xb5   : > { %p3674_p1 = scmp.ne.s32.totalorder %s4115_s20, %s3673_s23  ;;  %s3678_s19 = scalar_lea.hbm %s4918_s0, 1024 }
  0xb6   : > { %p3679_p12 = scmp.lt.u32.totalorder %s4115_s20, %s4918_s0  ;;  %p3680_p13 = scmp.lt.u32.totalorder %s3678_s19, %s3673_s23 }
  0xb7   : > { %p3676_p11 = pnand %p3675_p3, %p3674_p1  ;;  %p3682_p2 = scmp.lt.u32.totalorder %s3673_s23, %s4115_s20 }
  0xb8   : > { %p3681_p0 = por %p3680_p13, %p3679_p12 }
  0xb9   : > { %p3677_p5 = pneg %p3676_p11 }
  0xba   : > { %p3683_p9 = por %p3682_p2, %p3681_p0 }
  0xbc   : > { %p3684_p10 = pnand %p3683_p9, %p3677_p5 }
  0xbe   : > { %3687 = shalt.err (!%p3684_p10)
}
  0xbf   : > { %s3688_s9 = scalar_lea.vmem %s4104_s14, 256  ;;  %s3824_s15 = smov [#allocation5]  }
  0xc0   : > { %p3689_p1 = scmp.ne.s32.totalorder %s4104_s14, %s3688_s9  ;;  %s3693_s21 = sshll.u32 %s3824_s15, 4  ;;  %s3694_s21 = int_to_ptr.vmem [resolvable:$false] %s3693_s21 }
  0xc1   : > { %s3695_s5 = scalar_lea.vmem %s3694_s21, 512  ;;  %p3696_p6 = scmp.lt.s32.totalorder %s4104_s14, %s3694_s21 }
  0xc2   : > { %p3691_p11 = pnand %p3689_p1, %p3675_p3  ;;  %p3697_p12 = scmp.lt.s32.totalorder %s3695_s5, %s3688_s9 }
  0xc4   : > { %p3692_p8 = pneg %p3691_p11  ;;  %p3698_p13 = por %p3697_p12, %p3696_p6 }
  0xc6   : > { %p3699_p0 = pnand %p3698_p13, %p3692_p8 }
  0xc8   : > { %3702 = shalt.err (!%p3699_p0)
}
  0xc9   : > { %s3825_s23 = smov 64   ;;  %s3826_s1 = smov 4  }
  0xca   : > { %3194 = dma.hbm_to_vmem [thread:$0]  (!%p4108_p7), %s4115_s20, 256, %s4104_s14, %s4117_s28, %s3825_s23, %s3825_s23, %s3826_s1  }
  0xcb   : > { %p4959_p3 = scmp.ne.s32.totalorder %s4943_s11, 0 }
  0xcc   : > { %s4148_s17 = sand.u32 (!%p4959_p3), 1, %s3789_s25  }
  0xcd   : > { %328 = sbr.rel (%p4959_p3) target bundleno = 2241 (0x8c1), region = 48  ;;  %s2997_s19 = sshll.u32 (!%p4959_p3), %s4148_s17, 4 }
  0xce   : > { %s331_s2 = scalar_lea.sflag (!%p4959_p3), [#allocation6], %s4148_s17  ;;  %s4152_s13 = scalar_lea.vmem (!%p4959_p3), [#allocation5], %s2997_s19 }
  0xd4   : > { %3764 = dma.done.wait (%p4083_p4), %s331_s2, 256  }
  0xd5   : > { %3766 = vsyncadd (%p4083_p4), %s331_s2, 4294967040  ;;  %p4960_p6 = scmp.ne.s32.totalorder %s4942_s10, 0 }
  0xd7   : > { %3768 = dma.done.wait (%p4960_p6), [#allocation9], 1536  }
  0xd8   : > { %3770 = vsyncadd (%p4960_p6), [#allocation9], 4294965760 }
  0xd9   : > { %3772 = dma.done.wait (%p4960_p6), [#allocation12], 512  }
  0xda   : > { %3774 = vsyncadd (%p4960_p6), [#allocation12], 4294966784 }
  0xdb   : > { %3776 = dma.done.wait (%p4960_p6), [#allocation15], 256  }
  0xdc   : > { %3778 = vsyncadd (%p4960_p6), [#allocation15], 4294967040  ;;  %s3003_s4 = sshll.u32 %s4148_s17, 6  ;;  %p3004_p4 = scmp.ne.s32.totalorder %s3797_s27, 0 }
  0xdd   : > { %s4171_s11 = scalar_lea.vmem [#allocation16], %s3003_s4  ;;  %v3827_v0 = vmov (!%p3004_p4), 0   ;;  %v3828_v1 = vmov (!%p3004_p4), 0.0  }
  0xde   : > { %391 = sbr.rel (%p3004_p4) target bundleno = 233 (0xe9), region = 76  ;;  %392 = vst [vmem:[#allocation2] sm:$0xff] (!%p3004_p4), %v3827_v0  ;;  %393 = vst [vmem:[#allocation2 + $0x8] sm:$0x33] (!%p3004_p4), %v3827_v0 }
  0xdf   : > { %396 = vst [vmem:[#allocation4] sm:$0xff] (!%p3004_p4), %v3827_v0  ;;  %397 = vst [vmem:[#allocation4 + $0x8] sm:$0xff] (!%p3004_p4), %v3827_v0 }
  0xe0   : > { %398 = vst [vmem:[#allocation4 + $0x10] sm:$0xff] (!%p3004_p4), %v3827_v0  ;;  %399 = vst [vmem:[#allocation4 + $0x18] sm:$0xff] (!%p3004_p4), %v3827_v0 }
  0xe1   : > { %400 = vst [vmem:[#allocation4 + $0x20] sm:$0xff] (!%p3004_p4), %v3827_v0  ;;  %401 = vst [vmem:[#allocation4 + $0x28] sm:$0xff] (!%p3004_p4), %v3827_v0 }
  0xe2   : > { %402 = vst [vmem:[#allocation4 + $0x30] sm:$0xff] (!%p3004_p4), %v3827_v0  ;;  %403 = vst [vmem:[#allocation4 + $0x38] sm:$0xff] (!%p3004_p4), %v3827_v0 }
  0xe3   : > { %404 = vst [vmem:[#allocation4 + $0x40] sm:$0xff] (!%p3004_p4), %v3827_v0  ;;  %405 = vst [vmem:[#allocation4 + $0x48] sm:$0xff] (!%p3004_p4), %v3827_v0 }
  0xe4   : > { %406 = vst [vmem:[#allocation4 + $0x50] sm:$0xff] (!%p3004_p4), %v3827_v0  ;;  %407 = vst [vmem:[#allocation4 + $0x58] sm:$0xff] (!%p3004_p4), %v3827_v0 }
  0xe5   : > { %408 = vst [vmem:[#allocation4 + $0x60] sm:$0xff] %v3827_v0  ;;  %409 = vst [vmem:[#allocation4 + $0x68] sm:$0xff] %v3827_v0 }
  0xe6   : > { %410 = vst [vmem:[#allocation4 + $0x70] sm:$0xff] %v3827_v0  ;;  %411 = vst [vmem:[#allocation4 + $0x78] sm:$0xff] %v3827_v0 }
  0xe7   : > { %412 = vst [vmem:[#allocation4 + $0x80] sm:$0xff] %v3827_v0  ;;  %413 = vst [vmem:[#allocation4 + $0x88] sm:$0xff] %v3827_v0 }
  0xe8   : > { %394 = vst [vmem:[#allocation3] sm:$0xff] %v3828_v1  ;;  %395 = vst [vmem:[#allocation3 + $0x8] sm:$0xff] %v3828_v1 }
  0xe9 PF: > { %v455_v2 = vld [vmem:[#allocation14] sm:$0x11]  ;;  %v464_v3 = vlaneseq  ;;  %v557_v9 = vld [vmem:[#allocation14] sm:$0x22]  ;;  %v683_v19 = vld [vmem:[#allocation14] sm:$0x44] }
  0xea   : > { %v505_v4 = vld [vmem:[#allocation14] sm:$0x11]  ;;  %v3008_v5 = vcombine.low %v455_v2, %v455_v2  ;;  %v3009_v6 = vcombine.high %v455_v2, %v455_v2  ;;  %v607_v11 = vld [vmem:[#allocation14] sm:$0x22]  ;;  %v3012_v15 = vcombine.low %v557_v9, %v557_v9  ;;  %v3013_v18 = vcombine.high %v557_v9, %v557_v9  ;;  %s3829_s10 = smov 111   ;;  %s3830_s3 = smov 112  }
  0xeb   : > { %v3010_v7 = vcombine.low %v505_v4, %v505_v4  ;;  %v3011_v8 = vcombine.high %v505_v4, %v505_v4  ;;  %v465_v10 = vshrl.u32 %v464_v3, 7  ;;  %v3015_v22 = vcombine.high %v607_v11, %v607_v11  ;;  %v3005_v24 = vld.sshfl [vmem:[%s4152_s13] sm:$0x33 pattern:$0x76325410]  ;;  %s3831_s14 = smov 113  }
  0xec   : > { %v462_v12 = vpack.i.b16 %v3008_v5, %v3008_v5  ;;  %v469_v17 = vpack.i.b16 %v3009_v6, %v3009_v6  ;;  %v3014_v23 = vcombine.low %v607_v11, %v607_v11  ;;  %442 = vst [vmem:[#allocation2] sm:$0x33] %v3005_v24  ;;  %v564_v27 = vpack.i.b16 %v3012_v15, %v3012_v15  ;;  %v733_v42 = vld [vmem:[#allocation14] sm:$0x88]  ;;  %s3832_s20 = smov 127   ;;  %s3833_s28 = smov 1  }
  0xed   : > { %v512_v13 = vshrl.u32 %v3010_v7, 16  ;;  %v520_v14 = vshrl.u32 %v3011_v8, 16  ;;  %v4174_v16 = vsub.s32 0, %v465_v10  ;;  %v4181_v29 = vsub.s32 1, %v465_v10  ;;  %v781_v43 = vld [vmem:[#allocation14] sm:$0x88] }
  0xee   : > { %v614_v30 = vshrl.u32 %v3014_v23, 16  ;;  %v3018_v31 = vcombine.low %v683_v19, %v683_v19  ;;  %v571_v33 = vpack.i.b16 %v3013_v18, %v3013_v18  ;;  %v622_v34 = vshrl.u32 %v3015_v22, 16  ;;  %v831_v60 = vld [vmem:[#allocation14 + $0x8] sm:$0x11]  ;;  %s3834_s9 = smov 15   ;;  %s3835_s15 = smov 16  }
  0xef   : > { %v513_v20 = vpack.i.b16 %v512_v13, %v512_v13  ;;  %v521_v21 = vpack.i.b16 %v520_v14, %v520_v14  ;;  %v467_v25 = vrot.slane %v462_v12, %v4174_v16  ;;  %v474_v28 = vrot.slane %v469_v17, %v4174_v16  ;;  %s3836_s21 = smov 17   ;;  %s4961_s1 = sld [smem:[#allocation27_spill]] }
  0xf0   : > { %v3019_v35 = vcombine.high %v683_v19, %v683_v19  ;;  %v569_v36 = vrot.slane %v564_v27, %v4181_v29  ;;  %v615_v37 = vpack.i.b16 %v614_v30, %v614_v30  ;;  %v690_v38 = vshrl.u32 %v3018_v31, 16  ;;  %s2828_s4 = scalar_lea.sflag [#allocation7], %s4148_s17  ;;  %p4965_p7 = scmp.ne.s32.totalorder %s4956_s16, 0 }
  0xf1   : > { %v518_v26 = vrot.slane %v513_v20, %v4174_v16  ;;  %477 = vrot.lane.b32.xlu0 %v467_v25, %s3829_s10  ;;  %v526_v32 = vrot.slane %v521_v21, %v4174_v16  ;;  %v576_v39 = vrot.slane %v571_v33, %v4181_v29  ;;  %v623_v40 = vpack.i.b16 %v622_v34, %v622_v34  ;;  %v659_v25 = vld [vmem:[#allocation14] sm:$0x44]  ;;  %s3837_s23 = smov [#allocation16]  }
  0xf2   : > { %v698_v41 = vshrl.u32 %v3019_v35, 16  ;;  %v4189_v44 = vsub.s32 2, %v465_v10  ;;  %v620_v45 = vrot.slane %v615_v37, %v4181_v29  ;;  %v691_v46 = vpack.i.b16 %v690_v38, %v690_v38 }
  0xf3   : > { %529 = vrot.lane.b32.xlu1 %v518_v26, %s3830_s3  ;;  %v3020_v47 = vcombine.low %v733_v42, %v733_v42  ;;  %v3022_v48 = vcombine.low %v781_v43, %v781_v43  ;;  %v628_v49 = vrot.slane %v623_v40, %v4181_v29  ;;  %v3021_v51 = vcombine.high %v733_v42, %v733_v42  ;;  %v4215_v9 = vld [vmem:[#allocation2 + $0x4] ss:$8 sps:$4 sm:$0x3f]   ;;  %v4222_v20 = vld [vmem:[#allocation2] ss:$8 sps:$4 sm:$0x3f]  }
  0xf4   : > { %v699_v50 = vpack.i.b16 %v698_v41, %v698_v41  ;;  %v3023_v52 = vcombine.high %v781_v43, %v781_v43  ;;  %v696_v53 = vrot.slane %v691_v46, %v4189_v44  ;;  %v4197_v54 = vsub.s32 3, %v465_v10 }
  0xf5   : > { %479 = vrot.lane.b32.xlu0 %v474_v28, %s3829_s10  ;;  %v740_v55 = vpack.i.b16 %v3020_v47, %v3020_v47  ;;  %v788_v56 = vshrl.u32 %v3022_v48, 16  ;;  %v747_v58 = vpack.i.b16 %v3021_v51, %v3021_v51  ;;  %v3024_v63 = vcombine.low %v831_v60, %v831_v60 }
  0xf6   : > { %v704_v57 = vrot.slane %v699_v50, %v4189_v44  ;;  %v796_v59 = vshrl.u32 %v3023_v52, 16  ;;  %v3025_v2 = vcombine.high %v831_v60, %v831_v60  ;;  %vm481_vm0 = vcmask 908288  }
  0xf7   : > { %531 = vrot.lane.b32.xlu1 %v526_v32, %s3830_s3  ;;  %v745_v61 = vrot.slane %v740_v55, %v4197_v54  ;;  %v789_v62 = vpack.i.b16 %v788_v56, %v788_v56  ;;  %v752_v0 = vrot.slane %v747_v58, %v4197_v54  ;;  %v838_v4 = vpack.i.b16 %v3024_v63, %v3024_v63 }
  0xf8   : > { %v797_v1 = vpack.i.b16 %v796_v59, %v796_v59  ;;  %v845_v6 = vpack.i.b16 %v3025_v2, %v3025_v2  ;;  %vm533_vm1 = vcmask 916480   ;;  %vm583_vm2 = vcmask 924672  }
  0xf9   : > { %579 = vrot.lane.b32.xlu0 %v569_v36, %s3831_s14  ;;  %v794_v3 = vrot.slane %v789_v62, %v4197_v54  ;;  %v843_v7 = vrot.slane %v838_v4, %v4174_v16  ;;  %v3017_v27 = vcombine.high %v659_v25, %v659_v25  ;;  %v3016_v31 = vcombine.low %v659_v25, %v659_v25 }
  0xfa   : > { %v802_v5 = vrot.slane %v797_v1, %v4197_v54  ;;  %v850_v8 = vrot.slane %v845_v6, %v4174_v16  ;;  %vm635_vm3 = vcmask 1039360   ;;  %vm600_vm4 = vcmask 121856   ;;  %v4275_v6 = vld [vmem:[#allocation8 + $0x4] ss:$8 sps:$4 sm:$0xff]  }
  0xfb   : > { %581 = vrot.lane.b32.xlu1 %v576_v39, %s3831_s14  ;;  %v673_v33 = vpack.i.b16 %v3017_v27, %v3017_v27  ;;  %v666_v36 = vpack.i.b16 %v3016_v31, %v3016_v31  ;;  %vm652_vm5 = vcmask 7168   ;;  %vm498_vm6 = vcmask 138240   ;;  %v1298_v27 = vld [vmem:[#allocation14] sm:$0x44] }
  0xfc   : > { %vm550_vm7 = vcmask 130048  }
  0xfd   : > { %631 = vrot.lane.b32.xlu0 %v620_v45, %s3832_s20  ;;  %v678_v37 = vrot.slane %v673_v33, %v4189_v44  ;;  %v671_v41 = vrot.slane %v666_v36, %v4189_v44  ;;  %3030 = vmatprep.mubr.msk.bf16.mxu0 %vm550_vm7, %v4275_v6 }
  0xfe   : > { %3061 = vmatprep.mubr.msk.bf16.mxu1 %vm550_vm7, %v4275_v6 }
  0xff   : > { %633 = vrot.lane.b32.xlu1 %v628_v49, %s3832_s20  ;;  %v680_v43 = vmul.bf16 %v4215_v9, %v678_v37  ;;  %v679_v45 = vmul.bf16 %v4222_v20, %v671_v41 }
 0x101   : > { %707 = vrot.lane.b32.xlu0 %v696_v53, %s3833_s28  ;;  %682 = vst [vmem:[#allocation4 + $0x48] sm:$0x3f] %v680_v43  ;;  %681 = vst [vmem:[#allocation4 + $0x40] sm:$0x3f] %v679_v45 }
 0x103   : > { %709 = vrot.lane.b32.xlu1 %v704_v57, %s3833_s28 }
 0x105   : > { %755 = vrot.lane.b32.xlu0 %v745_v61, %s3834_s9 }
 0x107   : > { %757 = vrot.lane.b32.xlu1 %v752_v0, %s3834_s9 }
 0x109   : > { %805 = vrot.lane.b32.xlu0 %v794_v3, %s3835_s15 }
 0x10b   : > { %807 = vrot.lane.b32.xlu1 %v802_v5, %s3835_s15 }
 0x10d   : > { %853 = vrot.lane.b32.xlu0 %v843_v7, %s3836_s21 }
 0x10f   : > { %855 = vrot.lane.b32.xlu1 %v850_v8, %s3836_s21 }
 0x163   : > { %v478_v10 = vpop.permute.xlu0 %477 }
 0x164   : > { %v486_v11 = vmul.bf16 %v4215_v9, %v478_v10 }
 0x165   : > { %v530_v12 = vpop.permute.xlu1 %529 }
 0x166   : > { %492 = vrot.lane.b32.xlu0 %v486_v11, %s3836_s21  ;;  %v538_v24 = vmul.bf16 %v4215_v9, %v530_v12  ;;  %v1176_v11 = vld [vmem:[#allocation14] sm:$0x22] }
 0x167   : > { %v480_v13 = vpop.permute.xlu0 %479 }
 0x168   : > { %v488_v14 = vmul.bf16 %v4215_v9, %v480_v13  ;;  %v482_v21 = vsel %vm481_vm0, %v478_v10, %v480_v13  ;;  %v1126_v10 = vld [vmem:[#allocation14] sm:$0x11] }
 0x169   : > { %v532_v15 = vpop.permute.xlu1 %531  ;;  %v487_v23 = vmul.bf16 %v4222_v20, %v482_v21 }
 0x16a   : > { %496 = vrot.lane.b32.xlu1 %v488_v14, %s3836_s21  ;;  %v534_v26 = vsel %vm533_vm1, %v530_v12, %v532_v15  ;;  %v540_v32 = vmul.bf16 %v4215_v9, %v532_v15  ;;  %v3046_v14 = vcombine.high %v1126_v10, %v1126_v10  ;;  %v3045_v15 = vcombine.low %v1126_v10, %v1126_v10 }
 0x16b   : > { %v580_v17 = vpop.permute.xlu0 %579  ;;  %v539_v35 = vmul.bf16 %v4222_v20, %v534_v26 }
 0x16c   : > { %v588_v18 = vmul.bf16 %v4215_v9, %v580_v17  ;;  %v1133_v25 = vshrl.u32 %v3045_v15, 16 }
 0x16d   : > { %v582_v19 = vpop.permute.xlu1 %581 }
 0x16e   : > { %v590_v22 = vmul.bf16 %v4215_v9, %v582_v19  ;;  %594 = vrot.lane.b32.xlu0 %v588_v18, %s3834_s9  ;;  %v584_v34 = vsel %vm583_vm2, %v580_v17, %v582_v19  ;;  %v1224_v17 = vld [vmem:[#allocation14] sm:$0x22]  ;;  %v3048_v18 = vcombine.high %v1176_v11, %v1176_v11  ;;  %v3047_v19 = vcombine.low %v1176_v11, %v1176_v11 }
 0x16f   : > { %v632_v30 = vpop.permute.xlu0 %631  ;;  %v589_v42 = vmul.bf16 %v4222_v20, %v584_v34  ;;  %v3049_v21 = vcombine.low %v1224_v17, %v1224_v17 }
 0x170   : > { %598 = vrot.lane.b32.xlu1 %v590_v22, %s3834_s9  ;;  %v640_v38 = vmul.bf16 %v4215_v9, %v632_v30  ;;  %v1190_v33 = vpack.i.b16 %v3048_v18, %v3048_v18  ;;  %v1183_v34 = vpack.i.b16 %v3047_v19, %v3047_v19 }
 0x171   : > { %v634_v28 = vpop.permute.xlu1 %633 }
 0x172   : > { %494 = vrot.lane.b32.xlu0 %v487_v23, %s3836_s21  ;;  %v642_v46 = vmul.bf16 %v4215_v9, %v634_v28  ;;  %v636_v47 = vsel %vm635_vm3, %v632_v30, %v634_v28  ;;  %v1188_v43 = vrot.slane %v1183_v34, %v4181_v29 }
 0x173   : > { %v708_v40 = vpop.permute.xlu0 %707  ;;  %v641_v48 = vmul.bf16 %v4222_v20, %v636_v47  ;;  %v1348_v47 = vld [vmem:[#allocation14] sm:$0x88] }
 0x174   : > { %544 = vrot.lane.b32.xlu1 %v538_v24, %s3835_s15  ;;  %v715_v51 = vmul.bf16 %v4222_v20, %v708_v40  ;;  %v1141_v24 = vshrl.u32 %v3046_v14, 16 }
 0x175   : > { %v710_v39 = vpop.permute.xlu1 %709 }
 0x176   : > { %548 = vrot.lane.b32.xlu0 %v540_v32, %s3835_s15  ;;  %v717_v52 = vmul.bf16 %v4222_v20, %v710_v39  ;;  %v711_v59 = vsel %vm652_vm5, %v708_v40, %v710_v39  ;;  %v1142_v31 = vpack.i.b16 %v1141_v24, %v1141_v24  ;;  %v1134_v32 = vpack.i.b16 %v1133_v25, %v1133_v25 }
 0x177   : > { %v756_v50 = vpop.permute.xlu0 %755  ;;  %v716_v60 = vmul.bf16 %v4215_v9, %v711_v59  ;;  %v3053_v39 = vcombine.low %v1298_v27, %v1298_v27 }
 0x178   : > { %546 = vrot.lane.b32.xlu1 %v539_v35, %s3835_s15  ;;  %v763_v61 = vmul.bf16 %v4222_v20, %v756_v50  ;;  %v1231_v35 = vshrl.u32 %v3049_v21, 16  ;;  %v1147_v36 = vrot.slane %v1142_v31, %v4174_v16  ;;  %v1139_v37 = vrot.slane %v1134_v32, %v4174_v16 }
 0x179   : > { %v758_v49 = vpop.permute.xlu1 %757 }
 0x17a   : > { %596 = vrot.lane.b32.xlu0 %v589_v42, %s3834_s9  ;;  %v759_v53 = vsel %vm600_vm4, %v756_v50, %v758_v49  ;;  %v765_v55 = vmul.bf16 %v4222_v20, %v758_v49  ;;  %v1232_v41 = vpack.i.b16 %v1231_v35, %v1231_v35  ;;  %v1195_v42 = vrot.slane %v1190_v33, %v4181_v29 }
 0x17b   : > { %v764_v56 = vmul.bf16 %v4215_v9, %v759_v53  ;;  %v806_v58 = vpop.permute.xlu0 %805 }
 0x17c   : > { %646 = vrot.lane.b32.xlu1 %v640_v38, %s3833_s28  ;;  %v813_v0 = vmul.bf16 %v4222_v20, %v806_v58  ;;  %v3054_v38 = vcombine.high %v1298_v27, %v1298_v27  ;;  %v1237_v50 = vrot.slane %v1232_v41, %v4181_v29 }
 0x17d   : > { %v808_v57 = vpop.permute.xlu1 %807 }
 0x17e   : > { %650 = vrot.lane.b32.xlu0 %v642_v46, %s3833_s28  ;;  %v815_v1 = vmul.bf16 %v4222_v20, %v808_v57  ;;  %v809_v3 = vsel %vm550_vm7, %v806_v58, %v808_v57  ;;  %v1313_v45 = vshrl.u32 %v3054_v38, 16  ;;  %v1305_v46 = vshrl.u32 %v3053_v39, 16 }
 0x17f   : > { %v854_v63 = vpop.permute.xlu0 %853  ;;  %v814_v5 = vmul.bf16 %v4215_v9, %v809_v3 }
 0x180   : > { %648 = vrot.lane.b32.xlu1 %v641_v48, %s3833_s28  ;;  %v861_v8 = vmul.bf16 %v4222_v20, %v854_v63  ;;  %v1396_v48 = vld [vmem:[#allocation14] sm:$0x88] }
 0x181   : > { %v856_v62 = vpop.permute.xlu1 %855  ;;  %v3058_v53 = vcombine.high %v1396_v48, %v1396_v48  ;;  %v3057_v57 = vcombine.low %v1396_v48, %v1396_v48 }
 0x182   : > { %721 = vrot.lane.b32.xlu0 %v715_v51, %s3832_s20  ;;  %v857_v2 = vsel %vm498_vm6, %v854_v63, %v856_v62  ;;  %v863_v7 = vmul.bf16 %v4222_v20, %v856_v62  ;;  %v3050_v20 = vcombine.high %v1224_v17, %v1224_v17  ;;  %v3056_v51 = vcombine.high %v1348_v47, %v1348_v47 }
 0x183   : > { %v862_v4 = vmul.bf16 %v4215_v9, %v857_v2  ;;  %v1078_v9 = vld [vmem:[#allocation14] sm:$0x11]  ;;  %v1411_v62 = vshrl.u32 %v3058_v53, 16  ;;  %v1403_v63 = vshrl.u32 %v3057_v57, 16 }
 0x184   : > { %725 = vrot.lane.b32.xlu1 %v717_v52, %s3832_s20  ;;  %v3044_v12 = vcombine.high %v1078_v9, %v1078_v9  ;;  %v3043_v13 = vcombine.low %v1078_v9, %v1078_v9  ;;  %v1239_v26 = vshrl.u32 %v3050_v20, 16  ;;  %v3055_v52 = vcombine.low %v1348_v47, %v1348_v47 }
 0x185   : > { %v1362_v58 = vpack.i.b16 %v3056_v51, %v3056_v51 }
 0x186   : > { %773 = vrot.lane.b32.xlu0 %v765_v55, %s3831_s14  ;;  %v1092_v22 = vpack.i.b16 %v3044_v12, %v3044_v12  ;;  %v1085_v23 = vpack.i.b16 %v3043_v13, %v3043_v13  ;;  %v1240_v40 = vpack.i.b16 %v1239_v26, %v1239_v26  ;;  %v1314_v55 = vpack.i.b16 %v1313_v45, %v1313_v45 }
 0x187   : > { %v1355_v59 = vpack.i.b16 %v3055_v52, %v3055_v52 }
 0x188   : > { %771 = vrot.lane.b32.xlu1 %v764_v56, %s3831_s14  ;;  %v1097_v28 = vrot.slane %v1092_v22, %v4174_v16  ;;  %v1090_v30 = vrot.slane %v1085_v23, %v4174_v16  ;;  %v1245_v49 = vrot.slane %v1240_v40, %v4181_v29  ;;  %v1306_v56 = vpack.i.b16 %v1305_v46, %v1305_v46 }
 0x18a   : > { %723 = vrot.lane.b32.xlu0 %v716_v60, %s3832_s20  ;;  %v1319_v60 = vrot.slane %v1314_v55, %v4189_v44 }
 0x18c   : > { %769 = vrot.lane.b32.xlu1 %v763_v61, %s3831_s14  ;;  %v1311_v61 = vrot.slane %v1306_v56, %v4189_v44  ;;  %v887_v56 = vld [vmem:[#allocation4 + $0x40] sm:$0xff] }
 0x18e   : > { %819 = vrot.lane.b32.xlu0 %v813_v0, %s3830_s3  ;;  %v1446_v0 = vld [vmem:[#allocation14 + $0x8] sm:$0x11] }
 0x18f   : > { %v3060_v2 = vcombine.high %v1446_v0, %v1446_v0  ;;  %v3059_v3 = vcombine.low %v1446_v0, %v1446_v0 }
 0x190   : > { %823 = vrot.lane.b32.xlu1 %v815_v1, %s3830_s3  ;;  %v1367_v1 = vrot.slane %v1362_v58, %v4197_v54 }
 0x191   : > { %v1453_v11 = vpack.i.b16 %v3059_v3, %v3059_v3 }
 0x192   : > { %821 = vrot.lane.b32.xlu0 %v814_v5, %s3830_s3  ;;  %v1412_v5 = vpack.i.b16 %v1411_v62, %v1411_v62 }
 0x193   : > { %v1458_v13 = vrot.slane %v1453_v11, %v4174_v16 }
 0x194   : > { %869 = vrot.lane.b32.xlu1 %v862_v4, %s3829_s10  ;;  %v1360_v4 = vrot.slane %v1355_v59, %v4197_v54  ;;  %v1417_v9 = vrot.slane %v1412_v5, %v4197_v54 }
 0x196   : > { %871 = vrot.lane.b32.xlu0 %v863_v7, %s3829_s10  ;;  %v1404_v7 = vpack.i.b16 %v1403_v63, %v1403_v63 }
 0x198   : > { %867 = vrot.lane.b32.xlu1 %v861_v8, %s3829_s10  ;;  %v1460_v8 = vpack.i.b16 %v3060_v2, %v3060_v2  ;;  %v1409_v10 = vrot.slane %v1404_v7, %v4197_v54 }
 0x19a   : > { %1100 = vrot.lane.b32.xlu0 %v1090_v30, %s3829_s10  ;;  %v1465_v12 = vrot.slane %v1460_v8, %v4174_v16 }
 0x19c   : > { %1102 = vrot.lane.b32.xlu1 %v1097_v28, %s3829_s10 }
 0x19e   : > { %1150 = vrot.lane.b32.xlu0 %v1139_v37, %s3830_s3 }
 0x1a0   : > { %1152 = vrot.lane.b32.xlu1 %v1147_v36, %s3830_s3 }
 0x1a2   : > { %1198 = vrot.lane.b32.xlu0 %v1188_v43, %s3831_s14 }
 0x1a4   : > { %1200 = vrot.lane.b32.xlu1 %v1195_v42, %s3831_s14 }
 0x1a6   : > { %1248 = vrot.lane.b32.xlu0 %v1237_v50, %s3832_s20  ;;  %v888_v50 = vld [vmem:[#allocation4 + $0x48] sm:$0xff] }
 0x1a8   : > { %1250 = vrot.lane.b32.xlu1 %v1245_v49, %s3832_s20 }
 0x1aa   : > { %1322 = vrot.lane.b32.xlu0 %v1311_v61, %s3833_s28 }
 0x1ac   : > { %1324 = vrot.lane.b32.xlu1 %v1319_v60, %s3833_s28 }
 0x1ae   : > { %1370 = vrot.lane.b32.xlu0 %v1360_v4, %s3834_s9 }
 0x1b0   : > { %1372 = vrot.lane.b32.xlu1 %v1367_v1, %s3834_s9 }
 0x1b2   : > { %1420 = vrot.lane.b32.xlu0 %v1409_v10, %s3835_s15 }
 0x1b4   : > { %1422 = vrot.lane.b32.xlu1 %v1417_v9, %s3835_s15 }
 0x1b6   : > { %1468 = vrot.lane.b32.xlu0 %v1458_v13, %s3836_s21  ;;  %v4333_v13 = vld [vmem:[#allocation8] ss:$8 sps:$4 sm:$0xff]  }
 0x1b8   : > { %1470 = vrot.lane.b32.xlu1 %v1465_v12, %s3836_s21 }
 0x1d8   : > { %v493_v14 = vpop.permute.xlu0 %492 }
 0x1dc   : > { %v497_v15 = vpop.permute.xlu1 %496 }
 0x1e0   : > { %v595_v17 = vpop.permute.xlu0 %594 }
 0x1e2   : > { %v599_v18 = vpop.permute.xlu1 %598 }
 0x1e4   : > { %v495_v19 = vpop.permute.xlu0 %494 }
 0x1e5   : > { %v499_v20 = vsel %vm498_vm6, %v493_v14, %v495_v19  ;;  %v500_v21 = vsel %vm498_vm6, %v495_v19, %v497_v15  ;;  %v4335_v14 = vld [vmem:[#allocation8 + $0x14] ss:$8 sps:$4 sm:$0xff]   ;;  %v4340_v15 = vld [vmem:[#allocation8 + $0x10] ss:$8 sps:$4 sm:$0xff]   ;;  %v4348_v19 = vld [vmem:[#allocation3] sm:$0xff] }
 0x1e6   : > { %v545_v22 = vpop.permute.xlu1 %544  ;;  %503 = vst [vmem:[#allocation4] sm:$0x3f] %v499_v20  ;;  %504 = vst [vmem:[#allocation4 + $0x8] sm:$0x3f] %v500_v21  ;;  %v4350_v20 = vld [vmem:[#allocation11 + $0x8] sm:$0xff] }
 0x1e7   : > { %v4352_v21 = vld [vmem:[#allocation3 + $0x8] sm:$0xff] }
 0x1e8   : > { %v549_v23 = vpop.permute.xlu0 %548 }
 0x1ea   : > { %v547_v24 = vpop.permute.xlu1 %546 }
 0x1eb   : > { %v551_v25 = vsel %vm550_vm7, %v545_v22, %v547_v24  ;;  %v552_v26 = vsel %vm550_vm7, %v547_v24, %v549_v23  ;;  %v4354_v22 = vld [vmem:[#allocation10] sm:$0xff]  ;;  %v4356_v23 = vld [vmem:[#allocation13] sm:$0xff] }
 0x1ec   : > { %555 = vst [vmem:[#allocation4 + $0x10] sm:$0x3f] %v551_v25  ;;  %556 = vst [vmem:[#allocation4 + $0x18] sm:$0x3f] %v552_v26  ;;  %v597_v27 = vpop.permute.xlu0 %596  ;;  %v4360_v25 = vld [vmem:[#allocation10 + $0x8] sm:$0xff] }
 0x1ed   : > { %v601_v28 = vsel %vm600_vm4, %v595_v17, %v597_v27  ;;  %v602_v30 = vsel %vm600_vm4, %v597_v27, %v599_v18  ;;  %v880_v32 = vld [vmem:[#allocation4 + $0x8] sm:$0xff]  ;;  %v879_v33 = vld [vmem:[#allocation4] sm:$0xff]  ;;  %v4346_v18 = vld [vmem:[#allocation11] sm:$0xff]  ;;  %v978_v27 = vmul.f32 %v4352_v21, %v4350_v20 }
 0x1ee   : > { %v647_v31 = vpop.permute.xlu1 %646  ;;  %605 = vst [vmem:[#allocation4 + $0x20] sm:$0x3f] %v601_v28  ;;  %606 = vst [vmem:[#allocation4 + $0x28] sm:$0x3f] %v602_v30  ;;  %922 = vmatprep.subr.bf16.mxu0 %v880_v32  ;;  %v977_v24 = vmul.f32 %v4348_v19, %v4346_v18  ;;  %v4366_v28 = vld [vmem:[#allocation10 + $0x10] sm:$0xff]  ;;  %v993_v32 = vmul.f32 %v4348_v19, %v4356_v23 }
 0x1ef   : > { %923 = vmatpush1.bf16.msra.mxu0 %v879_v33  ;;  %v3040_v17 = vld.sshfl [vmem:[%s4152_s13 + $0x4] sm:$0x33 pattern:$0x76325410]  ;;  %v4371_v33 = vld [vmem:[#allocation10 + $0x18] sm:$0xff] }
 0x1f0   : > { %v651_v34 = vpop.permute.xlu0 %650  ;;  %1065 = vst [vmem:[#allocation2] sm:$0x33] %v3040_v17  ;;  %v4390_v17 = vld [vmem:[%s4961_s1] sm:$0xff] }
 0x1f2   : > { %v649_v35 = vpop.permute.xlu1 %648 }
 0x1f3   : > { %v653_v36 = vsel %vm652_vm5, %v647_v31, %v649_v35  ;;  %v654_v37 = vsel %vm652_vm5, %v649_v35, %v651_v34  ;;  %v882_v38 = vld [vmem:[#allocation4 + $0x18] sm:$0xff]  ;;  %v881_v39 = vld [vmem:[#allocation4 + $0x10] sm:$0xff] }
 0x1f4   : > { %657 = vst [vmem:[#allocation4 + $0x30] sm:$0x3f] %v653_v36  ;;  %658 = vst [vmem:[#allocation4 + $0x38] sm:$0x3f] %v654_v37  ;;  %924 = vmatprep.subr.bf16.mxu0 %v882_v38  ;;  %v722_v40 = vpop.permute.xlu0 %721 }
 0x1f5   : > { %925 = vmatpush1.bf16.msra.mxu0 %v881_v39  ;;  %v884_v42 = vld [vmem:[#allocation4 + $0x28] sm:$0xff]  ;;  %v883_v43 = vld [vmem:[#allocation4 + $0x20] sm:$0xff] }
 0x1f6   : > { %v726_v41 = vpop.permute.xlu1 %725  ;;  %926 = vmatprep.subr.bf16.mxu0 %v884_v42 }
 0x1f8   : > { %v774_v45 = vpop.permute.xlu0 %773 }
 0x1f9   : > { %927 = vmatpush1.bf16.msra.mxu0 %v883_v43 }
 0x1fa   : > { %v772_v46 = vpop.permute.xlu1 %771 }
 0x1fb   : > { %v776_v47 = vsel %vm583_vm2, %v772_v46, %v774_v45  ;;  %v886_v48 = vld [vmem:[#allocation4 + $0x38] sm:$0xff]  ;;  %v885_v49 = vld [vmem:[#allocation4 + $0x30] sm:$0xff] }
 0x1fc   : > { %780 = vst [vmem:[#allocation4 + $0x68] sm:$0x3f] %v776_v47  ;;  %928 = vmatprep.subr.bf16.mxu0 %v886_v48  ;;  %v724_v51 = vpop.permute.xlu0 %723 }
 0x1fd   : > { %929 = vmatpush1.bf16.msra.mxu0 %v885_v49  ;;  %v727_v52 = vsel %vm635_vm3, %v722_v40, %v724_v51  ;;  %v728_v53 = vsel %vm635_vm3, %v724_v51, %v726_v41 }
 0x1fe   : > { %v770_v55 = vpop.permute.xlu1 %769  ;;  %930 = vmatprep.subr.bf16.mxu0 %v888_v50  ;;  %731 = vst [vmem:[#allocation4 + $0x50] sm:$0x3f] %v727_v52  ;;  %732 = vst [vmem:[#allocation4 + $0x58] sm:$0x3f] %v728_v53  ;;  %v4378_v52 = vld [vmem:[#allocation10 + $0x20] sm:$0xff] }
 0x1ff   : > { %v775_v57 = vsel %vm583_vm2, %v770_v55, %v772_v46  ;;  %v4380_v55 = vld [vmem:[#allocation10 + $0x28] sm:$0xff] }
 0x200   : > { %779 = vst [vmem:[#allocation4 + $0x60] sm:$0x3f] %v775_v57  ;;  %v820_v58 = vpop.permute.xlu0 %819 }
 0x201   : > { %931 = vmatpush1.bf16.msra.mxu0 %v887_v56 }
 0x202   : > { %v824_v59 = vpop.permute.xlu1 %823 }
 0x203   : > { %v892_v2 = vld [vmem:[#allocation4 + $0x68] sm:$0xff] }
 0x204   : > { %v822_v60 = vpop.permute.xlu0 %821 }
 0x205   : > { %v825_v61 = vsel %vm533_vm1, %v820_v58, %v822_v60  ;;  %v826_v62 = vsel %vm533_vm1, %v822_v60, %v824_v59  ;;  %v890_v0 = vld [vmem:[#allocation4 + $0x58] sm:$0xff]  ;;  %v889_v1 = vld [vmem:[#allocation4 + $0x50] sm:$0xff] }
 0x206   : > { %v870_v63 = vpop.permute.xlu1 %869  ;;  %829 = vst [vmem:[#allocation4 + $0x70] sm:$0x3f] %v825_v61  ;;  %830 = vst [vmem:[#allocation4 + $0x78] sm:$0x3f] %v826_v62  ;;  %932 = vmatprep.subr.bf16.mxu0 %v890_v0 }
 0x207   : > { %933 = vmatpush1.bf16.msra.mxu0 %v889_v1  ;;  %v891_v8 = vld [vmem:[#allocation4 + $0x60] sm:$0xff] }
 0x208   : > { %934 = vmatprep.subr.bf16.mxu0 %v892_v2  ;;  %v872_v3 = vpop.permute.xlu0 %871 }
 0x209   : > { %v874_v4 = vsel %vm481_vm0, %v870_v63, %v872_v3 }
 0x20a   : > { %v868_v5 = vpop.permute.xlu1 %867  ;;  %878 = vst [vmem:[#allocation4 + $0x88] sm:$0x3f] %v874_v4 }
 0x20b   : > { %v873_v7 = vsel %vm481_vm0, %v868_v5, %v870_v63  ;;  %935 = vmatpush1.bf16.msra.mxu0 %v891_v8 }
 0x20c   : > { %877 = vst [vmem:[#allocation4 + $0x80] sm:$0x3f] %v873_v7 }
 0x20d   : > { %v894_v9 = vld [vmem:[#allocation4 + $0x78] sm:$0xff]  ;;  %v893_v10 = vld [vmem:[#allocation4 + $0x70] sm:$0xff] }
 0x20e   : > { %936 = vmatprep.subr.bf16.mxu0 %v894_v9 }
 0x20f   : > { %937 = vmatpush1.bf16.msra.mxu0 %v893_v10 }
 0x211   : > { %v896_v11 = vld [vmem:[#allocation4 + $0x88] sm:$0xff] }
 0x212   : > { %938 = vmatprep.subr.bf16.mxu0 %v896_v11 }
 0x213   : > { %v895_v12 = vld [vmem:[#allocation4 + $0x80] sm:$0xff] }
 0x214   : > { %939 = vmatpush1.bf16.msra.mxu0 %v895_v12  ;;  %v4385_v12 = vld [vmem:[#allocation10 + $0x30] sm:$0xff] }
 0x217   : > { %955 = vmatmul.mubr.bf16.vlgmr.msra.gmra.mrb[0].mxu0 %v4333_v13 }
 0x218   : > { %3031 = vmatprep.mubr.msk.bf16.mxu0 %vm550_vm7, %v4335_v14 }
 0x21f   : > { %965 = vmatmul.mubr.bf16.gmra.mrb[4].mxu0 %v4340_v15 }
 0x220   : > { %3094 = vmatprep.mubr.msk.bf16.mxu0 %vm550_vm7, %v4275_v6  ;;  %v4362_v6 = vld [vmem:[#allocation13 + $0x8] sm:$0xff] }
 0x221   : > { %v994_v36 = vmul.f32 %v4352_v21, %v4362_v6 }
 0x2ea   : > { %v956_v26 = vpop.f32.mrb[0].mxu0 }
 0x2eb   : > { %v957_v30 = vadd.f32 %v956_v26, %v4354_v22  ;;  %v958_v31 = vpop.f32.mrb[1].mxu0 }
 0x2ec   : > { %v959_v34 = vadd.f32 %v958_v31, %v4360_v25  ;;  %v960_v35 = vpop.f32.mrb[2].mxu0 }
 0x2ed   : > { %v979_v37 = vadd.f32 %v977_v24, %v957_v30  ;;  %v961_v38 = vadd.f32 %v960_v35, %v4366_v28  ;;  %v962_v39 = vpop.f32.mrb[3].mxu0  ;;  %v4400_v30 = vld [vmem:[%s4961_s1 + $0x8] sm:$0xff] }
 0x2ee   : > { %v980_v40 = vadd.f32 %v978_v27, %v959_v34  ;;  %v963_v41 = vadd.f32 %v962_v39, %v4371_v33  ;;  %v4395_v27 = vld [vmem:[#allocation10 + $0x38] sm:$0xff] }
 0x2ef   : > { %v3032_v42 = vmul.f32 -1.442695, %v979_v37  ;;  %v995_v43 = vadd.f32 %v993_v32, %v961_v38 }
 0x2f0   : > { %v3033_v45 = vmul.f32 -1.442695, %v980_v40  ;;  %v996_v46 = vadd.f32 %v994_v36, %v963_v41 }
 0x2f1   : > { %3387 = vpow2.f32 %v3032_v42  ;;  %v3034_v47 = vmul.f32 -1.442695, %v995_v43 }
 0x2f2   : > { %3389 = vpow2.f32 %v3033_v45  ;;  %v3035_v48 = vmul.f32 -1.442695, %v996_v46  ;;  %v966_v49 = vpop.f32.mrb[4].mxu0 }
 0x2f3   : > { %3391 = vpow2.f32 %v3034_v47  ;;  %v968_v50 = vpop.f32.mrb[5].mxu0  ;;  %v967_v56 = vadd.f32 %v966_v49, %v4378_v52 }
 0x2f4   : > { %3393 = vpow2.f32 %v3035_v48  ;;  %v970_v51 = vpop.f32.mrb[6].mxu0  ;;  %v969_v57 = vadd.f32 %v968_v50, %v4380_v55 }
 0x2f5   : > { %v972_v53 = vpop.f32.mrb[7].mxu0  ;;  %3395 = vtanh.f32 %v967_v56  ;;  %v1274_v56 = vld [vmem:[#allocation14] sm:$0x44] }
 0x2f6   : > { %3397 = vtanh.f32 %v969_v57  ;;  %v973_v34 = vadd.f32 %v972_v53, %v4395_v27  ;;  %v1103_v57 = vpop.permute.xlu1 %1102 }
 0x2fb   : > { %v3388_v58 = vpop.eup %3387 }
 0x2fc   : > { %v3390_v59 = vpop.eup %3389  ;;  %v987_v60 = vadd.f32 1.0, %v3388_v58  ;;  %v1101_v58 = vpop.permute.xlu0 %1100 }
 0x2fd   : > { %v3392_v61 = vpop.eup %3391  ;;  %v988_v62 = vadd.f32 1.0, %v3390_v59  ;;  %v3052_v59 = vcombine.high %v1274_v56, %v1274_v56 }
 0x2fe   : > { %v3394_v63 = vpop.eup %3393  ;;  %3399 = vrcp.f32 %v987_v60  ;;  %v1003_v0 = vadd.f32 1.0, %v3392_v61  ;;  %v3051_v60 = vcombine.low %v1274_v56, %v1274_v56  ;;  %v3073_v61 = vld.sshfl [vmem:[%s4152_s13 + $0x8] sm:$0x33 pattern:$0x76325410] }
 0x2ff   : > { %3401 = vrcp.f32 %v988_v62  ;;  %v1004_v1 = vadd.f32 1.0, %v3394_v63  ;;  %v3396_v2 = vpop.eup %3395  ;;  %v1288_v63 = vpack.i.b16 %v3052_v59, %v3052_v59 }
 0x300   : > { %3403 = vrcp.f32 %v1003_v0  ;;  %v3398_v3 = vpop.eup %3397  ;;  %v1281_v0 = vpack.i.b16 %v3051_v60, %v3051_v60 }
 0x301   : > { %3405 = vrcp.f32 %v1004_v1 }
 0x308   : > { %v3400_v4 = vpop.eup %3399 }
 0x309   : > { %v3402_v5 = vpop.eup %3401  ;;  %v1013_v7 = vmul.f32 %v3400_v4, %v3396_v2  ;;  %v1153_v2 = vpop.permute.xlu1 %1152 }
 0x30a   : > { %v3404_v8 = vpop.eup %3403  ;;  %v1014_v9 = vmul.f32 %v3402_v5, %v3398_v3  ;;  %v1151_v3 = vpop.permute.xlu0 %1150  ;;  %v1104_v5 = vsel %vm481_vm0, %v1101_v58, %v1103_v57 }
 0x30b   : > { %v3406_v10 = vpop.eup %3405  ;;  %v1009_v11 = vmul.f32 %v3404_v8, %v4348_v19  ;;  %v971_v19 = vadd.f32 %v970_v51, %v4385_v12  ;;  %v1293_v8 = vrot.slane %v1288_v63, %v4189_v44 }
 0x30c   : > { %v1010_v24 = vmul.f32 %v3406_v10, %v4352_v21 }
 0x30d   : > { %v4393_v26 = vadd.f32 %v1013_v7, %v1009_v11  ;;  %v1154_v7 = vsel %vm533_vm1, %v1151_v3, %v1153_v2  ;;  %v1201_v11 = vpop.permute.xlu1 %1200 }
 0x30e   : > { %v4402_v31 = vadd.f32 %v1014_v9, %v1010_v24  ;;  %v1286_v9 = vrot.slane %v1281_v0, %v4189_v44  ;;  %v1199_v24 = vpop.permute.xlu0 %1198 }
 0x30f   : > { %v1017_v32 = vmul.f32 %v4393_v26, %v4390_v17 }
 0x310   : > { %v1018_v21 = vmul.f32 %v4402_v31, %v4400_v30 }
 0x311   : > { %v1019_v35 = vadd.f32 %v1017_v32, %v971_v19 }
 0x312   : > { %v1020_v36 = vadd.f32 %v1018_v21, %v973_v34 }
 0x313   : > { %v3036_v37 = vmul.f32 -1.442695, %v1019_v35 }
 0x314   : > { %v3037_v38 = vmul.f32 -1.442695, %v1020_v36  ;;  %v1251_v36 = vpop.permute.xlu1 %1250 }
 0x315   : > { %3407 = vpow2.f32 %v3036_v37  ;;  %v1249_v37 = vpop.permute.xlu0 %1248 }
 0x316   : > { %3409 = vpow2.f32 %v3037_v38 }
 0x317   : > { %3411 = vtanh.f32 %v4393_v26 }
 0x318   : > { %3413 = vtanh.f32 %v4402_v31 }
 0x31f   : > { %v3408_v39 = vpop.eup %3407 }
 0x320   : > { %v3410_v40 = vpop.eup %3409  ;;  %v1027_v41 = vadd.f32 1.0, %v3408_v39 }
 0x321   : > { %v1028_v42 = vadd.f32 1.0, %v3410_v40  ;;  %v3412_v43 = vpop.eup %3411  ;;  %v1202_v40 = vsel %vm583_vm2, %v1199_v24, %v1201_v11 }
 0x322   : > { %3415 = vrcp.f32 %v1027_v41  ;;  %v3414_v45 = vpop.eup %3413  ;;  %v1252_v41 = vsel %vm635_vm3, %v1249_v37, %v1251_v36 }
 0x323   : > { %3417 = vrcp.f32 %v1028_v42 }
 0x32c   : > { %v3416_v46 = vpop.eup %3415 }
 0x32d   : > { %v3418_v47 = vpop.eup %3417  ;;  %v1035_v48 = vmul.f32 %v3416_v46, %v3412_v43  ;;  %v1325_v43 = vpop.permute.xlu1 %1324 }
 0x32e   : > { %v1036_v49 = vmul.f32 %v3418_v47, %v3414_v45  ;;  %v1323_v45 = vpop.permute.xlu0 %1322 }
 0x32f   : > { %1052 = vst [vmem:[%s4171_s11] sm:$0xff] %v1035_v48  ;;  %v1326_v56 = vsel %vm652_vm5, %v1323_v45, %v1325_v43 }
 0x330   : > { %v3146_v50 = vpack.c.bf16 %v1036_v49, %v1035_v48  ;;  %1053 = vst [vmem:[%s4171_s11 + $0x8] sm:$0xff] %v1036_v49 }
 0x331   : > { %v1373_v49 = vpop.permute.xlu1 %1372 }
 0x332   : > { %v1046_v51 = vrot.slane %v3146_v50, 6  ;;  %v1371_v50 = vpop.permute.xlu0 %1370 }
 0x334   : > { %v1047_v53 = vrot.slane %v1046_v51, 4  ;;  %1050 = vst [vmem:[#allocation2] sm:$0xcc] %v1046_v51 }
 0x335   : > { %v1423_v59 = vpop.permute.xlu1 %1422 }
 0x336   : > { %1051 = vst [vmem:[#allocation2 + $0x8] sm:$0x33] %v1047_v53  ;;  %v1421_v60 = vpop.permute.xlu0 %1420 }
 0x33d   : > { %v4415_v62 = vld [vmem:[#allocation2] ss:$8 sps:$4 sm:$0x3f]   ;;  %v4417_v1 = vld [vmem:[#allocation2 + $0x4] ss:$8 sps:$4 sm:$0x3f]  }
 0x33e   : > { %1656 = vst [vmem:[#allocation2] sm:$0x33] %v3073_v61  ;;  %v1110_v4 = vmul.bf16 %v4417_v1, %v1103_v57  ;;  %v1109_v10 = vmul.bf16 %v4415_v62, %v1104_v5  ;;  %v1159_v19 = vmul.bf16 %v4415_v62, %v1154_v7  ;;  %v1295_v32 = vmul.bf16 %v4417_v1, %v1293_v8 }
 0x33f   : > { %v1294_v34 = vmul.bf16 %v4415_v62, %v1286_v9  ;;  %v1108_v21 = vmul.bf16 %v4417_v1, %v1101_v58  ;;  %v1158_v35 = vmul.bf16 %v4417_v1, %v1151_v3  ;;  %v1160_v38 = vmul.bf16 %v4417_v1, %v1153_v2  ;;  %v1471_v2 = vpop.permute.xlu1 %1470  ;;  %v1469_v3 = vpop.permute.xlu0 %1468 }
 0x340   : > { %1118 = vrot.lane.b32.xlu1 %v1110_v4, %s3836_s21  ;;  %1116 = vrot.lane.b32.xlu0 %v1109_v10, %s3836_s21  ;;  %1297 = vst [vmem:[#allocation4 + $0x48] sm:$0x3f] %v1295_v32  ;;  %v1208_v39 = vmul.bf16 %v4417_v1, %v1201_v11  ;;  %v1207_v42 = vmul.bf16 %v4415_v62, %v1202_v40  ;;  %v1669_v32 = vld [vmem:[#allocation14] sm:$0x11] }
 0x341   : > { %1296 = vst [vmem:[#allocation4 + $0x40] sm:$0x3f] %v1294_v34  ;;  %v1257_v46 = vmul.bf16 %v4415_v62, %v1252_v41  ;;  %v1206_v47 = vmul.bf16 %v4417_v1, %v1199_v24  ;;  %v1256_v48 = vmul.bf16 %v4417_v1, %v1249_v37  ;;  %v1258_v51 = vmul.bf16 %v4417_v1, %v1251_v36  ;;  %v1717_v34 = vld [vmem:[#allocation14] sm:$0x11] }
 0x342   : > { %v1332_v53 = vmul.bf16 %v4415_v62, %v1325_v43  ;;  %v1374_v57 = vsel %vm600_vm4, %v1371_v50, %v1373_v49  ;;  %v1331_v58 = vmul.bf16 %v4417_v1, %v1326_v56  ;;  %v1330_v63 = vmul.bf16 %v4415_v62, %v1323_v45 }
 0x343   : > { %v1379_v61 = vmul.bf16 %v4417_v1, %v1374_v57  ;;  %v1378_v0 = vmul.bf16 %v4415_v62, %v1371_v50  ;;  %v1380_v4 = vmul.bf16 %v4415_v62, %v1373_v49  ;;  %v1430_v5 = vmul.bf16 %v4415_v62, %v1423_v59 }
 0x344   : > { %1166 = vrot.lane.b32.xlu1 %v1159_v19, %s3835_s15  ;;  %1114 = vrot.lane.b32.xlu0 %v1108_v21, %s3836_s21  ;;  %v1424_v7 = vsel %vm550_vm7, %v1421_v60, %v1423_v59  ;;  %v1472_v8 = vsel %vm498_vm6, %v1469_v3, %v1471_v2  ;;  %v1428_v11 = vmul.bf16 %v4415_v62, %v1421_v60  ;;  %v1767_v21 = vld [vmem:[#allocation14] sm:$0x22] }
 0x345   : > { %v1429_v9 = vmul.bf16 %v4417_v1, %v1424_v7  ;;  %v1477_v10 = vmul.bf16 %v4417_v1, %v1472_v8  ;;  %v1476_v24 = vmul.bf16 %v4415_v62, %v1469_v3  ;;  %v1478_v19 = vmul.bf16 %v4415_v62, %v1471_v2  ;;  %v1889_v62 = vld [vmem:[#allocation14] sm:$0x44]  ;;  %v1939_v8 = vld [vmem:[#allocation14] sm:$0x88] }
 0x346   : > { %v3077_v1 = vcombine.high %v1669_v32, %v1669_v32  ;;  %v3079_v36 = vcombine.high %v1717_v34, %v1717_v34  ;;  %v3078_v37 = vcombine.low %v1717_v34, %v1717_v34  ;;  %v3080_v40 = vcombine.low %v1767_v21, %v1767_v21 }
 0x348   : > { %1164 = vrot.lane.b32.xlu1 %v1158_v35, %s3835_s15  ;;  %1168 = vrot.lane.b32.xlu0 %v1160_v38, %s3835_s15  ;;  %v3076_v35 = vcombine.low %v1669_v32, %v1669_v32  ;;  %v1815_v38 = vld [vmem:[#allocation14] sm:$0x22]  ;;  %v1683_v43 = vpack.i.b16 %v3077_v1, %v3077_v1  ;;  %v1774_v57 = vpack.i.b16 %v3080_v40, %v3080_v40 }
 0x349   : > { %v3083_v41 = vcombine.high %v1815_v38, %v1815_v38 }
 0x34a   : > { %v1676_v45 = vpack.i.b16 %v3076_v35, %v3076_v35  ;;  %v1688_v49 = vrot.slane %v1683_v43, %v4174_v16 }
 0x34c   : > { %1216 = vrot.lane.b32.xlu1 %v1208_v39, %s3834_s9  ;;  %1214 = vrot.lane.b32.xlu0 %v1207_v42, %s3834_s9  ;;  %v3081_v39 = vcombine.high %v1767_v21, %v1767_v21  ;;  %v3082_v42 = vcombine.low %v1815_v38, %v1815_v38  ;;  %v1681_v50 = vrot.slane %v1676_v45, %v4174_v16 }
 0x34e   : > { %v1781_v56 = vpack.i.b16 %v3081_v39, %v3081_v39 }
 0x350   : > { %1264 = vrot.lane.b32.xlu1 %v1257_v46, %s3833_s28  ;;  %1212 = vrot.lane.b32.xlu0 %v1206_v47, %s3834_s9  ;;  %v1732_v46 = vshrl.u32 %v3079_v36, 16  ;;  %v1724_v47 = vshrl.u32 %v3078_v37, 16  ;;  %v1786_v3 = vrot.slane %v1781_v56, %v4181_v29 }
 0x354   : > { %1262 = vrot.lane.b32.xlu1 %v1256_v48, %s3833_s28  ;;  %1266 = vrot.lane.b32.xlu0 %v1258_v51, %s3833_s28  ;;  %v1830_v48 = vshrl.u32 %v3083_v41, 16  ;;  %v1733_v51 = vpack.i.b16 %v1732_v46, %v1732_v46  ;;  %v2037_v41 = vld [vmem:[#allocation14 + $0x8] sm:$0x11] }
 0x355   : > { %v3093_v43 = vcombine.high %v2037_v41, %v2037_v41  ;;  %v3092_v45 = vcombine.low %v2037_v41, %v2037_v41 }
 0x356   : > { %v1738_v59 = vrot.slane %v1733_v51, %v4174_v16 }
 0x357   : > { %v2044_v51 = vpack.i.b16 %v3092_v45, %v3092_v45 }
 0x358   : > { %1340 = vrot.lane.b32.xlu1 %v1332_v53, %s3832_s20  ;;  %1338 = vrot.lane.b32.xlu0 %v1331_v58, %s3832_s20  ;;  %v1725_v53 = vpack.i.b16 %v1724_v47, %v1724_v47  ;;  %v1822_v58 = vshrl.u32 %v3082_v42, 16 }
 0x359   : > { %v2049_v56 = vrot.slane %v2044_v51, %v4174_v16 }
 0x35a   : > { %v1730_v60 = vrot.slane %v1725_v53, %v4174_v16  ;;  %v1823_v2 = vpack.i.b16 %v1822_v58, %v1822_v58 }
 0x35c   : > { %1386 = vrot.lane.b32.xlu1 %v1379_v61, %s3831_s14  ;;  %1336 = vrot.lane.b32.xlu0 %v1330_v63, %s3832_s20  ;;  %v3087_v61 = vcombine.high %v1889_v62, %v1889_v62  ;;  %v3086_v63 = vcombine.low %v1889_v62, %v1889_v62  ;;  %v2051_v62 = vpack.i.b16 %v3093_v43, %v3093_v43 }
 0x35e   : > { %v1896_v7 = vshrl.u32 %v3086_v63, 16  ;;  %v2056_v53 = vrot.slane %v2051_v62, %v4174_v16 }
 0x360   : > { %1384 = vrot.lane.b32.xlu1 %v1378_v0, %s3831_s14  ;;  %1388 = vrot.lane.b32.xlu0 %v1380_v4, %s3831_s14  ;;  %v1831_v0 = vpack.i.b16 %v1830_v48, %v1830_v48  ;;  %v1779_v4 = vrot.slane %v1774_v57, %v4181_v29  ;;  %v1897_v21 = vpack.i.b16 %v1896_v7, %v1896_v7 }
 0x362   : > { %v1902_v38 = vrot.slane %v1897_v21, %v4189_v44 }
 0x364   : > { %1438 = vrot.lane.b32.xlu1 %v1430_v5, %s3830_s3  ;;  %1436 = vrot.lane.b32.xlu0 %v1429_v9, %s3830_s3  ;;  %v1904_v5 = vshrl.u32 %v3087_v61, 16  ;;  %v1987_v9 = vld [vmem:[#allocation14] sm:$0x88] }
 0x365   : > { %v3091_v32 = vcombine.high %v1987_v9, %v1987_v9  ;;  %v3090_v1 = vcombine.low %v1987_v9, %v1987_v9 }
 0x366   : > { %v1905_v34 = vpack.i.b16 %v1904_v5, %v1904_v5 }
 0x367   : > { %v2002_v39 = vshrl.u32 %v3091_v32, 16  ;;  %v1994_v40 = vshrl.u32 %v3090_v1, 16 }
 0x368   : > { %1484 = vrot.lane.b32.xlu1 %v1477_v10, %s3829_s10  ;;  %1434 = vrot.lane.b32.xlu0 %v1428_v11, %s3830_s3  ;;  %v1836_v10 = vrot.slane %v1831_v0, %v4181_v29  ;;  %v1828_v11 = vrot.slane %v1823_v2, %v4181_v29  ;;  %v1910_v37 = vrot.slane %v1905_v34, %v4189_v44 }
 0x369   : > { %v2003_v47 = vpack.i.b16 %v2002_v39, %v2002_v39  ;;  %v1995_v48 = vpack.i.b16 %v1994_v40, %v1994_v40 }
 0x36c   : > { %1482 = vrot.lane.b32.xlu1 %v1476_v24, %s3829_s10  ;;  %1486 = vrot.lane.b32.xlu0 %v1478_v19, %s3829_s10  ;;  %v3089_v24 = vcombine.high %v1939_v8, %v1939_v8  ;;  %v3088_v19 = vcombine.low %v1939_v8, %v1939_v8 }
 0x36e   : > { %v1953_v35 = vpack.i.b16 %v3089_v24, %v3089_v24  ;;  %v1946_v36 = vpack.i.b16 %v3088_v19, %v3088_v19 }
 0x370   : > { %1693 = vrot.lane.b32.xlu1 %v1688_v49, %s3829_s10  ;;  %1691 = vrot.lane.b32.xlu0 %v1681_v50, %s3829_s10  ;;  %v1958_v42 = vrot.slane %v1953_v35, %v4197_v54  ;;  %v1951_v46 = vrot.slane %v1946_v36, %v4197_v54  ;;  %v2008_v49 = vrot.slane %v2003_v47, %v4197_v54 }
 0x371   : > { %v2000_v50 = vrot.slane %v1995_v48, %v4197_v54 }
 0x374   : > { %1743 = vrot.lane.b32.xlu1 %v1738_v59, %s3830_s3  ;;  %1741 = vrot.lane.b32.xlu0 %v1730_v60, %s3830_s3 }
 0x378   : > { %1791 = vrot.lane.b32.xlu1 %v1786_v3, %s3831_s14  ;;  %1789 = vrot.lane.b32.xlu0 %v1779_v4, %s3831_s14 }
 0x37c   : > { %1841 = vrot.lane.b32.xlu1 %v1836_v10, %s3832_s20  ;;  %1839 = vrot.lane.b32.xlu0 %v1828_v11, %s3832_s20 }
 0x380   : > { %1915 = vrot.lane.b32.xlu1 %v1910_v37, %s3833_s28  ;;  %1913 = vrot.lane.b32.xlu0 %v1902_v38, %s3833_s28 }
 0x384   : > { %1963 = vrot.lane.b32.xlu1 %v1958_v42, %s3834_s9  ;;  %1961 = vrot.lane.b32.xlu0 %v1951_v46, %s3834_s9 }
 0x388   : > { %2013 = vrot.lane.b32.xlu1 %v2008_v49, %s3835_s15  ;;  %2011 = vrot.lane.b32.xlu0 %v2000_v50, %s3835_s15  ;;  %v1503_v49 = vld [vmem:[#allocation4 + $0x48] sm:$0xff] }
 0x38c   : > { %2061 = vrot.lane.b32.xlu1 %v2056_v53, %s3836_s21  ;;  %2059 = vrot.lane.b32.xlu0 %v2049_v56, %s3836_s21  ;;  %v1502_v56 = vld [vmem:[#allocation4 + $0x40] sm:$0xff] }
 0x3b2   : > { %v1119_v57 = vpop.permute.xlu1 %1118  ;;  %v1117_v58 = vpop.permute.xlu0 %1116 }
 0x3b3   : > { %v1121_v59 = vsel %vm498_vm6, %v1117_v58, %v1119_v57 }
 0x3b4   : > { %1125 = vst [vmem:[#allocation4 + $0x8] sm:$0x3f] %v1121_v59 }
 0x3b6   : > { %v1167_v60 = vpop.permute.xlu1 %1166  ;;  %v1115_v61 = vpop.permute.xlu0 %1114 }
 0x3b7   : > { %v1120_v63 = vsel %vm498_vm6, %v1115_v61, %v1117_v58 }
 0x3b8   : > { %1124 = vst [vmem:[#allocation4] sm:$0x3f] %v1120_v63 }
 0x3ba   : > { %v1165_v0 = vpop.permute.xlu1 %1164  ;;  %v1169_v3 = vpop.permute.xlu0 %1168 }
 0x3bb   : > { %v1170_v2 = vsel %vm550_vm7, %v1165_v0, %v1167_v60  ;;  %v1171_v4 = vsel %vm550_vm7, %v1167_v60, %v1169_v3  ;;  %v1495_v5 = vld [vmem:[#allocation4 + $0x8] sm:$0xff] }
 0x3bc   : > { %1174 = vst [vmem:[#allocation4 + $0x10] sm:$0x3f] %v1170_v2  ;;  %1175 = vst [vmem:[#allocation4 + $0x18] sm:$0x3f] %v1171_v4  ;;  %1512 = vmatprep.subr.bf16.mxu1 %v1495_v5 }
 0x3be   : > { %v1217_v7 = vpop.permute.xlu1 %1216  ;;  %v1215_v8 = vpop.permute.xlu0 %1214 }
 0x3bf   : > { %v1219_v9 = vsel %vm600_vm4, %v1215_v8, %v1217_v7  ;;  %v1494_v10 = vld [vmem:[#allocation4] sm:$0xff] }
 0x3c0   : > { %1223 = vst [vmem:[#allocation4 + $0x28] sm:$0x3f] %v1219_v9  ;;  %1513 = vmatpush1.bf16.msra.mxu1 %v1494_v10 }
 0x3c2   : > { %v1265_v11 = vpop.permute.xlu1 %1264  ;;  %v1213_v24 = vpop.permute.xlu0 %1212 }
 0x3c3   : > { %v1496_v19 = vld [vmem:[#allocation4 + $0x10] sm:$0xff]  ;;  %v1218_v32 = vsel %vm600_vm4, %v1213_v24, %v1215_v8  ;;  %v1497_v34 = vld [vmem:[#allocation4 + $0x18] sm:$0xff] }
 0x3c4   : > { %1222 = vst [vmem:[#allocation4 + $0x20] sm:$0x3f] %v1218_v32  ;;  %1514 = vmatprep.subr.bf16.mxu1 %v1497_v34 }
 0x3c5   : > { %1515 = vmatpush1.bf16.msra.mxu1 %v1496_v19  ;;  %v3515_v19 = vld [vmem:[#allocation8 + $0x4] ss:$8 sps:$4 sm:$0xff]  }
 0x3c6   : > { %v1263_v21 = vpop.permute.xlu1 %1262  ;;  %v1267_v35 = vpop.permute.xlu0 %1266 }
 0x3c7   : > { %v1268_v1 = vsel %vm652_vm5, %v1263_v21, %v1265_v11  ;;  %v1269_v36 = vsel %vm652_vm5, %v1265_v11, %v1267_v35  ;;  %v1499_v37 = vld [vmem:[#allocation4 + $0x28] sm:$0xff]  ;;  %v1567_v21 = vmul.f32 %v4393_v26, %v4346_v18  ;;  %v1584_v18 = vmul.f32 %v4402_v31, %v4362_v6 }
 0x3c8   : > { %1272 = vst [vmem:[#allocation4 + $0x30] sm:$0x3f] %v1268_v1  ;;  %1273 = vst [vmem:[#allocation4 + $0x38] sm:$0x3f] %v1269_v36  ;;  %1516 = vmatprep.subr.bf16.mxu1 %v1499_v37 }
 0x3ca   : > { %v1341_v38 = vpop.permute.xlu1 %1340  ;;  %v1339_v39 = vpop.permute.xlu0 %1338 }
 0x3cb   : > { %v1343_v40 = vsel %vm635_vm3, %v1339_v39, %v1341_v38  ;;  %v1498_v41 = vld [vmem:[#allocation4 + $0x20] sm:$0xff] }
 0x3cc   : > { %1347 = vst [vmem:[#allocation4 + $0x58] sm:$0x3f] %v1343_v40  ;;  %1517 = vmatpush1.bf16.msra.mxu1 %v1498_v41 }
 0x3ce   : > { %v1387_v42 = vpop.permute.xlu1 %1386  ;;  %v1337_v43 = vpop.permute.xlu0 %1336 }
 0x3cf   : > { %v1500_v45 = vld [vmem:[#allocation4 + $0x30] sm:$0xff]  ;;  %v1342_v46 = vsel %vm635_vm3, %v1337_v43, %v1339_v39  ;;  %v1501_v47 = vld [vmem:[#allocation4 + $0x38] sm:$0xff] }
 0x3d0   : > { %1346 = vst [vmem:[#allocation4 + $0x50] sm:$0x3f] %v1342_v46  ;;  %1518 = vmatprep.subr.bf16.mxu1 %v1501_v47 }
 0x3d1   : > { %1519 = vmatpush1.bf16.msra.mxu1 %v1500_v45 }
 0x3d2   : > { %v1385_v48 = vpop.permute.xlu1 %1384  ;;  %1520 = vmatprep.subr.bf16.mxu1 %v1503_v49  ;;  %v1389_v50 = vpop.permute.xlu0 %1388 }
 0x3d3   : > { %v1390_v62 = vsel %vm583_vm2, %v1385_v48, %v1387_v42  ;;  %v1391_v51 = vsel %vm583_vm2, %v1387_v42, %v1389_v50  ;;  %v1505_v57 = vld [vmem:[#allocation4 + $0x58] sm:$0xff] }
 0x3d4   : > { %1394 = vst [vmem:[#allocation4 + $0x60] sm:$0x3f] %v1390_v62  ;;  %1395 = vst [vmem:[#allocation4 + $0x68] sm:$0x3f] %v1391_v51 }
 0x3d5   : > { %1521 = vmatpush1.bf16.msra.mxu1 %v1502_v56 }
 0x3d6   : > { %v1439_v53 = vpop.permute.xlu1 %1438  ;;  %1522 = vmatprep.subr.bf16.mxu1 %v1505_v57  ;;  %v1437_v58 = vpop.permute.xlu0 %1436 }
 0x3d7   : > { %v1441_v59 = vsel %vm533_vm1, %v1437_v58, %v1439_v53  ;;  %v1504_v60 = vld [vmem:[#allocation4 + $0x50] sm:$0xff] }
 0x3d8   : > { %1445 = vst [vmem:[#allocation4 + $0x78] sm:$0x3f] %v1441_v59 }
 0x3d9   : > { %1523 = vmatpush1.bf16.msra.mxu1 %v1504_v60 }
 0x3da   : > { %v1485_v61 = vpop.permute.xlu1 %1484  ;;  %v1435_v63 = vpop.permute.xlu0 %1434 }
 0x3db   : > { %v1506_v0 = vld [vmem:[#allocation4 + $0x60] sm:$0xff]  ;;  %v1440_v2 = vsel %vm533_vm1, %v1435_v63, %v1437_v58  ;;  %v1507_v3 = vld [vmem:[#allocation4 + $0x68] sm:$0xff] }
 0x3dc   : > { %1444 = vst [vmem:[#allocation4 + $0x70] sm:$0x3f] %v1440_v2  ;;  %1524 = vmatprep.subr.bf16.mxu1 %v1507_v3 }
 0x3dd   : > { %1525 = vmatpush1.bf16.msra.mxu1 %v1506_v0 }
 0x3de   : > { %v1483_v4 = vpop.permute.xlu1 %1482  ;;  %v1487_v7 = vpop.permute.xlu0 %1486 }
 0x3df   : > { %v1488_v5 = vsel %vm481_vm0, %v1483_v4, %v1485_v61  ;;  %v1489_v8 = vsel %vm481_vm0, %v1485_v61, %v1487_v7  ;;  %v1509_v9 = vld [vmem:[#allocation4 + $0x78] sm:$0xff] }
 0x3e0   : > { %1492 = vst [vmem:[#allocation4 + $0x80] sm:$0x3f] %v1488_v5  ;;  %1493 = vst [vmem:[#allocation4 + $0x88] sm:$0x3f] %v1489_v8  ;;  %1526 = vmatprep.subr.bf16.mxu1 %v1509_v9 }
 0x3e3   : > { %v1508_v10 = vld [vmem:[#allocation4 + $0x70] sm:$0xff] }
 0x3e4   : > { %1527 = vmatpush1.bf16.msra.mxu1 %v1508_v10 }
 0x3e7   : > { %v1510_v11 = vld [vmem:[#allocation4 + $0x80] sm:$0xff]  ;;  %v1511_v24 = vld [vmem:[#allocation4 + $0x88] sm:$0xff] }
 0x3e8   : > { %1528 = vmatprep.subr.bf16.mxu1 %v1511_v24 }
 0x3e9   : > { %1529 = vmatpush1.bf16.msra.mxu1 %v1510_v11 }
 0x3ec   : > { %1545 = vmatmul.mubr.bf16.vlgmr.msra.gmra.mrb[0].mxu1 %v4333_v13  ;;  %v1568_v13 = vmul.f32 %v4402_v31, %v4350_v20 }
 0x3ed   : > { %3062 = vmatprep.mubr.msk.bf16.mxu1 %vm550_vm7, %v4335_v14 }
 0x3f4   : > { %1555 = vmatmul.mubr.bf16.gmra.mrb[4].mxu1 %v4340_v15  ;;  %v1583_v15 = vmul.f32 %v4393_v26, %v4356_v23 }
 0x3f5   : > { %3127 = vmatprep.mubr.msk.bf16.mxu1 %vm550_vm7, %v3515_v19 }
 0x4bf   : > { %v1546_v32 = vpop.f32.mrb[0].mxu1 }
 0x4c0   : > { %v1547_v34 = vadd.f32 %v1546_v32, %v4354_v22  ;;  %v1548_v1 = vpop.f32.mrb[1].mxu1 }
 0x4c1   : > { %v1549_v35 = vadd.f32 %v1548_v1, %v4360_v25  ;;  %v1550_v36 = vpop.f32.mrb[2].mxu1 }
 0x4c2   : > { %v1569_v37 = vadd.f32 %v1567_v21, %v1547_v34  ;;  %v1551_v14 = vadd.f32 %v1550_v36, %v4366_v28  ;;  %v1552_v38 = vpop.f32.mrb[3].mxu1 }
 0x4c3   : > { %v1570_v39 = vadd.f32 %v1568_v13, %v1549_v35  ;;  %v1553_v22 = vadd.f32 %v1552_v38, %v4371_v33 }
 0x4c4   : > { %v3063_v40 = vmul.f32 -1.442695, %v1569_v37  ;;  %v1585_v41 = vadd.f32 %v1583_v15, %v1551_v14  ;;  %v1865_v37 = vld [vmem:[#allocation14] sm:$0x44]  ;;  %v1694_v14 = vpop.permute.xlu1 %1693  ;;  %v1692_v15 = vpop.permute.xlu0 %1691 }
 0x4c5   : > { %v3064_v25 = vmul.f32 -1.442695, %v1570_v39  ;;  %v1586_v42 = vadd.f32 %v1584_v18, %v1553_v22  ;;  %v3085_v38 = vcombine.high %v1865_v37, %v1865_v37  ;;  %v3084_v39 = vcombine.low %v1865_v37, %v1865_v37  ;;  %v3106_v22 = vld.sshfl [vmem:[%s4152_s13 + $0xc] sm:$0x33 pattern:$0x76325410] }
 0x4c6   : > { %3419 = vpow2.f32 %v3063_v40  ;;  %v3065_v20 = vmul.f32 -1.442695, %v1585_v41  ;;  %v1695_v18 = vsel %vm481_vm0, %v1692_v15, %v1694_v14 }
 0x4c7   : > { %3421 = vpow2.f32 %v3064_v25  ;;  %v3066_v43 = vmul.f32 -1.442695, %v1586_v42  ;;  %v1556_v45 = vpop.f32.mrb[4].mxu1  ;;  %v1879_v41 = vpack.i.b16 %v3085_v38, %v3085_v38  ;;  %v1872_v25 = vpack.i.b16 %v3084_v39, %v3084_v39  ;;  %v2308_v38 = vld [vmem:[#allocation14] sm:$0x11] }
 0x4c8   : > { %3423 = vpow2.f32 %v3065_v20  ;;  %v1558_v28 = vpop.f32.mrb[5].mxu1  ;;  %v1557_v47 = vadd.f32 %v1556_v45, %v4378_v52  ;;  %v1744_v20 = vpop.permute.xlu1 %1743  ;;  %v2358_v39 = vld [vmem:[#allocation14] sm:$0x22] }
 0x4c9   : > { %3425 = vpow2.f32 %v3066_v43  ;;  %v1560_v23 = vpop.f32.mrb[6].mxu1  ;;  %v1559_v33 = vadd.f32 %v1558_v28, %v4380_v55  ;;  %v1742_v43 = vpop.permute.xlu0 %1741 }
 0x4ca   : > { %v1562_v46 = vpop.f32.mrb[7].mxu1  ;;  %3427 = vtanh.f32 %v1557_v47  ;;  %v1561_v5 = vadd.f32 %v1560_v23, %v4385_v12  ;;  %v1745_v23 = vsel %vm533_vm1, %v1742_v43, %v1744_v20  ;;  %v1877_v47 = vrot.slane %v1872_v25, %v4189_v44 }
 0x4cb   : > { %3429 = vtanh.f32 %v1559_v33  ;;  %v1563_v8 = vadd.f32 %v1562_v46, %v4395_v27  ;;  %v1884_v46 = vrot.slane %v1879_v41, %v4189_v44  ;;  %v3111_v41 = vcombine.low %v2308_v38, %v2308_v38 }
 0x4cc   : > { %v3112_v25 = vcombine.high %v2308_v38, %v2308_v38 }
 0x4d0   : > { %v3420_v48 = vpop.eup %3419 }
 0x4d1   : > { %v3422_v6 = vpop.eup %3421  ;;  %v1577_v62 = vadd.f32 1.0, %v3420_v48 }
 0x4d2   : > { %v3424_v49 = vpop.eup %3423  ;;  %v1578_v50 = vadd.f32 1.0, %v3422_v6  ;;  %v1792_v6 = vpop.permute.xlu1 %1791 }
 0x4d3   : > { %v3426_v51 = vpop.eup %3425  ;;  %3431 = vrcp.f32 %v1577_v62  ;;  %v1593_v53 = vadd.f32 1.0, %v3424_v49  ;;  %v1790_v62 = vpop.permute.xlu0 %1789 }
 0x4d4   : > { %3433 = vrcp.f32 %v1578_v50  ;;  %v1594_v56 = vadd.f32 1.0, %v3426_v51  ;;  %v3428_v57 = vpop.eup %3427 }
 0x4d5   : > { %3435 = vrcp.f32 %v1593_v53  ;;  %v3430_v58 = vpop.eup %3429 }
 0x4d6   : > { %3437 = vrcp.f32 %v1594_v56  ;;  %v1793_v56 = vsel %vm583_vm2, %v1790_v62, %v1792_v6 }
 0x4dd   : > { %v3432_v59 = vpop.eup %3431 }
 0x4de   : > { %v3434_v52 = vpop.eup %3433  ;;  %v1603_v60 = vmul.f32 %v3432_v59, %v3428_v57  ;;  %v1842_v57 = vpop.permute.xlu1 %1841 }
 0x4df   : > { %v3436_v55 = vpop.eup %3435  ;;  %v1604_v61 = vmul.f32 %v3434_v52, %v3430_v58  ;;  %v1840_v58 = vpop.permute.xlu0 %1839 }
 0x4e0   : > { %v3438_v63 = vpop.eup %3437  ;;  %v1599_v0 = vmul.f32 %v3436_v55, %v4393_v26 }
 0x4e1   : > { %v1600_v2 = vmul.f32 %v3438_v63, %v4402_v31 }
 0x4e2   : > { %v4548_v3 = vadd.f32 %v1603_v60, %v1599_v0  ;;  %v1843_v60 = vsel %vm635_vm3, %v1840_v58, %v1842_v57  ;;  %v1916_v63 = vpop.permute.xlu1 %1915 }
 0x4e3   : > { %v4550_v4 = vadd.f32 %v1604_v61, %v1600_v2  ;;  %v1914_v0 = vpop.permute.xlu0 %1913 }
 0x4e4   : > { %v1607_v7 = vmul.f32 %v4548_v3, %v4390_v17 }
 0x4e5   : > { %v1608_v9 = vmul.f32 %v4550_v4, %v4400_v30 }
 0x4e6   : > { %v1609_v10 = vadd.f32 %v1607_v7, %v1561_v5  ;;  %v1917_v7 = vsel %vm652_vm5, %v1914_v0, %v1916_v63 }
 0x4e7   : > { %v1610_v11 = vadd.f32 %v1608_v9, %v1563_v8  ;;  %v1964_v8 = vpop.permute.xlu1 %1963  ;;  %v1962_v9 = vpop.permute.xlu0 %1961 }
 0x4e8   : > { %v3067_v24 = vmul.f32 -1.442695, %v1609_v10 }
 0x4e9   : > { %v3068_v26 = vmul.f32 -1.442695, %v1610_v11 }
 0x4ea   : > { %3439 = vpow2.f32 %v3067_v24  ;;  %v1965_v24 = vsel %vm600_vm4, %v1962_v9, %v1964_v8 }
 0x4eb   : > { %3441 = vpow2.f32 %v3068_v26 }
 0x4ec   : > { %3443 = vtanh.f32 %v4548_v3 }
 0x4ed   : > { %3445 = vtanh.f32 %v4550_v4 }
 0x4f4   : > { %v3440_v31 = vpop.eup %3439 }
 0x4f5   : > { %v3442_v19 = vpop.eup %3441  ;;  %v1617_v32 = vadd.f32 1.0, %v3440_v31 }
 0x4f6   : > { %v1618_v12 = vadd.f32 1.0, %v3442_v19  ;;  %v3444_v17 = vpop.eup %3443  ;;  %v2014_v19 = vpop.permute.xlu1 %2013 }
 0x4f7   : > { %3447 = vrcp.f32 %v1617_v32  ;;  %v3446_v27 = vpop.eup %3445  ;;  %v2012_v32 = vpop.permute.xlu0 %2011 }
 0x4f8   : > { %3449 = vrcp.f32 %v1618_v12 }
 0x501   : > { %v3448_v30 = vpop.eup %3447 }
 0x502   : > { %v3450_v34 = vpop.eup %3449  ;;  %v1625_v21 = vmul.f32 %v3448_v30, %v3444_v17  ;;  %v2062_v30 = vpop.permute.xlu1 %2061 }
 0x503   : > { %v1626_v1 = vmul.f32 %v3450_v34, %v3446_v27  ;;  %v2015_v27 = vsel %vm550_vm7, %v2012_v32, %v2014_v19  ;;  %v2060_v34 = vpop.permute.xlu0 %2059 }
 0x504   : > { %3070 = vst [vmem:[%s4171_s11 + $0x10] sm:$0xff] %v1625_v21 }
 0x505   : > { %v3147_v35 = vpack.c.bf16 %v1626_v1, %v1625_v21  ;;  %3071 = vst [vmem:[%s4171_s11 + $0x18] sm:$0xff] %v1626_v1 }
 0x507   : > { %v1636_v13 = vrot.slane %v3147_v35, 6  ;;  %v2063_v35 = vsel %vm498_vm6, %v2060_v34, %v2062_v30 }
 0x509   : > { %v1637_v36 = vrot.slane %v1636_v13, 4  ;;  %1640 = vst [vmem:[#allocation2] sm:$0xcc] %v1636_v13 }
 0x50b   : > { %1641 = vst [vmem:[#allocation2 + $0x8] sm:$0x33] %v1637_v36 }
 0x512   : > { %v4564_v40 = vld [vmem:[#allocation2] ss:$8 sps:$4 sm:$0x3f]   ;;  %v4566_v42 = vld [vmem:[#allocation2 + $0x4] ss:$8 sps:$4 sm:$0x3f]  }
 0x513   : > { %2247 = vst [vmem:[#allocation2] sm:$0x33] %v3106_v22  ;;  %v1700_v45 = vmul.bf16 %v4564_v40, %v1695_v18  ;;  %v1701_v28 = vmul.bf16 %v4566_v42, %v1694_v14  ;;  %v1699_v33 = vmul.bf16 %v4566_v42, %v1692_v15  ;;  %v1750_v48 = vmul.bf16 %v4564_v40, %v1745_v23  ;;  %v2260_v15 = vld [vmem:[#allocation14] sm:$0x11] }
 0x514   : > { %v1886_v49 = vmul.bf16 %v4566_v42, %v1884_v46  ;;  %v1885_v50 = vmul.bf16 %v4564_v40, %v1877_v47  ;;  %v1751_v51 = vmul.bf16 %v4566_v42, %v1744_v20  ;;  %v1749_v53 = vmul.bf16 %v4566_v42, %v1742_v43 }
 0x515   : > { %1707 = vrot.lane.b32.xlu0 %v1700_v45, %s3836_s21  ;;  %1709 = vrot.lane.b32.xlu1 %v1701_v28, %s3836_s21  ;;  %v1798_v59 = vmul.bf16 %v4564_v40, %v1793_v56  ;;  %v1799_v52 = vmul.bf16 %v4566_v42, %v1792_v6  ;;  %v1797_v55 = vmul.bf16 %v4566_v42, %v1790_v62  ;;  %v2315_v47 = vshrl.u32 %v3111_v41, 16 }
 0x516   : > { %1888 = vst [vmem:[#allocation4 + $0x48] sm:$0x3f] %v1886_v49  ;;  %1887 = vst [vmem:[#allocation4 + $0x40] sm:$0x3f] %v1885_v50  ;;  %v1848_v61 = vmul.bf16 %v4564_v40, %v1843_v60  ;;  %v1849_v2 = vmul.bf16 %v4566_v42, %v1842_v57  ;;  %v1847_v5 = vmul.bf16 %v4566_v42, %v1840_v58 }
 0x517   : > { %v1922_v10 = vmul.bf16 %v4566_v42, %v1917_v7  ;;  %v1923_v11 = vmul.bf16 %v4564_v40, %v1916_v63  ;;  %v1921_v26 = vmul.bf16 %v4564_v40, %v1914_v0  ;;  %v1970_v31 = vmul.bf16 %v4566_v42, %v1965_v24  ;;  %v2578_v7 = vld [vmem:[#allocation14] sm:$0x88] }
 0x518   : > { %v1971_v12 = vmul.bf16 %v4564_v40, %v1964_v8  ;;  %v1969_v17 = vmul.bf16 %v4564_v40, %v1962_v9  ;;  %v2020_v21 = vmul.bf16 %v4566_v42, %v2015_v27  ;;  %v2021_v1 = vmul.bf16 %v4564_v40, %v2014_v19 }
 0x519   : > { %1705 = vrot.lane.b32.xlu0 %v1699_v33, %s3836_s21  ;;  %1757 = vrot.lane.b32.xlu1 %v1750_v48, %s3835_s15  ;;  %v2019_v13 = vmul.bf16 %v4564_v40, %v2012_v32  ;;  %v2068_v36 = vmul.bf16 %v4566_v42, %v2063_v35  ;;  %v2069_v37 = vmul.bf16 %v4564_v40, %v2062_v30  ;;  %v2406_v42 = vld [vmem:[#allocation14] sm:$0x22]  ;;  %v2480_v48 = vld [vmem:[#allocation14] sm:$0x44] }
 0x51a   : > { %v2067_v14 = vmul.bf16 %v4564_v40, %v2060_v34  ;;  %v3109_v22 = vcombine.low %v2260_v15, %v2260_v15  ;;  %v3110_v18 = vcombine.high %v2260_v15, %v2260_v15  ;;  %v3113_v20 = vcombine.low %v2358_v39, %v2358_v39  ;;  %v2628_v34 = vld [vmem:[#allocation14 + $0x8] sm:$0x11] }
 0x51b   : > { %v3114_v43 = vcombine.high %v2358_v39, %v2358_v39  ;;  %v3115_v45 = vcombine.low %v2406_v42, %v2406_v42  ;;  %v3116_v28 = vcombine.high %v2406_v42, %v2406_v42  ;;  %v2323_v40 = vshrl.u32 %v3112_v25, 16 }
 0x51c   : > { %v2267_v23 = vpack.i.b16 %v3109_v22, %v3109_v22  ;;  %v2274_v46 = vpack.i.b16 %v3110_v18, %v3110_v18  ;;  %v2316_v49 = vpack.i.b16 %v2315_v47, %v2315_v47  ;;  %v3123_v24 = vcombine.low %v2578_v7, %v2578_v7 }
 0x51d   : > { %1759 = vrot.lane.b32.xlu0 %v1751_v51, %s3835_s15  ;;  %1755 = vrot.lane.b32.xlu1 %v1749_v53, %s3835_s15  ;;  %v2413_v33 = vshrl.u32 %v3115_v45, 16  ;;  %v2324_v50 = vpack.i.b16 %v2323_v40, %v2323_v40  ;;  %v2365_v51 = vpack.i.b16 %v3113_v20, %v3113_v20  ;;  %v2372_v53 = vpack.i.b16 %v3114_v43, %v3114_v43 }
 0x51e   : > { %v2272_v6 = vrot.slane %v2267_v23, %v4174_v16  ;;  %v2279_v62 = vrot.slane %v2274_v46, %v4174_v16  ;;  %v2421_v56 = vshrl.u32 %v3116_v28, 16  ;;  %v2321_v57 = vrot.slane %v2316_v49, %v4174_v16 }
 0x51f   : > { %v2329_v58 = vrot.slane %v2324_v50, %v4174_v16  ;;  %v2414_v60 = vpack.i.b16 %v2413_v33, %v2413_v33  ;;  %v2377_v63 = vrot.slane %v2372_v53, %v4181_v29  ;;  %v3124_v19 = vcombine.high %v2578_v7, %v2578_v7 }
 0x520   : > { %v2585_v27 = vshrl.u32 %v3123_v24, 16  ;;  %v3126_v35 = vcombine.high %v2628_v34, %v2628_v34 }
 0x521   : > { %1805 = vrot.lane.b32.xlu0 %v1798_v59, %s3834_s9  ;;  %1807 = vrot.lane.b32.xlu1 %v1799_v52, %s3834_s9  ;;  %v3119_v59 = vcombine.low %v2480_v48, %v2480_v48  ;;  %v3120_v52 = vcombine.high %v2480_v48, %v2480_v48  ;;  %v2419_v8 = vrot.slane %v2414_v60, %v4181_v29  ;;  %v2593_v30 = vshrl.u32 %v3124_v19, 16 }
 0x522   : > { %v2642_v39 = vpack.i.b16 %v3126_v35, %v3126_v35 }
 0x523   : > { %v2487_v0 = vshrl.u32 %v3119_v59, 16 }
 0x524   : > { %v2647_v18 = vrot.slane %v2642_v39, %v4174_v16  ;;  %v4675_v39 = vld [vmem:[#allocation8] ss:$8 sps:$4 sm:$0xff]  }
 0x525   : > { %1803 = vrot.lane.b32.xlu0 %v1797_v55, %s3834_s9  ;;  %1855 = vrot.lane.b32.xlu1 %v1848_v61, %s3833_s28  ;;  %v2422_v55 = vpack.i.b16 %v2421_v56, %v2421_v56  ;;  %v2370_v61 = vrot.slane %v2365_v51, %v4181_v29 }
 0x527   : > { %v2427_v9 = vrot.slane %v2422_v55, %v4181_v29 }
 0x529   : > { %1857 = vrot.lane.b32.xlu0 %v1849_v2, %s3833_s28  ;;  %1853 = vrot.lane.b32.xlu1 %v1847_v5, %s3833_s28  ;;  %v2495_v2 = vshrl.u32 %v3120_v52, 16  ;;  %v2530_v5 = vld [vmem:[#allocation14] sm:$0x88] }
 0x52d   : > { %1929 = vrot.lane.b32.xlu0 %v1922_v10, %s3832_s20  ;;  %1931 = vrot.lane.b32.xlu1 %v1923_v11, %s3832_s20  ;;  %v3121_v10 = vcombine.low %v2530_v5, %v2530_v5  ;;  %v3122_v11 = vcombine.high %v2530_v5, %v2530_v5 }
 0x52f   : > { %v2537_v32 = vpack.i.b16 %v3121_v10, %v3121_v10 }
 0x531   : > { %1927 = vrot.lane.b32.xlu0 %v1921_v26, %s3832_s20  ;;  %1977 = vrot.lane.b32.xlu1 %v1970_v31, %s3831_s14  ;;  %v2488_v26 = vpack.i.b16 %v2487_v0, %v2487_v0  ;;  %v2496_v31 = vpack.i.b16 %v2495_v2, %v2495_v2 }
 0x533   : > { %v2501_v29 = vrot.slane %v2496_v31, %v4189_v44 }
 0x535   : > { %1979 = vrot.lane.b32.xlu0 %v1971_v12, %s3831_s14  ;;  %1975 = vrot.lane.b32.xlu1 %v1969_v17, %s3831_s14  ;;  %v2544_v12 = vpack.i.b16 %v3122_v11, %v3122_v11  ;;  %v2493_v17 = vrot.slane %v2488_v26, %v4189_v44  ;;  %v2093_v26 = vld [vmem:[#allocation4 + $0x40] sm:$0xff] }
 0x539   : > { %2027 = vrot.lane.b32.xlu0 %v2020_v21, %s3830_s3  ;;  %2029 = vrot.lane.b32.xlu1 %v2021_v1, %s3830_s3  ;;  %v2542_v21 = vrot.slane %v2537_v32, %v4197_v54  ;;  %v3125_v1 = vcombine.low %v2628_v34, %v2628_v34 }
 0x53d   : > { %2025 = vrot.lane.b32.xlu0 %v2019_v13, %s3830_s3  ;;  %2075 = vrot.lane.b32.xlu1 %v2068_v36, %s3829_s10  ;;  %v2549_v13 = vrot.slane %v2544_v12, %v4197_v54  ;;  %v2586_v36 = vpack.i.b16 %v2585_v27, %v2585_v27 }
 0x53f   : > { %v2591_v15 = vrot.slane %v2586_v36, %v4197_v54 }
 0x541   : > { %2077 = vrot.lane.b32.xlu0 %v2069_v37, %s3829_s10  ;;  %2073 = vrot.lane.b32.xlu1 %v2067_v14, %s3829_s10  ;;  %v2594_v37 = vpack.i.b16 %v2593_v30, %v2593_v30  ;;  %v2635_v14 = vpack.i.b16 %v3125_v1, %v3125_v1 }
 0x543   : > { %v2599_v38 = vrot.slane %v2594_v37, %v4197_v54  ;;  %v2640_v22 = vrot.slane %v2635_v14, %v4174_v16 }
 0x545   : > { %2282 = vrot.lane.b32.xlu0 %v2272_v6, %s3829_s10  ;;  %2284 = vrot.lane.b32.xlu1 %v2279_v62, %s3829_s10 }
 0x549   : > { %2332 = vrot.lane.b32.xlu0 %v2321_v57, %s3830_s3  ;;  %2334 = vrot.lane.b32.xlu1 %v2329_v58, %s3830_s3 }
 0x54d   : > { %2380 = vrot.lane.b32.xlu0 %v2370_v61, %s3831_s14  ;;  %2382 = vrot.lane.b32.xlu1 %v2377_v63, %s3831_s14 }
 0x551   : > { %2430 = vrot.lane.b32.xlu0 %v2419_v8, %s3832_s20  ;;  %2432 = vrot.lane.b32.xlu1 %v2427_v9, %s3832_s20  ;;  %v2094_v8 = vld [vmem:[#allocation4 + $0x48] sm:$0xff] }
 0x555   : > { %2504 = vrot.lane.b32.xlu0 %v2493_v17, %s3833_s28  ;;  %2506 = vrot.lane.b32.xlu1 %v2501_v29, %s3833_s28 }
 0x559   : > { %2552 = vrot.lane.b32.xlu0 %v2542_v21, %s3834_s9  ;;  %2554 = vrot.lane.b32.xlu1 %v2549_v13, %s3834_s9 }
 0x55d   : > { %2602 = vrot.lane.b32.xlu0 %v2591_v15, %s3835_s15  ;;  %2604 = vrot.lane.b32.xlu1 %v2599_v38, %s3835_s15 }
 0x561   : > { %2650 = vrot.lane.b32.xlu0 %v2640_v22, %s3836_s21  ;;  %2652 = vrot.lane.b32.xlu1 %v2647_v18, %s3836_s21  ;;  %v4678_v22 = vld [vmem:[#allocation8 + $0x14] ss:$8 sps:$4 sm:$0xff]   ;;  %v4682_v18 = vld [vmem:[#allocation8 + $0x10] ss:$8 sps:$4 sm:$0xff]  }
 0x587   : > { %v1708_v41 = vpop.permute.xlu0 %1707  ;;  %v1710_v25 = vpop.permute.xlu1 %1709 }
 0x588   : > { %v1712_v42 = vsel %vm498_vm6, %v1708_v41, %v1710_v25  ;;  %v4685_v25 = vld [vmem:[#allocation10] sm:$0xff] }
 0x589   : > { %1716 = vst [vmem:[#allocation4 + $0x8] sm:$0x3f] %v1712_v42 }
 0x58b   : > { %v1706_v20 = vpop.permute.xlu0 %1705  ;;  %v1758_v54 = vpop.permute.xlu1 %1757 }
 0x58c   : > { %v1711_v43 = vsel %vm498_vm6, %v1706_v20, %v1708_v41  ;;  %v4688_v20 = vld [vmem:[#allocation11] sm:$0xff] }
 0x58d   : > { %1715 = vst [vmem:[#allocation4] sm:$0x3f] %v1711_v43 }
 0x58f   : > { %v1760_v45 = vpop.permute.xlu0 %1759  ;;  %v1756_v28 = vpop.permute.xlu1 %1755 }
 0x590   : > { %v1762_v23 = vsel %vm550_vm7, %v1758_v54, %v1760_v45  ;;  %v1761_v16 = vsel %vm550_vm7, %v1756_v28, %v1758_v54  ;;  %v2086_v46 = vld [vmem:[#allocation4 + $0x8] sm:$0xff]  ;;  %v2158_v54 = vmul.f32 %v4688_v20, %v4548_v3  ;;  %v4692_v45 = vld [vmem:[#allocation10 + $0x8] sm:$0xff] }
 0x591   : > { %1766 = vst [vmem:[#allocation4 + $0x18] sm:$0x3f] %v1762_v23  ;;  %1765 = vst [vmem:[#allocation4 + $0x10] sm:$0x3f] %v1761_v16  ;;  %2103 = vmatprep.subr.bf16.mxu0 %v2086_v46  ;;  %v4695_v23 = vld [vmem:[#allocation11 + $0x8] sm:$0xff] }
 0x592   : > { %v2159_v16 = vmul.f32 %v4695_v23, %v4550_v4 }
 0x593   : > { %v1806_v47 = vpop.permute.xlu0 %1805  ;;  %v1808_v40 = vpop.permute.xlu1 %1807 }
 0x594   : > { %v2085_v33 = vld [vmem:[#allocation4] sm:$0xff]  ;;  %v1810_v48 = vsel %vm600_vm4, %v1806_v47, %v1808_v40 }
 0x595   : > { %2104 = vmatpush1.bf16.msra.mxu0 %v2085_v33  ;;  %1814 = vst [vmem:[#allocation4 + $0x28] sm:$0x3f] %v1810_v48  ;;  %v4699_v40 = vld [vmem:[#allocation10 + $0x10] sm:$0xff] }
 0x596   : > { %v4702_v48 = vld [vmem:[#allocation13] sm:$0xff] }
 0x597   : > { %v1804_v6 = vpop.permute.xlu0 %1803  ;;  %v1856_v62 = vpop.permute.xlu1 %1855 }
 0x598   : > { %v1809_v49 = vsel %vm600_vm4, %v1804_v6, %v1806_v47  ;;  %v2088_v50 = vld [vmem:[#allocation4 + $0x18] sm:$0xff]  ;;  %v2087_v51 = vld [vmem:[#allocation4 + $0x10] sm:$0xff]  ;;  %v2174_v6 = vmul.f32 %v4702_v48, %v4548_v3 }
 0x599   : > { %1813 = vst [vmem:[#allocation4 + $0x20] sm:$0x3f] %v1809_v49  ;;  %2105 = vmatprep.subr.bf16.mxu0 %v2088_v50  ;;  %v4706_v50 = vld [vmem:[#allocation10 + $0x18] sm:$0xff] }
 0x59a   : > { %2106 = vmatpush1.bf16.msra.mxu0 %v2087_v51 }
 0x59b   : > { %v1858_v53 = vpop.permute.xlu0 %1857  ;;  %v1854_v56 = vpop.permute.xlu1 %1853 }
 0x59c   : > { %v1860_v57 = vsel %vm652_vm5, %v1856_v62, %v1858_v53  ;;  %v1859_v58 = vsel %vm652_vm5, %v1854_v56, %v1856_v62  ;;  %v2090_v59 = vld [vmem:[#allocation4 + $0x28] sm:$0xff] }
 0x59d   : > { %1864 = vst [vmem:[#allocation4 + $0x38] sm:$0x3f] %v1860_v57  ;;  %1863 = vst [vmem:[#allocation4 + $0x30] sm:$0x3f] %v1859_v58  ;;  %2107 = vmatprep.subr.bf16.mxu0 %v2090_v59  ;;  %v4709_v53 = vld [vmem:[#allocation13 + $0x8] sm:$0xff] }
 0x59e   : > { %v2175_v56 = vmul.f32 %v4709_v53, %v4550_v4 }
 0x59f   : > { %v1930_v52 = vpop.permute.xlu0 %1929  ;;  %v1932_v60 = vpop.permute.xlu1 %1931 }
 0x5a0   : > { %v2089_v55 = vld [vmem:[#allocation4 + $0x20] sm:$0xff]  ;;  %v1934_v61 = vsel %vm635_vm3, %v1930_v52, %v1932_v60 }
 0x5a1   : > { %2108 = vmatpush1.bf16.msra.mxu0 %v2089_v55  ;;  %1938 = vst [vmem:[#allocation4 + $0x58] sm:$0x3f] %v1934_v61 }
 0x5a3   : > { %v1928_v63 = vpop.permute.xlu0 %1927  ;;  %v1978_v0 = vpop.permute.xlu1 %1977 }
 0x5a4   : > { %v1933_v2 = vsel %vm635_vm3, %v1928_v63, %v1930_v52  ;;  %v2092_v5 = vld [vmem:[#allocation4 + $0x38] sm:$0xff]  ;;  %v2091_v7 = vld [vmem:[#allocation4 + $0x30] sm:$0xff] }
 0x5a5   : > { %1937 = vst [vmem:[#allocation4 + $0x50] sm:$0x3f] %v1933_v2  ;;  %2109 = vmatprep.subr.bf16.mxu0 %v2092_v5  ;;  %v4713_v5 = vld [vmem:[#allocation10 + $0x20] sm:$0xff] }
 0x5a6   : > { %2110 = vmatpush1.bf16.msra.mxu0 %v2091_v7 }
 0x5a7   : > { %2111 = vmatprep.subr.bf16.mxu0 %v2094_v8  ;;  %v1980_v9 = vpop.permute.xlu0 %1979  ;;  %v1976_v10 = vpop.permute.xlu1 %1975  ;;  %v4716_v8 = vld [vmem:[#allocation10 + $0x28] sm:$0xff] }
 0x5a8   : > { %v1982_v11 = vsel %vm583_vm2, %v1978_v0, %v1980_v9  ;;  %v1981_v24 = vsel %vm583_vm2, %v1976_v10, %v1978_v0  ;;  %v2096_v31 = vld [vmem:[#allocation4 + $0x58] sm:$0xff] }
 0x5a9   : > { %1986 = vst [vmem:[#allocation4 + $0x68] sm:$0x3f] %v1982_v11  ;;  %1985 = vst [vmem:[#allocation4 + $0x60] sm:$0x3f] %v1981_v24 }
 0x5aa   : > { %2112 = vmatpush1.bf16.msra.mxu0 %v2093_v26 }
 0x5ab   : > { %2113 = vmatprep.subr.bf16.mxu0 %v2096_v31  ;;  %v2028_v19 = vpop.permute.xlu0 %2027  ;;  %v2030_v32 = vpop.permute.xlu1 %2029 }
 0x5ac   : > { %v2095_v12 = vld [vmem:[#allocation4 + $0x50] sm:$0xff]  ;;  %v2032_v17 = vsel %vm533_vm1, %v2028_v19, %v2030_v32 }
 0x5ad   : > { %2036 = vst [vmem:[#allocation4 + $0x78] sm:$0x3f] %v2032_v17 }
 0x5ae   : > { %2114 = vmatpush1.bf16.msra.mxu0 %v2095_v12 }
 0x5af   : > { %v2026_v29 = vpop.permute.xlu0 %2025  ;;  %v2076_v27 = vpop.permute.xlu1 %2075 }
 0x5b0   : > { %v2031_v30 = vsel %vm533_vm1, %v2026_v29, %v2028_v19  ;;  %v2098_v34 = vld [vmem:[#allocation4 + $0x68] sm:$0xff]  ;;  %v2097_v21 = vld [vmem:[#allocation4 + $0x60] sm:$0xff] }
 0x5b1   : > { %2035 = vst [vmem:[#allocation4 + $0x70] sm:$0x3f] %v2031_v30  ;;  %2115 = vmatprep.subr.bf16.mxu0 %v2098_v34 }
 0x5b2   : > { %2116 = vmatpush1.bf16.msra.mxu0 %v2097_v21 }
 0x5b3   : > { %v2078_v1 = vpop.permute.xlu0 %2077  ;;  %v2074_v35 = vpop.permute.xlu1 %2073 }
 0x5b4   : > { %v2080_v13 = vsel %vm481_vm0, %v2076_v27, %v2078_v1  ;;  %v2079_v36 = vsel %vm481_vm0, %v2074_v35, %v2076_v27  ;;  %v2100_v37 = vld [vmem:[#allocation4 + $0x78] sm:$0xff] }
 0x5b5   : > { %2084 = vst [vmem:[#allocation4 + $0x88] sm:$0x3f] %v2080_v13  ;;  %2083 = vst [vmem:[#allocation4 + $0x80] sm:$0x3f] %v2079_v36  ;;  %2117 = vmatprep.subr.bf16.mxu0 %v2100_v37 }
 0x5b8   : > { %v2099_v14 = vld [vmem:[#allocation4 + $0x70] sm:$0xff] }
 0x5b9   : > { %2118 = vmatpush1.bf16.msra.mxu0 %v2099_v14 }
 0x5bc   : > { %v2102_v15 = vld [vmem:[#allocation4 + $0x88] sm:$0xff]  ;;  %v2101_v38 = vld [vmem:[#allocation4 + $0x80] sm:$0xff] }
 0x5bd   : > { %2119 = vmatprep.subr.bf16.mxu0 %v2102_v15  ;;  %v4725_v15 = vld [vmem:[#allocation10 + $0x30] sm:$0xff] }
 0x5be   : > { %2120 = vmatpush1.bf16.msra.mxu0 %v2101_v38 }
 0x5c1   : > { %2136 = vmatmul.mubr.bf16.vlgmr.msra.gmra.mrb[8].mxu0 %v4675_v39 }
 0x5c2   : > { %3095 = vmatprep.mubr.msk.bf16.mxu0 %vm550_vm7, %v4678_v22 }
 0x5c9   : > { %2146 = vmatmul.mubr.bf16.gmra.mrb[12].mxu0 %v4682_v18 }
 0x694   : > { %v2137_v41 = vpop.f32.mrb[8].mxu0 }
 0x695   : > { %v2138_v42 = vadd.f32 %v4685_v25, %v2137_v41  ;;  %v2139_v43 = vpop.f32.mrb[9].mxu0  ;;  %v4731_v41 = vld [vmem:[%s4961_s1] sm:$0xff] }
 0x696   : > { %v2140_v28 = vadd.f32 %v4692_v45, %v2139_v43  ;;  %v2141_v46 = vpop.f32.mrb[10].mxu0 }
 0x697   : > { %v2160_v47 = vadd.f32 %v2158_v54, %v2138_v42  ;;  %v2142_v33 = vadd.f32 %v4699_v40, %v2141_v46  ;;  %v2143_v62 = vpop.f32.mrb[11].mxu0  ;;  %v4735_v54 = vld [vmem:[#allocation10 + $0x38] sm:$0xff] }
 0x698   : > { %v2161_v49 = vadd.f32 %v2159_v16, %v2140_v28  ;;  %v2144_v51 = vadd.f32 %v4706_v50, %v2143_v62 }
 0x699   : > { %v3096_v57 = vmul.f32 -1.442695, %v2160_v47  ;;  %v2176_v58 = vadd.f32 %v2174_v6, %v2142_v33 }
 0x69a   : > { %v3097_v59 = vmul.f32 -1.442695, %v2161_v49  ;;  %v2177_v52 = vadd.f32 %v2175_v56, %v2144_v51 }
 0x69b   : > { %3451 = vpow2.f32 %v3096_v57  ;;  %v3098_v60 = vmul.f32 -1.442695, %v2176_v58 }
 0x69c   : > { %3453 = vpow2.f32 %v3097_v59  ;;  %v3099_v55 = vmul.f32 -1.442695, %v2177_v52  ;;  %v2147_v61 = vpop.f32.mrb[12].mxu0 }
 0x69d   : > { %3455 = vpow2.f32 %v3098_v60  ;;  %v2149_v63 = vpop.f32.mrb[13].mxu0  ;;  %v2148_v7 = vadd.f32 %v4713_v5, %v2147_v61 }
 0x69e   : > { %3457 = vpow2.f32 %v3099_v55  ;;  %v2151_v0 = vpop.f32.mrb[14].mxu0  ;;  %v2150_v9 = vadd.f32 %v4716_v8, %v2149_v63  ;;  %v2456_v63 = vld [vmem:[#allocation14] sm:$0x44] }
 0x69f   : > { %v2153_v2 = vpop.f32.mrb[15].mxu0  ;;  %3459 = vtanh.f32 %v2148_v7  ;;  %v2152_v38 = vadd.f32 %v4725_v15, %v2151_v0  ;;  %v2285_v0 = vpop.permute.xlu1 %2284  ;;  %v3118_v7 = vcombine.high %v2456_v63, %v2456_v63 }
 0x6a0   : > { %3461 = vtanh.f32 %v2150_v9  ;;  %v3117_v9 = vcombine.low %v2456_v63, %v2456_v63 }
 0x6a5   : > { %v3452_v10 = vpop.eup %3451 }
 0x6a6   : > { %v3454_v11 = vpop.eup %3453  ;;  %v2168_v24 = vadd.f32 1.0, %v3452_v10 }
 0x6a7   : > { %v3456_v26 = vpop.eup %3455  ;;  %v2169_v31 = vadd.f32 1.0, %v3454_v11 }
 0x6a8   : > { %v3458_v19 = vpop.eup %3457  ;;  %3463 = vrcp.f32 %v2168_v24  ;;  %v2184_v32 = vadd.f32 1.0, %v3456_v26  ;;  %v2470_v24 = vpack.i.b16 %v3118_v7, %v3118_v7  ;;  %v2463_v26 = vpack.i.b16 %v3117_v9, %v3117_v9 }
 0x6a9   : > { %3465 = vrcp.f32 %v2169_v31  ;;  %v2185_v12 = vadd.f32 1.0, %v3458_v19  ;;  %v3460_v17 = vpop.eup %3459  ;;  %v2335_v19 = vpop.permute.xlu1 %2334 }
 0x6aa   : > { %3467 = vrcp.f32 %v2184_v32  ;;  %v3462_v29 = vpop.eup %3461 }
 0x6ab   : > { %3469 = vrcp.f32 %v2185_v12 }
 0x6b2   : > { %v3464_v27 = vpop.eup %3463 }
 0x6b3   : > { %v3466_v30 = vpop.eup %3465  ;;  %v2194_v34 = vmul.f32 %v3464_v27, %v3460_v17  ;;  %v2475_v27 = vrot.slane %v2470_v24, %v4189_v44 }
 0x6b4   : > { %v3468_v21 = vpop.eup %3467  ;;  %v2195_v1 = vmul.f32 %v3466_v30, %v3462_v29  ;;  %v2468_v30 = vrot.slane %v2463_v26, %v4189_v44 }
 0x6b5   : > { %v3470_v35 = vpop.eup %3469  ;;  %v2190_v13 = vmul.f32 %v3468_v21, %v4548_v3  ;;  %v2154_v3 = vadd.f32 %v4735_v54, %v2153_v2  ;;  %v2283_v2 = vpop.permute.xlu0 %2282 }
 0x6b6   : > { %v2191_v36 = vmul.f32 %v3470_v35, %v4550_v4  ;;  %v4741_v4 = vld [vmem:[%s4961_s1 + $0x8] sm:$0xff]  ;;  %v2286_v10 = vsel %vm481_vm0, %v2283_v2, %v2285_v0 }
 0x6b7   : > { %v4721_v37 = vadd.f32 %v2194_v34, %v2190_v13 }
 0x6b8   : > { %v4723_v14 = vadd.f32 %v2195_v1, %v2191_v36  ;;  %v2383_v1 = vpop.permute.xlu1 %2382 }
 0x6b9   : > { %v2198_v42 = vmul.f32 %v4731_v41, %v4721_v37  ;;  %v2333_v32 = vpop.permute.xlu0 %2332 }
 0x6ba   : > { %v2199_v43 = vmul.f32 %v4741_v4, %v4723_v14  ;;  %v2336_v29 = vsel %vm533_vm1, %v2333_v32, %v2335_v19 }
 0x6bb   : > { %v2200_v28 = vadd.f32 %v2198_v42, %v2152_v38 }
 0x6bc   : > { %v2201_v16 = vadd.f32 %v2199_v43, %v2154_v3  ;;  %v2433_v3 = vpop.permute.xlu1 %2432 }
 0x6bd   : > { %v3100_v46 = vmul.f32 -1.442695, %v2200_v28  ;;  %v2381_v35 = vpop.permute.xlu0 %2380 }
 0x6be   : > { %v3101_v47 = vmul.f32 -1.442695, %v2201_v16  ;;  %v2384_v42 = vsel %vm583_vm2, %v2381_v35, %v2383_v1 }
 0x6bf   : > { %3471 = vpow2.f32 %v3100_v46 }
 0x6c0   : > { %3473 = vpow2.f32 %v3101_v47 }
 0x6c1   : > { %3475 = vtanh.f32 %v4721_v37  ;;  %v2431_v43 = vpop.permute.xlu0 %2430 }
 0x6c2   : > { %3477 = vtanh.f32 %v4723_v14  ;;  %v2434_v46 = vsel %vm635_vm3, %v2431_v43, %v2433_v3 }
 0x6c9   : > { %v3472_v33 = vpop.eup %3471 }
 0x6ca   : > { %v3474_v6 = vpop.eup %3473  ;;  %v2208_v62 = vadd.f32 1.0, %v3472_v33 }
 0x6cb   : > { %v2209_v49 = vadd.f32 1.0, %v3474_v6  ;;  %v3476_v51 = vpop.eup %3475  ;;  %v2507_v6 = vpop.permute.xlu1 %2506 }
 0x6cc   : > { %3479 = vrcp.f32 %v2208_v62  ;;  %v3478_v56 = vpop.eup %3477  ;;  %v2505_v62 = vpop.permute.xlu0 %2504 }
 0x6cd   : > { %3481 = vrcp.f32 %v2209_v49 }
 0x6d6   : > { %v3480_v57 = vpop.eup %3479 }
 0x6d7   : > { %v3482_v58 = vpop.eup %3481  ;;  %v2216_v59 = vmul.f32 %v3480_v57, %v3476_v51  ;;  %v2555_v57 = vpop.permute.xlu1 %2554 }
 0x6d8   : > { %v2217_v52 = vmul.f32 %v3482_v58, %v3478_v56  ;;  %v2508_v56 = vsel %vm652_vm5, %v2505_v62, %v2507_v6  ;;  %v2553_v58 = vpop.permute.xlu0 %2552 }
 0x6d9   : > { %3103 = vst [vmem:[%s4171_s11 + $0x20] sm:$0xff] %v2216_v59 }
 0x6da   : > { %v3148_v60 = vpack.c.bf16 %v2217_v52, %v2216_v59  ;;  %3104 = vst [vmem:[%s4171_s11 + $0x28] sm:$0xff] %v2217_v52 }
 0x6db   : > { %v2605_v63 = vpop.permute.xlu1 %2604 }
 0x6dc   : > { %v2227_v55 = vrot.slane %v3148_v60, 6  ;;  %v2556_v60 = vsel %vm600_vm4, %v2553_v58, %v2555_v57 }
 0x6de   : > { %v2228_v61 = vrot.slane %v2227_v55, 4  ;;  %2231 = vst [vmem:[#allocation2] sm:$0xcc] %v2227_v55 }
 0x6e0   : > { %2232 = vst [vmem:[#allocation2 + $0x8] sm:$0x33] %v2228_v61 }
 0x6e7   : > { %v4750_v11 = vld [vmem:[#allocation2] ss:$8 sps:$4 sm:$0x3f]   ;;  %v4752_v31 = vld [vmem:[#allocation2 + $0x4] ss:$8 sps:$4 sm:$0x3f]  }
 0x6e8   : > { %v2291_v12 = vmul.bf16 %v4750_v11, %v2286_v10  ;;  %v2292_v17 = vmul.bf16 %v4752_v31, %v2285_v0  ;;  %v2290_v34 = vmul.bf16 %v4752_v31, %v2283_v2  ;;  %v2341_v21 = vmul.bf16 %v4750_v11, %v2336_v29  ;;  %v2603_v0 = vpop.permute.xlu0 %2602  ;;  %v2653_v10 = vpop.permute.xlu1 %2652 }
 0x6e9   : > { %v2477_v13 = vmul.bf16 %v4752_v31, %v2475_v27  ;;  %v2476_v36 = vmul.bf16 %v4750_v11, %v2468_v30  ;;  %v2342_v38 = vmul.bf16 %v4752_v31, %v2335_v19  ;;  %v2340_v44 = vmul.bf16 %v4752_v31, %v2333_v32 }
 0x6ea   : > { %2298 = vrot.lane.b32.xlu0 %v2291_v12, %s3836_s21  ;;  %2300 = vrot.lane.b32.xlu1 %v2292_v17, %s3836_s21  ;;  %v2389_v28 = vmul.bf16 %v4750_v11, %v2384_v42  ;;  %v2390_v16 = vmul.bf16 %v4752_v31, %v2383_v1  ;;  %v2388_v47 = vmul.bf16 %v4752_v31, %v2381_v35 }
 0x6eb   : > { %2479 = vst [vmem:[#allocation4 + $0x48] sm:$0x3f] %v2477_v13  ;;  %2478 = vst [vmem:[#allocation4 + $0x40] sm:$0x3f] %v2476_v36  ;;  %v2439_v33 = vmul.bf16 %v4750_v11, %v2434_v46  ;;  %v2440_v49 = vmul.bf16 %v4752_v31, %v2433_v3  ;;  %v2438_v51 = vmul.bf16 %v4752_v31, %v2431_v43 }
 0x6ec   : > { %v2513_v59 = vmul.bf16 %v4752_v31, %v2508_v56  ;;  %v2514_v52 = vmul.bf16 %v4750_v11, %v2507_v6  ;;  %v2512_v55 = vmul.bf16 %v4750_v11, %v2505_v62  ;;  %v2561_v61 = vmul.bf16 %v4752_v31, %v2556_v60  ;;  %v2651_v24 = vpop.permute.xlu0 %2650 }
 0x6ed   : > { %v2562_v2 = vmul.bf16 %v4750_v11, %v2555_v57  ;;  %v2560_v7 = vmul.bf16 %v4750_v11, %v2553_v58  ;;  %v2606_v9 = vsel %vm550_vm7, %v2603_v0, %v2605_v63  ;;  %v2612_v19 = vmul.bf16 %v4750_v11, %v2605_v63 }
 0x6ee   : > { %2296 = vrot.lane.b32.xlu0 %v2290_v34, %s3836_s21  ;;  %2348 = vrot.lane.b32.xlu1 %v2341_v21, %s3835_s15  ;;  %v2611_v26 = vmul.bf16 %v4752_v31, %v2606_v9  ;;  %v2654_v32 = vsel %vm498_vm6, %v2651_v24, %v2653_v10  ;;  %v2610_v12 = vmul.bf16 %v4750_v11, %v2603_v0 }
 0x6ef   : > { %v2659_v17 = vmul.bf16 %v4752_v31, %v2654_v32  ;;  %v2660_v29 = vmul.bf16 %v4750_v11, %v2653_v10  ;;  %v2658_v27 = vmul.bf16 %v4750_v11, %v2651_v24 }
 0x6f2   : > { %2350 = vrot.lane.b32.xlu0 %v2342_v38, %s3835_s15  ;;  %2346 = vrot.lane.b32.xlu1 %v2340_v44, %s3835_s15 }
 0x6f6   : > { %2396 = vrot.lane.b32.xlu0 %v2389_v28, %s3834_s9  ;;  %2398 = vrot.lane.b32.xlu1 %v2390_v16, %s3834_s9 }
 0x6fa   : > { %2394 = vrot.lane.b32.xlu0 %v2388_v47, %s3834_s9  ;;  %2446 = vrot.lane.b32.xlu1 %v2439_v33, %s3833_s28 }
 0x6fe   : > { %2448 = vrot.lane.b32.xlu0 %v2440_v49, %s3833_s28  ;;  %2444 = vrot.lane.b32.xlu1 %v2438_v51, %s3833_s28  ;;  %s2844_s28 = sshll.u32 %s4171_s11, 4  ;;  %s4856_s28 = int_to_ptr.vmem [resolvable:$true] %s2844_s28 }
 0x6ff   : > { %s3703_s5 = scalar_lea.vmem %s4856_s28, 1024 }
 0x700   : > { %p3704_p8 = scmp.ne.s32.totalorder %s4856_s28, %s3703_s5 }
 0x702   : > { %2520 = vrot.lane.b32.xlu0 %v2513_v59, %s3832_s20  ;;  %2522 = vrot.lane.b32.xlu1 %v2514_v52, %s3832_s20  ;;  %p3705_p5 = pnand %p3704_p8, %p4965_p7 }
 0x704   : > { %p3706_p2 = pneg %p3705_p5 }
 0x706   : > { %2518 = vrot.lane.b32.xlu0 %v2512_v55, %s3832_s20  ;;  %2568 = vrot.lane.b32.xlu1 %v2561_v61, %s3831_s14 }
 0x70a   : > { %2570 = vrot.lane.b32.xlu0 %v2562_v2, %s3831_s14  ;;  %2566 = vrot.lane.b32.xlu1 %v2560_v7, %s3831_s14  ;;  %v2685_v7 = vld [vmem:[#allocation4 + $0x48] sm:$0xff] }
 0x70e   : > { %2618 = vrot.lane.b32.xlu0 %v2611_v26, %s3830_s3  ;;  %2620 = vrot.lane.b32.xlu1 %v2612_v19, %s3830_s3  ;;  %v2684_v19 = vld [vmem:[#allocation4 + $0x40] sm:$0xff] }
 0x712   : > { %2616 = vrot.lane.b32.xlu0 %v2610_v12, %s3830_s3  ;;  %2666 = vrot.lane.b32.xlu1 %v2659_v17, %s3829_s10  ;;  %s3150_s3 = sshll.u32 %s3797_s27, 3  ;;  %s4963_s27 = sld [smem:[#allocation28_spill]] }
 0x716   : > { %2668 = vrot.lane.b32.xlu0 %v2660_v29, %s3829_s10  ;;  %2664 = vrot.lane.b32.xlu1 %v2658_v27, %s3829_s10  ;;  %s4962_s10 = sld [smem:[#allocation22_spill]] }
 0x718   : > { %s4964_s2 = smov %s4963_s27 }
 0x71c   : > { %s3141_s14 = sshll.u32 %s4962_s10, 4  ;;  %s3707_s10 = sshll.u32 %s3837_s23, 4  ;;  %s3708_s10 = int_to_ptr.vmem [resolvable:$false] %s3707_s10 }
 0x71d   : > { %s2841_s20 = sadd.s32 %s3150_s3, %s3141_s14  ;;  %s3709_s3 = scalar_lea.vmem %s3708_s10, 2048 }
 0x71e   : > { %s3142_s9 = sshll.u32 %s2841_s20, 7  ;;  %p3710_p9 = scmp.lt.s32.totalorder %s4856_s28, %s3708_s10 }
 0x71f   : > { %s4861_s13 = scalar_lea.hbm %s4963_s27, %s3142_s9  ;;  %p3711_p10 = scmp.lt.s32.totalorder %s3709_s3, %s3703_s5 }
 0x721   : > { %p3712_p1 = por %p3711_p10, %p3710_p9 }
 0x723   : > { %p3713_p11 = pnand %p3712_p1, %p3706_p2 }
 0x75c   : > { %v2299_v30 = vpop.permute.xlu0 %2298  ;;  %v2301_v34 = vpop.permute.xlu1 %2300 }
 0x75d   : > { %v2303_v21 = vsel %vm498_vm6, %v2299_v30, %v2301_v34 }
 0x75e   : > { %2307 = vst [vmem:[#allocation4 + $0x8] sm:$0x3f] %v2303_v21 }
 0x760   : > { %v2297_v1 = vpop.permute.xlu0 %2296  ;;  %v2349_v35 = vpop.permute.xlu1 %2348 }
 0x761   : > { %v2302_v31 = vsel %vm498_vm6, %v2297_v1, %v2299_v30 }
 0x762   : > { %2306 = vst [vmem:[#allocation4] sm:$0x3f] %v2302_v31 }
 0x764   : > { %v2351_v13 = vpop.permute.xlu0 %2350  ;;  %v2347_v36 = vpop.permute.xlu1 %2346 }
 0x765   : > { %v2353_v38 = vsel %vm550_vm7, %v2349_v35, %v2351_v13  ;;  %v2352_v11 = vsel %vm550_vm7, %v2347_v36, %v2349_v35  ;;  %v2677_v44 = vld [vmem:[#allocation4 + $0x8] sm:$0xff] }
 0x766   : > { %2357 = vst [vmem:[#allocation4 + $0x18] sm:$0x3f] %v2353_v38  ;;  %2356 = vst [vmem:[#allocation4 + $0x10] sm:$0x3f] %v2352_v11  ;;  %2694 = vmatprep.subr.bf16.mxu1 %v2677_v44 }
 0x768   : > { %v2397_v42 = vpop.permute.xlu0 %2396  ;;  %v2399_v3 = vpop.permute.xlu1 %2398 }
 0x769   : > { %v2676_v43 = vld [vmem:[#allocation4] sm:$0xff]  ;;  %v2401_v28 = vsel %vm600_vm4, %v2397_v42, %v2399_v3 }
 0x76a   : > { %2695 = vmatpush1.bf16.msra.mxu1 %v2676_v43  ;;  %2405 = vst [vmem:[#allocation4 + $0x28] sm:$0x3f] %v2401_v28 }
 0x76c   : > { %v2395_v16 = vpop.permute.xlu0 %2394  ;;  %v2447_v46 = vpop.permute.xlu1 %2446 }
 0x76d   : > { %v2400_v47 = vsel %vm600_vm4, %v2395_v16, %v2397_v42  ;;  %v2679_v33 = vld [vmem:[#allocation4 + $0x18] sm:$0xff]  ;;  %v2678_v6 = vld [vmem:[#allocation4 + $0x10] sm:$0xff]  ;;  %v2749_v16 = vmul.f32 %v4688_v20, %v4721_v37  ;;  %v2766_v20 = vmul.f32 %v4709_v53, %v4723_v14 }
 0x76e   : > { %2404 = vst [vmem:[#allocation4 + $0x20] sm:$0x3f] %v2400_v47  ;;  %2696 = vmatprep.subr.bf16.mxu1 %v2679_v33  ;;  %v2750_v33 = vmul.f32 %v4695_v23, %v4723_v14 }
 0x76f   : > { %2697 = vmatpush1.bf16.msra.mxu1 %v2678_v6 }
 0x770   : > { %v2449_v62 = vpop.permute.xlu0 %2448  ;;  %v2445_v49 = vpop.permute.xlu1 %2444 }
 0x771   : > { %v2451_v51 = vsel %vm652_vm5, %v2447_v46, %v2449_v62  ;;  %v2450_v56 = vsel %vm652_vm5, %v2445_v49, %v2447_v46  ;;  %v2681_v57 = vld [vmem:[#allocation4 + $0x28] sm:$0xff] }
 0x772   : > { %2455 = vst [vmem:[#allocation4 + $0x38] sm:$0x3f] %v2451_v51  ;;  %2454 = vst [vmem:[#allocation4 + $0x30] sm:$0x3f] %v2450_v56  ;;  %2698 = vmatprep.subr.bf16.mxu1 %v2681_v57 }
 0x774   : > { %v2521_v58 = vpop.permute.xlu0 %2520  ;;  %v2523_v59 = vpop.permute.xlu1 %2522 }
 0x775   : > { %v2680_v52 = vld [vmem:[#allocation4 + $0x20] sm:$0xff]  ;;  %v2525_v60 = vsel %vm635_vm3, %v2521_v58, %v2523_v59 }
 0x776   : > { %2699 = vmatpush1.bf16.msra.mxu1 %v2680_v52  ;;  %2529 = vst [vmem:[#allocation4 + $0x58] sm:$0x3f] %v2525_v60 }
 0x778   : > { %v2519_v55 = vpop.permute.xlu0 %2518  ;;  %v2569_v61 = vpop.permute.xlu1 %2568 }
 0x779   : > { %v2524_v63 = vsel %vm635_vm3, %v2519_v55, %v2521_v58  ;;  %v2683_v0 = vld [vmem:[#allocation4 + $0x38] sm:$0xff]  ;;  %v2682_v2 = vld [vmem:[#allocation4 + $0x30] sm:$0xff] }
 0x77a   : > { %2528 = vst [vmem:[#allocation4 + $0x50] sm:$0x3f] %v2524_v63  ;;  %2700 = vmatprep.subr.bf16.mxu1 %v2683_v0 }
 0x77b   : > { %2701 = vmatpush1.bf16.msra.mxu1 %v2682_v2 }
 0x77c   : > { %2702 = vmatprep.subr.bf16.mxu1 %v2685_v7  ;;  %v2571_v9 = vpop.permute.xlu0 %2570  ;;  %v2567_v10 = vpop.permute.xlu1 %2566 }
 0x77d   : > { %v2573_v24 = vsel %vm583_vm2, %v2569_v61, %v2571_v9  ;;  %v2572_v26 = vsel %vm583_vm2, %v2567_v10, %v2569_v61  ;;  %v2687_v32 = vld [vmem:[#allocation4 + $0x58] sm:$0xff] }
 0x77e   : > { %2577 = vst [vmem:[#allocation4 + $0x68] sm:$0x3f] %v2573_v24  ;;  %2576 = vst [vmem:[#allocation4 + $0x60] sm:$0x3f] %v2572_v26 }
 0x77f   : > { %2703 = vmatpush1.bf16.msra.mxu1 %v2684_v19 }
 0x780   : > { %2704 = vmatprep.subr.bf16.mxu1 %v2687_v32  ;;  %v2619_v12 = vpop.permute.xlu0 %2618  ;;  %v2621_v17 = vpop.permute.xlu1 %2620 }
 0x781   : > { %v2686_v29 = vld [vmem:[#allocation4 + $0x50] sm:$0xff]  ;;  %v2623_v27 = vsel %vm533_vm1, %v2619_v12, %v2621_v17 }
 0x782   : > { %2627 = vst [vmem:[#allocation4 + $0x78] sm:$0x3f] %v2623_v27 }
 0x783   : > { %2705 = vmatpush1.bf16.msra.mxu1 %v2686_v29 }
 0x784   : > { %v2617_v30 = vpop.permute.xlu0 %2616  ;;  %v2667_v34 = vpop.permute.xlu1 %2666 }
 0x785   : > { %v2622_v21 = vsel %vm533_vm1, %v2617_v30, %v2619_v12  ;;  %v2689_v1 = vld [vmem:[#allocation4 + $0x68] sm:$0xff]  ;;  %v2688_v35 = vld [vmem:[#allocation4 + $0x60] sm:$0xff] }
 0x786   : > { %2626 = vst [vmem:[#allocation4 + $0x70] sm:$0x3f] %v2622_v21  ;;  %2706 = vmatprep.subr.bf16.mxu1 %v2689_v1 }
 0x787   : > { %2707 = vmatpush1.bf16.msra.mxu1 %v2688_v35 }
 0x788   : > { %v2669_v31 = vpop.permute.xlu0 %2668  ;;  %v2665_v13 = vpop.permute.xlu1 %2664 }
 0x789   : > { %v2671_v36 = vsel %vm481_vm0, %v2667_v34, %v2669_v31  ;;  %v2670_v38 = vsel %vm481_vm0, %v2665_v13, %v2667_v34  ;;  %v2691_v11 = vld [vmem:[#allocation4 + $0x78] sm:$0xff] }
 0x78a   : > { %2675 = vst [vmem:[#allocation4 + $0x88] sm:$0x3f] %v2671_v36  ;;  %2674 = vst [vmem:[#allocation4 + $0x80] sm:$0x3f] %v2670_v38  ;;  %2708 = vmatprep.subr.bf16.mxu1 %v2691_v11 }
 0x78d   : > { %v2690_v44 = vld [vmem:[#allocation4 + $0x70] sm:$0xff] }
 0x78e   : > { %2709 = vmatpush1.bf16.msra.mxu1 %v2690_v44 }
 0x791   : > { %v2693_v42 = vld [vmem:[#allocation4 + $0x88] sm:$0xff]  ;;  %v2692_v3 = vld [vmem:[#allocation4 + $0x80] sm:$0xff] }
 0x792   : > { %2710 = vmatprep.subr.bf16.mxu1 %v2693_v42 }
 0x793   : > { %2711 = vmatpush1.bf16.msra.mxu1 %v2692_v3 }
 0x796   : > { %2727 = vmatmul.mubr.bf16.vlgmr.msra.gmra.mrb[8].mxu1 %v4675_v39 }
 0x797   : > { %3128 = vmatprep.mubr.msk.bf16.mxu1 %vm550_vm7, %v4678_v22  ;;  %v2765_v22 = vmul.f32 %v4702_v48, %v4721_v37 }
 0x79e   : > { %2737 = vmatmul.mubr.bf16.gmra.mrb[12].mxu1 %v4682_v18 }
 0x869   : > { %v2728_v43 = vpop.f32.mrb[8].mxu1 }
 0x86a   : > { %v2729_v28 = vadd.f32 %v4685_v25, %v2728_v43  ;;  %v2730_v46 = vpop.f32.mrb[9].mxu1 }
 0x86b   : > { %v2731_v47 = vadd.f32 %v4692_v45, %v2730_v46  ;;  %v2732_v6 = vpop.f32.mrb[10].mxu1 }
 0x86c   : > { %v2751_v62 = vadd.f32 %v2749_v16, %v2729_v28  ;;  %v2733_v39 = vadd.f32 %v4699_v40, %v2732_v6  ;;  %v2734_v18 = vpop.f32.mrb[11].mxu1 }
 0x86d   : > { %v2752_v49 = vadd.f32 %v2750_v33, %v2731_v47  ;;  %v2735_v25 = vadd.f32 %v4706_v50, %v2734_v18 }
 0x86e   : > { %v3129_v51 = vmul.f32 -1.442695, %v2751_v62  ;;  %v2767_v56 = vadd.f32 %v2765_v22, %v2733_v39 }
 0x86f   : > { %v3130_v45 = vmul.f32 -1.442695, %v2752_v49  ;;  %v2768_v57 = vadd.f32 %v2766_v20, %v2735_v25 }
 0x870   : > { %3483 = vpow2.f32 %v3129_v51  ;;  %v3131_v23 = vmul.f32 -1.442695, %v2767_v56 }
 0x871   : > { %3485 = vpow2.f32 %v3130_v45  ;;  %v3132_v58 = vmul.f32 -1.442695, %v2768_v57  ;;  %v2738_v59 = vpop.f32.mrb[12].mxu1 }
 0x872   : > { %3487 = vpow2.f32 %v3131_v23  ;;  %v2740_v40 = vpop.f32.mrb[13].mxu1  ;;  %v2739_v60 = vadd.f32 %v4713_v5, %v2738_v59 }
 0x873   : > { %3489 = vpow2.f32 %v3132_v58  ;;  %v2742_v48 = vpop.f32.mrb[14].mxu1  ;;  %v2741_v50 = vadd.f32 %v4716_v8, %v2740_v40 }
 0x874   : > { %v2744_v52 = vpop.f32.mrb[15].mxu1  ;;  %3491 = vtanh.f32 %v2739_v60  ;;  %v2743_v34 = vadd.f32 %v4725_v15, %v2742_v48 }
 0x875   : > { %3493 = vtanh.f32 %v2741_v50  ;;  %v2745_v1 = vadd.f32 %v4735_v54, %v2744_v52 }
 0x87a   : > { %v3484_v55 = vpop.eup %3483 }
 0x87b   : > { %v3486_v53 = vpop.eup %3485  ;;  %v2759_v61 = vadd.f32 1.0, %v3484_v55 }
 0x87c   : > { %v3488_v63 = vpop.eup %3487  ;;  %v2760_v0 = vadd.f32 1.0, %v3486_v53 }
 0x87d   : > { %v3490_v2 = vpop.eup %3489  ;;  %3495 = vrcp.f32 %v2759_v61  ;;  %v2775_v7 = vadd.f32 1.0, %v3488_v63 }
 0x87e   : > { %3497 = vrcp.f32 %v2760_v0  ;;  %v2776_v9 = vadd.f32 1.0, %v3490_v2  ;;  %v3492_v10 = vpop.eup %3491 }
 0x87f   : > { %3499 = vrcp.f32 %v2775_v7  ;;  %v3494_v24 = vpop.eup %3493 }
 0x880   : > { %3501 = vrcp.f32 %v2776_v9 }
 0x887   : > { %v3496_v26 = vpop.eup %3495 }
 0x888   : > { %v3498_v5 = vpop.eup %3497  ;;  %v2785_v19 = vmul.f32 %v3496_v26, %v3492_v10 }
 0x889   : > { %v3500_v8 = vpop.eup %3499  ;;  %v2786_v32 = vmul.f32 %v3498_v5, %v3494_v24 }
 0x88a   : > { %v3502_v12 = vpop.eup %3501  ;;  %v2781_v17 = vmul.f32 %v3500_v8, %v4721_v37 }
 0x88b   : > { %v2782_v29 = vmul.f32 %v3502_v12, %v4723_v14 }
 0x88c   : > { %v2787_v27 = vadd.f32 %v2785_v19, %v2781_v17 }
 0x88d   : > { %v2788_v30 = vadd.f32 %v2786_v32, %v2782_v29 }
 0x88e   : > { %v2789_v21 = vmul.f32 %v4731_v41, %v2787_v27  ;;  %2809 = vst [vmem:[#allocation3] sm:$0xff] %v2787_v27 }
 0x88f   : > { %v2790_v35 = vmul.f32 %v4741_v4, %v2788_v30  ;;  %2810 = vst [vmem:[#allocation3 + $0x8] sm:$0xff] %v2788_v30 }
 0x890   : > { %v2791_v31 = vadd.f32 %v2789_v21, %v2743_v34 }
 0x891   : > { %v2792_v13 = vadd.f32 %v2790_v35, %v2745_v1 }
 0x892   : > { %v3133_v36 = vmul.f32 -1.442695, %v2791_v31 }
 0x893   : > { %v3134_v37 = vmul.f32 -1.442695, %v2792_v13 }
 0x894   : > { %3503 = vpow2.f32 %v3133_v36 }
 0x895   : > { %3505 = vpow2.f32 %v3134_v37 }
 0x896   : > { %3507 = vtanh.f32 %v2787_v27 }
 0x897   : > { %3509 = vtanh.f32 %v2788_v30 }
 0x89e   : > { %v3504_v14 = vpop.eup %3503 }
 0x89f   : > { %v3506_v38 = vpop.eup %3505  ;;  %v2799_v15 = vadd.f32 1.0, %v3504_v14 }
 0x8a0   : > { %v2800_v41 = vadd.f32 1.0, %v3506_v38  ;;  %v3508_v54 = vpop.eup %3507 }
 0x8a1   : > { %3511 = vrcp.f32 %v2799_v15  ;;  %v3510_v4 = vpop.eup %3509 }
 0x8a2   : > { %3513 = vrcp.f32 %v2800_v41 }
 0x8ab   : > { %v3512_v11 = vpop.eup %3511 }
 0x8ac   : > { %v3514_v44 = vpop.eup %3513  ;;  %v2807_v42 = vmul.f32 %v3512_v11, %v3508_v54 }
 0x8ad   : > { %v2808_v3 = vmul.f32 %v3514_v44, %v3510_v4 }
 0x8ae   : > { %3136 = vst [vmem:[%s4171_s11 + $0x30] sm:$0xff] %v2807_v42 }
 0x8af   : > { %v3149_v43 = vpack.c.bf16 %v2808_v3, %v2807_v42  ;;  %3137 = vst [vmem:[%s4171_s11 + $0x38] sm:$0xff] %v2808_v3 }
 0x8b0   : > { %3716 = shalt.err (!%p3713_p11)
}
 0x8b1   : > { %s3717_s11 = scalar_lea.hbm %s4861_s13, 1024  ;;  %s3721_s9 = scalar_lea.hbm %s4964_s2, 4096 }
 0x8b2   : > { %p3718_p12 = scmp.ne.s32.totalorder %s4861_s13, %s3717_s11  ;;  %p3722_p3 = scmp.lt.u32.totalorder %s4861_s13, %s4964_s2 }
 0x8b3   : > { %p3723_p6 = scmp.lt.u32.totalorder %s3721_s9, %s3717_s11  ;;  %p3725_p8 = scmp.lt.u32.totalorder %s3717_s11, %s4861_s13 }
 0x8b4   : > { %p3719_p13 = pnand %p3718_p12, %p4965_p7 }
 0x8b5   : > { %p3724_p4 = por %p3723_p6, %p3722_p3 }
 0x8b6   : > { %p3720_p0 = pneg %p3719_p13 }
 0x8b7   : > { %p3726_p5 = por %p3725_p8, %p3724_p4 }
 0x8b9   : > { %p3727_p2 = pnand %p3726_p5, %p3720_p0 }
 0x8bb   : > { %3730 = shalt.err (!%p3727_p2)
}
 0x8bc   : > { %s3838_s27 = smov 256   ;;  %v2818_v28 = vrot.slane %v3149_v43, 6 }
 0x8bd   : > { %3173 = dma.vmem_to_hbm [thread:$0]  (%p4965_p7), %s4856_s28, 1024, %s4861_s13, %s2828_s4, %s3838_s27, %s3838_s27, %s3835_s15  }
 0x8be   : > { %v2819_v16 = vrot.slane %v2818_v28, 4  ;;  %2822 = vst [vmem:[#allocation2] sm:$0xcc] %v2818_v28 }
 0x8c0   : > { %2823 = vst [vmem:[#allocation2 + $0x8] sm:$0x33] %v2819_v16 }
 0x8c1 PF: > { %p3210_p9 = scmp.ge.s32.totalorder %s3813_s8, 2  ;;  %s2859_s5 = sand.u32 1, %s3785_s24  }
 0x8c2   : > { %p4966_p10 = scmp.ne.s32.totalorder %s4957_s7, 0  ;;  %s2860_s23 = scalar_lea.sflag [#allocation7], %s2859_s5 }
 0x8c4   : > { %p3196_p1 = pnand %p3210_p9, %p4966_p10 }
 0x8c6   : > { %3780 = dma.done.wait (!%p3196_p1), %s2860_s23, 1024  }
 0x8c7   : > { %3782 = vsyncadd (!%p3196_p1), %s2860_s23, 4294966272  ;;  %s26_s8 = sadd.s32 1, %s3813_s8   ;;  %s4967_s24 = smov %s3789_s25 }
 0x8c8   : > { %p23_p11 = scmp.ge.s32.totalorder %s26_s8, 6   ;;  %s4968_s25 = smov %s3793_s26 }
 0x8c9   : > { %s4969_s26 = smov %s4100_s22  ;;  %s4970_s27 = smov %s3805_s29 }
 0x8ca   : > { %s4971_s28 = smov %s3809_s30  ;;  %s4972_s29 = smov %s4975_s12 }
 0x8cb   : > { %s4973_s30 = smov %s4979_s18  ;;  %25 = sbr.rel (!%p23_p11) target bundleno = 17 (0x11), region = 123 }
 0x8d2   :  { %2865 = vsyncpa [#allocation6], 1 }
 0x8d3   :  { %2867 = vsyncpa [#allocation6 + $0x1], 1 }
 0x8d4   :  { %2868 = vsyncpa [#allocation9], 1 }
 0x8d5   :  { %2869 = vsyncpa [#allocation12], 1 }
 0x8d6   :  { %2870 = vsyncpa [#allocation15], 1 }
 0x8d7   :  { %2871 = vsyncpa [#allocation7], 1 }
 0x8d8   :  { %2873 = vsyncpa [#allocation7 + $0x1], 1 }

</bundles_post_ra>
